<compile_context>
chip_gen: v7x
topology: tpu7x:2x2x1
jax: 0.10.0
libtpu: 0.0.40
codegen_flags: <defaults>
</compile_context>

<pallas_src>
import functools

import jax
import jax.numpy as jnp
from jax import lax
from jax.experimental import pallas as pl
from jax.experimental.pallas import tpu as pltpu


def _resblock_kernel(x_ref, w1_ref, b1_ref, w2_ref, b2_ref, o_ref,
                     xbf_ref, h_ref, acc_ref, *, H, W):
    """One batch element per grid step.

    Flat spatial layout: padded image has P = W + 2 columns and H + 3 rows
    (1 top pad row, 2 bottom pad rows), flattened over (row, col); channels
    are padded to Cp lanes.

    x_ref  : (1, (H+3)*P, Cp) f32   zero-padded input, flat spatial
    w*_ref : (9, Cp, Cp)      bf16  3x3 taps, tap-major k = dy*3 + dx (HWIO)
    b*_ref : (1, Cp)          f32
    o_ref  : (1, H*P, Cp)     f32   "wide" rows s = y*P + x  (x < W are valid)
    xbf_ref: ((H+3)*P, Cp)    bf16  scratch: bf16 copy of input (MXU operand)
    h_ref  : ((H+3)*P, Cp)    bf16  scratch: zero-bordered relu(conv1(x))
    acc_ref: (H*P, Cp)        f32   scratch: shared accumulator for both convs
    """
    P = W + 2
    S = H * P
    Spad = (H + 3) * P
    Cp = acc_ref.shape[1]

    # bf16 copy for the MXU; keep the f32 original for the exact residual add.
    xbf_ref[...] = x_ref[0].astype(jnp.bfloat16)

    # ---- conv1: 9 taps as statically-offset contiguous row windows ---------
    # Wide row s = y*P + x needs padded pixel (y+dy, x+dx) = flat s + dy*P + dx.
    for k in range(9):
        dy, dx = divmod(k, 3)
        off = dy * P + dx
        contrib = jnp.dot(xbf_ref[off:off + S, :], w1_ref[k],
                          preferred_element_type=jnp.float32)
        if k == 0:
            acc_ref[...] = contrib
        else:
            acc_ref[...] += contrib

    h = jnp.maximum(acc_ref[...] + b1_ref[...], 0.0)
    # Wide columns x in {W, W+1} are cross-row garbage; they land exactly on
    # the zero border of the padded h buffer, so zero them on the way out.
    col = lax.broadcasted_iota(jnp.int32, (S, 1), 0) % P
    h = jnp.where(col < W, h, 0.0)

    # Only the thin border is (re)zeroed; the interior [P+1, P+1+S) is fully
    # overwritten every step (megacore-safe, no full-scratch memset).
    h_ref[0:P + 1, :] = jnp.zeros((P + 1, Cp), h_ref.dtype)
    h_ref[P + 1 + S:Spad, :] = jnp.zeros((Spad - (P + 1 + S), Cp), h_ref.dtype)
    h_ref[P + 1:P + 1 + S, :] = h.astype(h_ref.dtype)

    # ---- conv2 (reuses the f32 accumulator) --------------------------------
    for k in range(9):
        dy, dx = divmod(k, 3)
        off = dy * P + dx
        contrib = jnp.dot(h_ref[off:off + S, :], w2_ref[k],
                          preferred_element_type=jnp.float32)
        if k == 0:
            acc_ref[...] = contrib
        else:
            acc_ref[...] += contrib

    # ---- bias + exact f32 residual add, dense 128-lane store ---------------
    identity = x_ref[0, P + 1:P + 1 + S, :]
    o_ref[0] = (identity + acc_ref[...] + b2_ref[...]).astype(o_ref.dtype)


def residual_block_nobn(x_nchw, w1_oihw, b1, w2_oihw, b2):
    """Forward of ResidualBlock_noBN.

    x_nchw : (N, C, H, W) f32   (PyTorch NCHW convention)
    w*_oihw: (C, C, 3, 3) f32   (PyTorch Conv2d weight layout)
    b*     : (C,)         f32
    returns (N, C, H, W) f32
    """
    N, C, H, W = x_nchw.shape
    Cp = max(128, pl.cdiv(C, 128) * 128)   # lane-dense channel padding
    P = W + 2
    S = H * P
    Spad = (H + 3) * P

    # NCHW -> NHWC, zero-pad 1 row top / 2 rows bottom / 1 col each side and
    # channels C -> Cp, then flatten (rows, cols) so every 3x3 tap becomes a
    # contiguous row window at a static offset.
    x = jnp.transpose(x_nchw, (0, 2, 3, 1)).astype(jnp.float32)
    x = jnp.pad(x, ((0, 0), (1, 2), (1, 1), (0, Cp - C)))
    x_flat = x.reshape(N, Spad, Cp)

    def pack_w(w_oihw):
        # (Cout, Cin, kh, kw) -> (kh, kw, Cin, Cout) -> (9, Cin, Cout), pad, bf16.
        w = jnp.transpose(w_oihw, (2, 3, 1, 0)).reshape(9, C, C)
        w = jnp.pad(w, ((0, 0), (0, Cp - C), (0, Cp - C)))
        return w.astype(jnp.bfloat16)

    def pack_b(b):
        return jnp.pad(jnp.reshape(b, (1, C)),
                       ((0, 0), (0, Cp - C))).astype(jnp.float32)

    w1p, b1p = pack_w(w1_oihw), pack_b(b1)
    w2p, b2p = pack_w(w2_oihw), pack_b(b2)

    kernel = functools.partial(_resblock_kernel, H=H, W=W)

    out_wide = pl.pallas_call(
        kernel,
        out_shape=jax.ShapeDtypeStruct((N, S, Cp), jnp.float32),
        grid_spec=pltpu.PrefetchScalarGridSpec(
            num_scalar_prefetch=0,
            grid=(N,),
            in_specs=[
                pl.BlockSpec((1, Spad, Cp), lambda n: (n, 0, 0)),
                pl.BlockSpec((9, Cp, Cp), lambda n: (0, 0, 0)),
                pl.BlockSpec((1, Cp), lambda n: (0, 0)),
                pl.BlockSpec((9, Cp, Cp), lambda n: (0, 0, 0)),
                pl.BlockSpec((1, Cp), lambda n: (0, 0)),
            ],
            out_specs=pl.BlockSpec((1, S, Cp), lambda n: (n, 0, 0)),
            scratch_shapes=[
                pltpu.VMEM((Spad, Cp), jnp.bfloat16),   # bf16 input copy
                pltpu.VMEM((Spad, Cp), jnp.bfloat16),   # padded relu(conv1(x))
                pltpu.VMEM((S, Cp), jnp.float32),       # shared f32 accumulator
            ],
        ),
        compiler_params=pltpu.CompilerParams(
            dimension_semantics=("parallel",),          # batch across megacore TCs
            vmem_limit_bytes=48 * 1024 * 1024,
        ),
    )(x_flat, w1p, b1p, w2p, b2p)

    # Wide rows are y*P + x; columns x >= W are scratch -> drop them, drop the
    # channel padding and go back to NCHW.
    out = out_wide.reshape(N, H, P, Cp)[:, :, :W, :C]
    return jnp.transpose(out, (0, 3, 1, 2))


def _reference(x_nchw, w1_oihw, b1, w2_oihw, b2):
    """Pure-XLA f32 reference of the PyTorch module."""
    dn = ("NHWC", "HWIO", "NHWC")
    xn = jnp.transpose(x_nchw, (0, 2, 3, 1))
    w1h = jnp.transpose(w1_oihw, (2, 3, 1, 0))
    w2h = jnp.transpose(w2_oihw, (2, 3, 1, 0))
    y = lax.conv_general_dilated(xn, w1h, (1, 1), "SAME", dimension_numbers=dn) + b1
    y = jnp.maximum(y, 0.0)
    y = lax.conv_general_dilated(y, w2h, (1, 1), "SAME", dimension_numbers=dn) + b2
    return jnp.transpose(xn + y, (0, 3, 1, 2))


if __name__ == "__main__":
    N, C, H, W = 2, 4, 16, 16   # small synthetic nf=4 configuration
    key = jax.random.PRNGKey(0)
    kx, k1, k2 = jax.random.split(key, 3)

    x = jax.random.normal(kx, (N, C, H, W), jnp.float32)

    def init_conv(k, c, scale=0.1):
        # Kaiming normal (fan_in, a=0) * scale, zero bias -> matches initialize_weights.
        fan_in = c * 3 * 3
        std = (2.0 / fan_in) ** 0.5
        w = jax.random.normal(k, (c, c, 3, 3), jnp.float32) * std * scale
        b = jnp.zeros((c,), jnp.float32)
        return w, b

    w1, b1 = init_conv(k1, C)
    w2, b2 = init_conv(k2, C)

    out = residual_block_nobn(x, w1, b1, w2, b2)
    out = jax.block_until_ready(out)
    assert out.shape == (N, C, H, W)

    ref = _reference(x, w1, b1, w2, b2)
    max_err = float(jnp.max(jnp.abs(out - ref)))
    assert jnp.allclose(out, ref, atol=1e-2, rtol=1e-2), f"mismatch vs reference: {max_err}"

    print("KERNEL_OK")
</pallas_src>

<mosaic_0001>
module attributes {stable_mosaic.version = 11 : i64} {
  func.func @_resblock_kernel(%arg0: i32, %arg1: memref<1x342x128xf32, #tpu.memory_space<vmem>>, %arg2: memref<9x128x128xbf16, #tpu.memory_space<vmem>>, %arg3: memref<1x128xf32, #tpu.memory_space<vmem>>, %arg4: memref<9x128x128xbf16, #tpu.memory_space<vmem>>, %arg5: memref<1x128xf32, #tpu.memory_space<vmem>>, %arg6: memref<1x288x128xf32, #tpu.memory_space<vmem>>, %arg7: memref<342x128xbf16, #tpu.memory_space<vmem>>, %arg8: memref<342x128xbf16, #tpu.memory_space<vmem>>, %arg9: memref<288x128xf32, #tpu.memory_space<vmem>>) attributes {dimension_semantics = [#tpu.dimension_semantics<parallel>], iteration_bounds = array<i64: 2>, scalar_prefetch = 0 : i64, scratch_operands = 3 : i64, tpu.core_type = #tpu.core_type<tc>, window_params = [{transform_indices = @transform_0, window_bounds = array<i64: 1, 342, 128>}, {pipeline_mode = #tpu.pipeline_mode<synchronous>, transform_indices = @transform_1, window_bounds = array<i64: 9, 128, 128>}, {pipeline_mode = #tpu.pipeline_mode<synchronous>, transform_indices = @transform_2, window_bounds = array<i64: 1, 128>}, {pipeline_mode = #tpu.pipeline_mode<synchronous>, transform_indices = @transform_3, window_bounds = array<i64: 9, 128, 128>}, {pipeline_mode = #tpu.pipeline_mode<synchronous>, transform_indices = @transform_4, window_bounds = array<i64: 1, 128>}, {transform_indices = @transform_5, window_bounds = array<i64: 1, 288, 128>}]} {
    %c0 = arith.constant 0 : index
    %c0_0 = arith.constant 0 : index
    %c0_1 = arith.constant 0 : index
    %0 = vector.load %arg1[%c0, %c0_0, %c0_1] : memref<1x342x128xf32, #tpu.memory_space<vmem>>, vector<1x342x128xf32>
    %1 = vector.shape_cast %0 : vector<1x342x128xf32> to vector<342x128xf32>
    %2 = arith.truncf %1 : vector<342x128xf32> to vector<342x128xbf16>
    %c0_2 = arith.constant 0 : index
    %c0_3 = arith.constant 0 : index
    %3 = vector.load %arg7[%c0_2, %c0_3] : memref<342x128xbf16, #tpu.memory_space<vmem>>, vector<342x128xbf16>
    tpu.vector_store %arg7[%c0_2, %c0_3], %2 {strides = array<i32>} : memref<342x128xbf16, #tpu.memory_space<vmem>>, vector<342x128xbf16>,
    %c0_4 = arith.constant 0 : index
    %c0_5 = arith.constant 0 : index
    %4 = vector.load %arg7[%c0_4, %c0_5] : memref<342x128xbf16, #tpu.memory_space<vmem>>, vector<288x128xbf16>
    %c0_6 = arith.constant 0 : index
    %c0_7 = arith.constant 0 : index
    %c0_8 = arith.constant 0 : index
    %5 = vector.load %arg2[%c0_6, %c0_7, %c0_8] : memref<9x128x128xbf16, #tpu.memory_space<vmem>>, vector<1x128x128xbf16>
    %6 = vector.shape_cast %5 : vector<1x128x128xbf16> to vector<128x128xbf16>
    %cst = arith.constant dense<0.000000e+00> : vector<288x128xf32>
    %7 = tpu.matmul %4, %6, %cst {dimension_numbers = #tpu.dot_dimension_numbers<[1], [0], [0], [1], [0, 0, 1, 1], [], []>} : vector<288x128xbf16>, vector<128x128xbf16>, vector<288x128xf32> -> vector<288x128xf32>
    %c0_9 = arith.constant 0 : index
    %c0_10 = arith.constant 0 : index
    %8 = vector.load %arg9[%c0_9, %c0_10] : memref<288x128xf32, #tpu.memory_space<vmem>>, vector<288x128xf32>
    tpu.vector_store %arg9[%c0_9, %c0_10], %7 {strides = array<i32>} : memref<288x128xf32, #tpu.memory_space<vmem>>, vector<288x128xf32>,
    %c1 = arith.constant 1 : index
    %c0_11 = arith.constant 0 : index
    %9 = vector.load %arg7[%c1, %c0_11] : memref<342x128xbf16, #tpu.memory_space<vmem>>, vector<288x128xbf16>
    %c1_12 = arith.constant 1 : index
    %c0_13 = arith.constant 0 : index
    %c0_14 = arith.constant 0 : index
    %10 = vector.load %arg2[%c1_12, %c0_13, %c0_14] : memref<9x128x128xbf16, #tpu.memory_space<vmem>>, vector<1x128x128xbf16>
    %11 = vector.shape_cast %10 : vector<1x128x128xbf16> to vector<128x128xbf16>
    %cst_15 = arith.constant dense<0.000000e+00> : vector<288x128xf32>
    %12 = tpu.matmul %9, %11, %cst_15 {dimension_numbers = #tpu.dot_dimension_numbers<[1], [0], [0], [1], [0, 0, 1, 1], [], []>} : vector<288x128xbf16>, vector<128x128xbf16>, vector<288x128xf32> -> vector<288x128xf32>
    %c0_16 = arith.constant 0 : index
    %c0_17 = arith.constant 0 : index
    %13 = vector.load %arg9[%c0_16, %c0_17] : memref<288x128xf32, #tpu.memory_space<vmem>>, vector<288x128xf32>
    %14 = arith.addf %13, %12 : vector<288x128xf32>
    %c0_18 = arith.constant 0 : index
    %c0_19 = arith.constant 0 : index
    %15 = vector.load %arg9[%c0_18, %c0_19] : memref<288x128xf32, #tpu.memory_space<vmem>>, vector<288x128xf32>
    tpu.vector_store %arg9[%c0_18, %c0_19], %14 {strides = array<i32>} : memref<288x128xf32, #tpu.memory_space<vmem>>, vector<288x128xf32>,
    %c2 = arith.constant 2 : index
    %c0_20 = arith.constant 0 : index
    %16 = vector.load %arg7[%c2, %c0_20] : memref<342x128xbf16, #tpu.memory_space<vmem>>, vector<288x128xbf16>
    %c2_21 = arith.constant 2 : index
    %c0_22 = arith.constant 0 : index
    %c0_23 = arith.constant 0 : index
    %17 = vector.load %arg2[%c2_21, %c0_22, %c0_23] : memref<9x128x128xbf16, #tpu.memory_space<vmem>>, vector<1x128x128xbf16>
    %18 = vector.shape_cast %17 : vector<1x128x128xbf16> to vector<128x128xbf16>
    %cst_24 = arith.constant dense<0.000000e+00> : vector<288x128xf32>
    %19 = tpu.matmul %16, %18, %cst_24 {dimension_numbers = #tpu.dot_dimension_numbers<[1], [0], [0], [1], [0, 0, 1, 1], [], []>} : vector<288x128xbf16>, vector<128x128xbf16>, vector<288x128xf32> -> vector<288x128xf32>
    %c0_25 = arith.constant 0 : index
    %c0_26 = arith.constant 0 : index
    %20 = vector.load %arg9[%c0_25, %c0_26] : memref<288x128xf32, #tpu.memory_space<vmem>>, vector<288x128xf32>
    %21 = arith.addf %20, %19 : vector<288x128xf32>
    %c0_27 = arith.constant 0 : index
    %c0_28 = arith.constant 0 : index
    %22 = vector.load %arg9[%c0_27, %c0_28] : memref<288x128xf32, #tpu.memory_space<vmem>>, vector<288x128xf32>
    tpu.vector_store %arg9[%c0_27, %c0_28], %21 {strides = array<i32>} : memref<288x128xf32, #tpu.memory_space<vmem>>, vector<288x128xf32>,
    %c18 = arith.constant 18 : index
    %c0_29 = arith.constant 0 : index
    %23 = vector.load %arg7[%c18, %c0_29] : memref<342x128xbf16, #tpu.memory_space<vmem>>, vector<288x128xbf16>
    %c3 = arith.constant 3 : index
    %c0_30 = arith.constant 0 : index
    %c0_31 = arith.constant 0 : index
    %24 = vector.load %arg2[%c3, %c0_30, %c0_31] : memref<9x128x128xbf16, #tpu.memory_space<vmem>>, vector<1x128x128xbf16>
    %25 = vector.shape_cast %24 : vector<1x128x128xbf16> to vector<128x128xbf16>
    %cst_32 = arith.constant dense<0.000000e+00> : vector<288x128xf32>
    %26 = tpu.matmul %23, %25, %cst_32 {dimension_numbers = #tpu.dot_dimension_numbers<[1], [0], [0], [1], [0, 0, 1, 1], [], []>} : vector<288x128xbf16>, vector<128x128xbf16>, vector<288x128xf32> -> vector<288x128xf32>
    %c0_33 = arith.constant 0 : index
    %c0_34 = arith.constant 0 : index
    %27 = vector.load %arg9[%c0_33, %c0_34] : memref<288x128xf32, #tpu.memory_space<vmem>>, vector<288x128xf32>
    %28 = arith.addf %27, %26 : vector<288x128xf32>
    %c0_35 = arith.constant 0 : index
    %c0_36 = arith.constant 0 : index
    %29 = vector.load %arg9[%c0_35, %c0_36] : memref<288x128xf32, #tpu.memory_space<vmem>>, vector<288x128xf32>
    tpu.vector_store %arg9[%c0_35, %c0_36], %28 {strides = array<i32>} : memref<288x128xf32, #tpu.memory_space<vmem>>, vector<288x128xf32>,
    %c19 = arith.constant 19 : index
    %c0_37 = arith.constant 0 : index
    %30 = vector.load %arg7[%c19, %c0_37] : memref<342x128xbf16, #tpu.memory_space<vmem>>, vector<288x128xbf16>
    %c4 = arith.constant 4 : index
    %c0_38 = arith.constant 0 : index
    %c0_39 = arith.constant 0 : index
    %31 = vector.load %arg2[%c4, %c0_38, %c0_39] : memref<9x128x128xbf16, #tpu.memory_space<vmem>>, vector<1x128x128xbf16>
    %32 = vector.shape_cast %31 : vector<1x128x128xbf16> to vector<128x128xbf16>
    %cst_40 = arith.constant dense<0.000000e+00> : vector<288x128xf32>
    %33 = tpu.matmul %30, %32, %cst_40 {dimension_numbers = #tpu.dot_dimension_numbers<[1], [0], [0], [1], [0, 0, 1, 1], [], []>} : vector<288x128xbf16>, vector<128x128xbf16>, vector<288x128xf32> -> vector<288x128xf32>
    %c0_41 = arith.constant 0 : index
    %c0_42 = arith.constant 0 : index
    %34 = vector.load %arg9[%c0_41, %c0_42] : memref<288x128xf32, #tpu.memory_space<vmem>>, vector<288x128xf32>
    %35 = arith.addf %34, %33 : vector<288x128xf32>
    %c0_43 = arith.constant 0 : index
    %c0_44 = arith.constant 0 : index
    %36 = vector.load %arg9[%c0_43, %c0_44] : memref<288x128xf32, #tpu.memory_space<vmem>>, vector<288x128xf32>
    tpu.vector_store %arg9[%c0_43, %c0_44], %35 {strides = array<i32>} : memref<288x128xf32, #tpu.memory_space<vmem>>, vector<288x128xf32>,
    %c20 = arith.constant 20 : index
    %c0_45 = arith.constant 0 : index
    %37 = vector.load %arg7[%c20, %c0_45] : memref<342x128xbf16, #tpu.memory_space<vmem>>, vector<288x128xbf16>
    %c5 = arith.constant 5 : index
    %c0_46 = arith.constant 0 : index
    %c0_47 = arith.constant 0 : index
    %38 = vector.load %arg2[%c5, %c0_46, %c0_47] : memref<9x128x128xbf16, #tpu.memory_space<vmem>>, vector<1x128x128xbf16>
    %39 = vector.shape_cast %38 : vector<1x128x128xbf16> to vector<128x128xbf16>
    %cst_48 = arith.constant dense<0.000000e+00> : vector<288x128xf32>
    %40 = tpu.matmul %37, %39, %cst_48 {dimension_numbers = #tpu.dot_dimension_numbers<[1], [0], [0], [1], [0, 0, 1, 1], [], []>} : vector<288x128xbf16>, vector<128x128xbf16>, vector<288x128xf32> -> vector<288x128xf32>
    %c0_49 = arith.constant 0 : index
    %c0_50 = arith.constant 0 : index
    %41 = vector.load %arg9[%c0_49, %c0_50] : memref<288x128xf32, #tpu.memory_space<vmem>>, vector<288x128xf32>
    %42 = arith.addf %41, %40 : vector<288x128xf32>
    %c0_51 = arith.constant 0 : index
    %c0_52 = arith.constant 0 : index
    %43 = vector.load %arg9[%c0_51, %c0_52] : memref<288x128xf32, #tpu.memory_space<vmem>>, vector<288x128xf32>
    tpu.vector_store %arg9[%c0_51, %c0_52], %42 {strides = array<i32>} : memref<288x128xf32, #tpu.memory_space<vmem>>, vector<288x128xf32>,
    %c36 = arith.constant 36 : index
    %c0_53 = arith.constant 0 : index
    %44 = vector.load %arg7[%c36, %c0_53] : memref<342x128xbf16, #tpu.memory_space<vmem>>, vector<288x128xbf16>
    %c6 = arith.constant 6 : index
    %c0_54 = arith.constant 0 : index
    %c0_55 = arith.constant 0 : index
    %45 = vector.load %arg2[%c6, %c0_54, %c0_55] : memref<9x128x128xbf16, #tpu.memory_space<vmem>>, vector<1x128x128xbf16>
    %46 = vector.shape_cast %45 : vector<1x128x128xbf16> to vector<128x128xbf16>
    %cst_56 = arith.constant dense<0.000000e+00> : vector<288x128xf32>
    %47 = tpu.matmul %44, %46, %cst_56 {dimension_numbers = #tpu.dot_dimension_numbers<[1], [0], [0], [1], [0, 0, 1, 1], [], []>} : vector<288x128xbf16>, vector<128x128xbf16>, vector<288x128xf32> -> vector<288x128xf32>
    %c0_57 = arith.constant 0 : index
    %c0_58 = arith.constant 0 : index
    %48 = vector.load %arg9[%c0_57, %c0_58] : memref<288x128xf32, #tpu.memory_space<vmem>>, vector<288x128xf32>
    %49 = arith.addf %48, %47 : vector<288x128xf32>
    %c0_59 = arith.constant 0 : index
    %c0_60 = arith.constant 0 : index
    %50 = vector.load %arg9[%c0_59, %c0_60] : memref<288x128xf32, #tpu.memory_space<vmem>>, vector<288x128xf32>
    tpu.vector_store %arg9[%c0_59, %c0_60], %49 {strides = array<i32>} : memref<288x128xf32, #tpu.memory_space<vmem>>, vector<288x128xf32>,
    %c37 = arith.constant 37 : index
    %c0_61 = arith.constant 0 : index
    %51 = vector.load %arg7[%c37, %c0_61] : memref<342x128xbf16, #tpu.memory_space<vmem>>, vector<288x128xbf16>
    %c7 = arith.constant 7 : index
    %c0_62 = arith.constant 0 : index
    %c0_63 = arith.constant 0 : index
    %52 = vector.load %arg2[%c7, %c0_62, %c0_63] : memref<9x128x128xbf16, #tpu.memory_space<vmem>>, vector<1x128x128xbf16>
    %53 = vector.shape_cast %52 : vector<1x128x128xbf16> to vector<128x128xbf16>
    %cst_64 = arith.constant dense<0.000000e+00> : vector<288x128xf32>
    %54 = tpu.matmul %51, %53, %cst_64 {dimension_numbers = #tpu.dot_dimension_numbers<[1], [0], [0], [1], [0, 0, 1, 1], [], []>} : vector<288x128xbf16>, vector<128x128xbf16>, vector<288x128xf32> -> vector<288x128xf32>
    %c0_65 = arith.constant 0 : index
    %c0_66 = arith.constant 0 : index
    %55 = vector.load %arg9[%c0_65, %c0_66] : memref<288x128xf32, #tpu.memory_space<vmem>>, vector<288x128xf32>
    %56 = arith.addf %55, %54 : vector<288x128xf32>
    %c0_67 = arith.constant 0 : index
    %c0_68 = arith.constant 0 : index
    %57 = vector.load %arg9[%c0_67, %c0_68] : memref<288x128xf32, #tpu.memory_space<vmem>>, vector<288x128xf32>
    tpu.vector_store %arg9[%c0_67, %c0_68], %56 {strides = array<i32>} : memref<288x128xf32, #tpu.memory_space<vmem>>, vector<288x128xf32>,
    %c38 = arith.constant 38 : index
    %c0_69 = arith.constant 0 : index
    %58 = vector.load %arg7[%c38, %c0_69] : memref<342x128xbf16, #tpu.memory_space<vmem>>, vector<288x128xbf16>
    %c8 = arith.constant 8 : index
    %c0_70 = arith.constant 0 : index
    %c0_71 = arith.constant 0 : index
    %59 = vector.load %arg2[%c8, %c0_70, %c0_71] : memref<9x128x128xbf16, #tpu.memory_space<vmem>>, vector<1x128x128xbf16>
    %60 = vector.shape_cast %59 : vector<1x128x128xbf16> to vector<128x128xbf16>
    %cst_72 = arith.constant dense<0.000000e+00> : vector<288x128xf32>
    %61 = tpu.matmul %58, %60, %cst_72 {dimension_numbers = #tpu.dot_dimension_numbers<[1], [0], [0], [1], [0, 0, 1, 1], [], []>} : vector<288x128xbf16>, vector<128x128xbf16>, vector<288x128xf32> -> vector<288x128xf32>
    %c0_73 = arith.constant 0 : index
    %c0_74 = arith.constant 0 : index
    %62 = vector.load %arg9[%c0_73, %c0_74] : memref<288x128xf32, #tpu.memory_space<vmem>>, vector<288x128xf32>
    %63 = arith.addf %62, %61 : vector<288x128xf32>
    %c0_75 = arith.constant 0 : index
    %c0_76 = arith.constant 0 : index
    %64 = vector.load %arg9[%c0_75, %c0_76] : memref<288x128xf32, #tpu.memory_space<vmem>>, vector<288x128xf32>
    tpu.vector_store %arg9[%c0_75, %c0_76], %63 {strides = array<i32>} : memref<288x128xf32, #tpu.memory_space<vmem>>, vector<288x128xf32>,
    %c0_77 = arith.constant 0 : index
    %c0_78 = arith.constant 0 : index
    %65 = vector.load %arg9[%c0_77, %c0_78] : memref<288x128xf32, #tpu.memory_space<vmem>>, vector<288x128xf32>
    %c0_79 = arith.constant 0 : index
    %c0_80 = arith.constant 0 : index
    %66 = vector.load %arg3[%c0_79, %c0_80] : memref<1x128xf32, #tpu.memory_space<vmem>>, vector<1x128xf32>
    %67 = vector.broadcast %66 : vector<1x128xf32> to vector<288x128xf32>
    %68 = arith.addf %65, %67 : vector<288x128xf32>
    %cst_81 = arith.constant 0.000000e+00 : f32
    %69 = vector.broadcast %cst_81 : f32 to vector<288x128xf32>
    %70 = arith.maximumf %68, %69 : vector<288x128xf32>
    %71 = tpu.iota {dimensions = array<i32: 0>} : vector<288x1xi32>
    %c18_i32 = arith.constant 18 : i32
    %c0_i32 = arith.constant 0 : i32
    %72 = arith.cmpi eq, %c18_i32, %c0_i32 : i32
    %c1_i32 = arith.constant 1 : i32
    %73 = arith.select %72, %c1_i32, %c18_i32 : i32
    %74 = vector.broadcast %73 : i32 to vector<288x1xi32>
    %75 = arith.remsi %71, %74 : vector<288x1xi32>
    %c0_i32_82 = arith.constant 0 : i32
    %76 = vector.broadcast %c0_i32_82 : i32 to vector<288x1xi32>
    %77 = arith.cmpi ne, %75, %76 : vector<288x1xi32>
    %c0_i32_83 = arith.constant 0 : i32
    %78 = vector.broadcast %c0_i32_83 : i32 to vector<288x1xi32>
    %79 = arith.cmpi slt, %75, %78 : vector<288x1xi32>
    %c0_i32_84 = arith.constant 0 : i32
    %80 = arith.cmpi slt, %73, %c0_i32_84 : i32
    %81 = vector.broadcast %80 : i1 to vector<288x1xi1>
    %82 = vector.broadcast %81 : vector<288x1xi1> to vector<288x1xi1>
    %83 = arith.xori %79, %82 : vector<288x1xi1>
    %84 = arith.andi %83, %77 : vector<288x1xi1>
    %85 = vector.broadcast %73 : i32 to vector<288x1xi32>
    %86 = arith.addi %75, %85 : vector<288x1xi32>
    %87 = arith.select %84, %86, %75 : vector<288x1xi1>, vector<288x1xi32>
    %c16_i32 = arith.constant 16 : i32
    %88 = vector.broadcast %c16_i32 : i32 to vector<288x1xi32>
    %89 = arith.cmpi slt, %87, %88 : vector<288x1xi32>
    %cst_85 = arith.constant 0.000000e+00 : f32
    %90 = vector.shape_cast %89 : vector<288x1xi1> to vector<288x1xi1>
    %91 = vector.broadcast %90 : vector<288x1xi1> to vector<288x128xi1>
    %92 = vector.broadcast %cst_85 : f32 to vector<288x128xf32>
    %93 = arith.select %91, %70, %92 : vector<288x128xi1>, vector<288x128xf32>
    %cst_86 = arith.constant 0.000000e+00 : bf16
    %94 = vector.broadcast %cst_86 : bf16 to vector<19x128xbf16>
    %c0_87 = arith.constant 0 : index
    %c0_88 = arith.constant 0 : index
    %95 = vector.load %arg8[%c0_87, %c0_88] : memref<342x128xbf16, #tpu.memory_space<vmem>>, vector<19x128xbf16>
    tpu.vector_store %arg8[%c0_87, %c0_88], %94 {strides = array<i32>} : memref<342x128xbf16, #tpu.memory_space<vmem>>, vector<19x128xbf16>,
    %cst_89 = arith.constant 0.000000e+00 : bf16
    %96 = vector.broadcast %cst_89 : bf16 to vector<35x128xbf16>
    %c307 = arith.constant 307 : index
    %c0_90 = arith.constant 0 : index
    %97 = vector.load %arg8[%c307, %c0_90] : memref<342x128xbf16, #tpu.memory_space<vmem>>, vector<35x128xbf16>
    tpu.vector_store %arg8[%c307, %c0_90], %96 {strides = array<i32>} : memref<342x128xbf16, #tpu.memory_space<vmem>>, vector<35x128xbf16>,
    %98 = arith.truncf %93 : vector<288x128xf32> to vector<288x128xbf16>
    %c19_91 = arith.constant 19 : index
    %c0_92 = arith.constant 0 : index
    %99 = vector.load %arg8[%c19_91, %c0_92] : memref<342x128xbf16, #tpu.memory_space<vmem>>, vector<288x128xbf16>
    tpu.vector_store %arg8[%c19_91, %c0_92], %98 {strides = array<i32>} : memref<342x128xbf16, #tpu.memory_space<vmem>>, vector<288x128xbf16>,
    %c0_93 = arith.constant 0 : index
    %c0_94 = arith.constant 0 : index
    %100 = vector.load %arg8[%c0_93, %c0_94] : memref<342x128xbf16, #tpu.memory_space<vmem>>, vector<288x128xbf16>
    %c0_95 = arith.constant 0 : index
    %c0_96 = arith.constant 0 : index
    %c0_97 = arith.constant 0 : index
    %101 = vector.load %arg4[%c0_95, %c0_96, %c0_97] : memref<9x128x128xbf16, #tpu.memory_space<vmem>>, vector<1x128x128xbf16>
    %102 = vector.shape_cast %101 : vector<1x128x128xbf16> to vector<128x128xbf16>
    %cst_98 = arith.constant dense<0.000000e+00> : vector<288x128xf32>
    %103 = tpu.matmul %100, %102, %cst_98 {dimension_numbers = #tpu.dot_dimension_numbers<[1], [0], [0], [1], [0, 0, 1, 1], [], []>} : vector<288x128xbf16>, vector<128x128xbf16>, vector<288x128xf32> -> vector<288x128xf32>
    %c0_99 = arith.constant 0 : index
    %c0_100 = arith.constant 0 : index
    %104 = vector.load %arg9[%c0_99, %c0_100] : memref<288x128xf32, #tpu.memory_space<vmem>>, vector<288x128xf32>
    tpu.vector_store %arg9[%c0_99, %c0_100], %103 {strides = array<i32>} : memref<288x128xf32, #tpu.memory_space<vmem>>, vector<288x128xf32>,
    %c1_101 = arith.constant 1 : index
    %c0_102 = arith.constant 0 : index
    %105 = vector.load %arg8[%c1_101, %c0_102] : memref<342x128xbf16, #tpu.memory_space<vmem>>, vector<288x128xbf16>
    %c1_103 = arith.constant 1 : index
    %c0_104 = arith.constant 0 : index
    %c0_105 = arith.constant 0 : index
    %106 = vector.load %arg4[%c1_103, %c0_104, %c0_105] : memref<9x128x128xbf16, #tpu.memory_space<vmem>>, vector<1x128x128xbf16>
    %107 = vector.shape_cast %106 : vector<1x128x128xbf16> to vector<128x128xbf16>
    %cst_106 = arith.constant dense<0.000000e+00> : vector<288x128xf32>
    %108 = tpu.matmul %105, %107, %cst_106 {dimension_numbers = #tpu.dot_dimension_numbers<[1], [0], [0], [1], [0, 0, 1, 1], [], []>} : vector<288x128xbf16>, vector<128x128xbf16>, vector<288x128xf32> -> vector<288x128xf32>
    %c0_107 = arith.constant 0 : index
    %c0_108 = arith.constant 0 : index
    %109 = vector.load %arg9[%c0_107, %c0_108] : memref<288x128xf32, #tpu.memory_space<vmem>>, vector<288x128xf32>
    %110 = arith.addf %109, %108 : vector<288x128xf32>
    %c0_109 = arith.constant 0 : index
    %c0_110 = arith.constant 0 : index
    %111 = vector.load %arg9[%c0_109, %c0_110] : memref<288x128xf32, #tpu.memory_space<vmem>>, vector<288x128xf32>
    tpu.vector_store %arg9[%c0_109, %c0_110], %110 {strides = array<i32>} : memref<288x128xf32, #tpu.memory_space<vmem>>, vector<288x128xf32>,
    %c2_111 = arith.constant 2 : index
    %c0_112 = arith.constant 0 : index
    %112 = vector.load %arg8[%c2_111, %c0_112] : memref<342x128xbf16, #tpu.memory_space<vmem>>, vector<288x128xbf16>
    %c2_113 = arith.constant 2 : index
    %c0_114 = arith.constant 0 : index
    %c0_115 = arith.constant 0 : index
    %113 = vector.load %arg4[%c2_113, %c0_114, %c0_115] : memref<9x128x128xbf16, #tpu.memory_space<vmem>>, vector<1x128x128xbf16>
    %114 = vector.shape_cast %113 : vector<1x128x128xbf16> to vector<128x128xbf16>
    %cst_116 = arith.constant dense<0.000000e+00> : vector<288x128xf32>
    %115 = tpu.matmul %112, %114, %cst_116 {dimension_numbers = #tpu.dot_dimension_numbers<[1], [0], [0], [1], [0, 0, 1, 1], [], []>} : vector<288x128xbf16>, vector<128x128xbf16>, vector<288x128xf32> -> vector<288x128xf32>
    %c0_117 = arith.constant 0 : index
    %c0_118 = arith.constant 0 : index
    %116 = vector.load %arg9[%c0_117, %c0_118] : memref<288x128xf32, #tpu.memory_space<vmem>>, vector<288x128xf32>
    %117 = arith.addf %116, %115 : vector<288x128xf32>
    %c0_119 = arith.constant 0 : index
    %c0_120 = arith.constant 0 : index
    %118 = vector.load %arg9[%c0_119, %c0_120] : memref<288x128xf32, #tpu.memory_space<vmem>>, vector<288x128xf32>
    tpu.vector_store %arg9[%c0_119, %c0_120], %117 {strides = array<i32>} : memref<288x128xf32, #tpu.memory_space<vmem>>, vector<288x128xf32>,
    %c18_121 = arith.constant 18 : index
    %c0_122 = arith.constant 0 : index
    %119 = vector.load %arg8[%c18_121, %c0_122] : memref<342x128xbf16, #tpu.memory_space<vmem>>, vector<288x128xbf16>
    %c3_123 = arith.constant 3 : index
    %c0_124 = arith.constant 0 : index
    %c0_125 = arith.constant 0 : index
    %120 = vector.load %arg4[%c3_123, %c0_124, %c0_125] : memref<9x128x128xbf16, #tpu.memory_space<vmem>>, vector<1x128x128xbf16>
    %121 = vector.shape_cast %120 : vector<1x128x128xbf16> to vector<128x128xbf16>
    %cst_126 = arith.constant dense<0.000000e+00> : vector<288x128xf32>
    %122 = tpu.matmul %119, %121, %cst_126 {dimension_numbers = #tpu.dot_dimension_numbers<[1], [0], [0], [1], [0, 0, 1, 1], [], []>} : vector<288x128xbf16>, vector<128x128xbf16>, vector<288x128xf32> -> vector<288x128xf32>
    %c0_127 = arith.constant 0 : index
    %c0_128 = arith.constant 0 : index
    %123 = vector.load %arg9[%c0_127, %c0_128] : memref<288x128xf32, #tpu.memory_space<vmem>>, vector<288x128xf32>
    %124 = arith.addf %123, %122 : vector<288x128xf32>
    %c0_129 = arith.constant 0 : index
    %c0_130 = arith.constant 0 : index
    %125 = vector.load %arg9[%c0_129, %c0_130] : memref<288x128xf32, #tpu.memory_space<vmem>>, vector<288x128xf32>
    tpu.vector_store %arg9[%c0_129, %c0_130], %124 {strides = array<i32>} : memref<288x128xf32, #tpu.memory_space<vmem>>, vector<288x128xf32>,
    %c19_131 = arith.constant 19 : index
    %c0_132 = arith.constant 0 : index
    %126 = vector.load %arg8[%c19_131, %c0_132] : memref<342x128xbf16, #tpu.memory_space<vmem>>, vector<288x128xbf16>
    %c4_133 = arith.constant 4 : index
    %c0_134 = arith.constant 0 : index
    %c0_135 = arith.constant 0 : index
    %127 = vector.load %arg4[%c4_133, %c0_134, %c0_135] : memref<9x128x128xbf16, #tpu.memory_space<vmem>>, vector<1x128x128xbf16>
    %128 = vector.shape_cast %127 : vector<1x128x128xbf16> to vector<128x128xbf16>
    %cst_136 = arith.constant dense<0.000000e+00> : vector<288x128xf32>
    %129 = tpu.matmul %126, %128, %cst_136 {dimension_numbers = #tpu.dot_dimension_numbers<[1], [0], [0], [1], [0, 0, 1, 1], [], []>} : vector<288x128xbf16>, vector<128x128xbf16>, vector<288x128xf32> -> vector<288x128xf32>
    %c0_137 = arith.constant 0 : index
    %c0_138 = arith.constant 0 : index
    %130 = vector.load %arg9[%c0_137, %c0_138] : memref<288x128xf32, #tpu.memory_space<vmem>>, vector<288x128xf32>
    %131 = arith.addf %130, %129 : vector<288x128xf32>
    %c0_139 = arith.constant 0 : index
    %c0_140 = arith.constant 0 : index
    %132 = vector.load %arg9[%c0_139, %c0_140] : memref<288x128xf32, #tpu.memory_space<vmem>>, vector<288x128xf32>
    tpu.vector_store %arg9[%c0_139, %c0_140], %131 {strides = array<i32>} : memref<288x128xf32, #tpu.memory_space<vmem>>, vector<288x128xf32>,
    %c20_141 = arith.constant 20 : index
    %c0_142 = arith.constant 0 : index
    %133 = vector.load %arg8[%c20_141, %c0_142] : memref<342x128xbf16, #tpu.memory_space<vmem>>, vector<288x128xbf16>
    %c5_143 = arith.constant 5 : index
    %c0_144 = arith.constant 0 : index
    %c0_145 = arith.constant 0 : index
    %134 = vector.load %arg4[%c5_143, %c0_144, %c0_145] : memref<9x128x128xbf16, #tpu.memory_space<vmem>>, vector<1x128x128xbf16>
    %135 = vector.shape_cast %134 : vector<1x128x128xbf16> to vector<128x128xbf16>
    %cst_146 = arith.constant dense<0.000000e+00> : vector<288x128xf32>
    %136 = tpu.matmul %133, %135, %cst_146 {dimension_numbers = #tpu.dot_dimension_numbers<[1], [0], [0], [1], [0, 0, 1, 1], [], []>} : vector<288x128xbf16>, vector<128x128xbf16>, vector<288x128xf32> -> vector<288x128xf32>
    %c0_147 = arith.constant 0 : index
    %c0_148 = arith.constant 0 : index
    %137 = vector.load %arg9[%c0_147, %c0_148] : memref<288x128xf32, #tpu.memory_space<vmem>>, vector<288x128xf32>
    %138 = arith.addf %137, %136 : vector<288x128xf32>
    %c0_149 = arith.constant 0 : index
    %c0_150 = arith.constant 0 : index
    %139 = vector.load %arg9[%c0_149, %c0_150] : memref<288x128xf32, #tpu.memory_space<vmem>>, vector<288x128xf32>
    tpu.vector_store %arg9[%c0_149, %c0_150], %138 {strides = array<i32>} : memref<288x128xf32, #tpu.memory_space<vmem>>, vector<288x128xf32>,
    %c36_151 = arith.constant 36 : index
    %c0_152 = arith.constant 0 : index
    %140 = vector.load %arg8[%c36_151, %c0_152] : memref<342x128xbf16, #tpu.memory_space<vmem>>, vector<288x128xbf16>
    %c6_153 = arith.constant 6 : index
    %c0_154 = arith.constant 0 : index
    %c0_155 = arith.constant 0 : index
    %141 = vector.load %arg4[%c6_153, %c0_154, %c0_155] : memref<9x128x128xbf16, #tpu.memory_space<vmem>>, vector<1x128x128xbf16>
    %142 = vector.shape_cast %141 : vector<1x128x128xbf16> to vector<128x128xbf16>
    %cst_156 = arith.constant dense<0.000000e+00> : vector<288x128xf32>
    %143 = tpu.matmul %140, %142, %cst_156 {dimension_numbers = #tpu.dot_dimension_numbers<[1], [0], [0], [1], [0, 0, 1, 1], [], []>} : vector<288x128xbf16>, vector<128x128xbf16>, vector<288x128xf32> -> vector<288x128xf32>
    %c0_157 = arith.constant 0 : index
    %c0_158 = arith.constant 0 : index
    %144 = vector.load %arg9[%c0_157, %c0_158] : memref<288x128xf32, #tpu.memory_space<vmem>>, vector<288x128xf32>
    %145 = arith.addf %144, %143 : vector<288x128xf32>
    %c0_159 = arith.constant 0 : index
    %c0_160 = arith.constant 0 : index
    %146 = vector.load %arg9[%c0_159, %c0_160] : memref<288x128xf32, #tpu.memory_space<vmem>>, vector<288x128xf32>
    tpu.vector_store %arg9[%c0_159, %c0_160], %145 {strides = array<i32>} : memref<288x128xf32, #tpu.memory_space<vmem>>, vector<288x128xf32>,
    %c37_161 = arith.constant 37 : index
    %c0_162 = arith.constant 0 : index
    %147 = vector.load %arg8[%c37_161, %c0_162] : memref<342x128xbf16, #tpu.memory_space<vmem>>, vector<288x128xbf16>
    %c7_163 = arith.constant 7 : index
    %c0_164 = arith.constant 0 : index
    %c0_165 = arith.constant 0 : index
    %148 = vector.load %arg4[%c7_163, %c0_164, %c0_165] : memref<9x128x128xbf16, #tpu.memory_space<vmem>>, vector<1x128x128xbf16>
    %149 = vector.shape_cast %148 : vector<1x128x128xbf16> to vector<128x128xbf16>
    %cst_166 = arith.constant dense<0.000000e+00> : vector<288x128xf32>
    %150 = tpu.matmul %147, %149, %cst_166 {dimension_numbers = #tpu.dot_dimension_numbers<[1], [0], [0], [1], [0, 0, 1, 1], [], []>} : vector<288x128xbf16>, vector<128x128xbf16>, vector<288x128xf32> -> vector<288x128xf32>
    %c0_167 = arith.constant 0 : index
    %c0_168 = arith.constant 0 : index
    %151 = vector.load %arg9[%c0_167, %c0_168] : memref<288x128xf32, #tpu.memory_space<vmem>>, vector<288x128xf32>
    %152 = arith.addf %151, %150 : vector<288x128xf32>
    %c0_169 = arith.constant 0 : index
    %c0_170 = arith.constant 0 : index
    %153 = vector.load %arg9[%c0_169, %c0_170] : memref<288x128xf32, #tpu.memory_space<vmem>>, vector<288x128xf32>
    tpu.vector_store %arg9[%c0_169, %c0_170], %152 {strides = array<i32>} : memref<288x128xf32, #tpu.memory_space<vmem>>, vector<288x128xf32>,
    %c38_171 = arith.constant 38 : index
    %c0_172 = arith.constant 0 : index
    %154 = vector.load %arg8[%c38_171, %c0_172] : memref<342x128xbf16, #tpu.memory_space<vmem>>, vector<288x128xbf16>
    %c8_173 = arith.constant 8 : index
    %c0_174 = arith.constant 0 : index
    %c0_175 = arith.constant 0 : index
    %155 = vector.load %arg4[%c8_173, %c0_174, %c0_175] : memref<9x128x128xbf16, #tpu.memory_space<vmem>>, vector<1x128x128xbf16>
    %156 = vector.shape_cast %155 : vector<1x128x128xbf16> to vector<128x128xbf16>
    %cst_176 = arith.constant dense<0.000000e+00> : vector<288x128xf32>
    %157 = tpu.matmul %154, %156, %cst_176 {dimension_numbers = #tpu.dot_dimension_numbers<[1], [0], [0], [1], [0, 0, 1, 1], [], []>} : vector<288x128xbf16>, vector<128x128xbf16>, vector<288x128xf32> -> vector<288x128xf32>
    %c0_177 = arith.constant 0 : index
    %c0_178 = arith.constant 0 : index
    %158 = vector.load %arg9[%c0_177, %c0_178] : memref<288x128xf32, #tpu.memory_space<vmem>>, vector<288x128xf32>
    %159 = arith.addf %158, %157 : vector<288x128xf32>
    %c0_179 = arith.constant 0 : index
    %c0_180 = arith.constant 0 : index
    %160 = vector.load %arg9[%c0_179, %c0_180] : memref<288x128xf32, #tpu.memory_space<vmem>>, vector<288x128xf32>
    tpu.vector_store %arg9[%c0_179, %c0_180], %159 {strides = array<i32>} : memref<288x128xf32, #tpu.memory_space<vmem>>, vector<288x128xf32>,
    %c0_181 = arith.constant 0 : index
    %c19_182 = arith.constant 19 : index
    %c0_183 = arith.constant 0 : index
    %161 = vector.load %arg1[%c0_181, %c19_182, %c0_183] : memref<1x342x128xf32, #tpu.memory_space<vmem>>, vector<1x288x128xf32>
    %162 = vector.shape_cast %161 : vector<1x288x128xf32> to vector<288x128xf32>
    %c0_184 = arith.constant 0 : index
    %c0_185 = arith.constant 0 : index
    %163 = vector.load %arg9[%c0_184, %c0_185] : memref<288x128xf32, #tpu.memory_space<vmem>>, vector<288x128xf32>
    %164 = arith.addf %162, %163 : vector<288x128xf32>
    %c0_186 = arith.constant 0 : index
    %c0_187 = arith.constant 0 : index
    %165 = vector.load %arg5[%c0_186, %c0_187] : memref<1x128xf32, #tpu.memory_space<vmem>>, vector<1x128xf32>
    %166 = vector.broadcast %165 : vector<1x128xf32> to vector<288x128xf32>
    %167 = arith.addf %164, %166 : vector<288x128xf32>
    %c0_188 = arith.constant 0 : index
    %c0_189 = arith.constant 0 : index
    %c0_190 = arith.constant 0 : index
    %168 = vector.load %arg6[%c0_188, %c0_189, %c0_190] : memref<1x288x128xf32, #tpu.memory_space<vmem>>, vector<1x288x128xf32>
    %169 = vector.shape_cast %168 : vector<1x288x128xf32> to vector<288x128xf32>
    %170 = vector.shape_cast %167 : vector<288x128xf32> to vector<1x288x128xf32>
    tpu.vector_store %arg6[%c0_188, %c0_189, %c0_190], %170 {strides = array<i32>} : memref<1x288x128xf32, #tpu.memory_space<vmem>>, vector<1x288x128xf32>,
    return
  }
  func.func @transform_0(%arg0: i32) -> (i32, i32, i32) {
    %c0_i32 = arith.constant 0 : i32
    %c0_i32_0 = arith.constant 0 : i32
    %c0_i32_1 = arith.constant 0 : i32
    return %arg0, %c0_i32, %c0_i32_0 : i32, i32, i32
  }
  func.func @transform_1(%arg0: i32) -> (i32, i32, i32) {
    %c0_i32 = arith.constant 0 : i32
    %c0_i32_0 = arith.constant 0 : i32
    %c0_i32_1 = arith.constant 0 : i32
    %c0_i32_2 = arith.constant 0 : i32
    return %c0_i32, %c0_i32_0, %c0_i32_1 : i32, i32, i32
  }
  func.func @transform_2(%arg0: i32) -> (i32, i32) {
    %c0_i32 = arith.constant 0 : i32
    %c0_i32_0 = arith.constant 0 : i32
    %c0_i32_1 = arith.constant 0 : i32
    return %c0_i32, %c0_i32_0 : i32, i32
  }
  func.func @transform_3(%arg0: i32) -> (i32, i32, i32) {
    %c0_i32 = arith.constant 0 : i32
    %c0_i32_0 = arith.constant 0 : i32
    %c0_i32_1 = arith.constant 0 : i32
    %c0_i32_2 = arith.constant 0 : i32
    return %c0_i32, %c0_i32_0, %c0_i32_1 : i32, i32, i32
  }
  func.func @transform_4(%arg0: i32) -> (i32, i32) {
    %c0_i32 = arith.constant 0 : i32
    %c0_i32_0 = arith.constant 0 : i32
    %c0_i32_1 = arith.constant 0 : i32
    return %c0_i32, %c0_i32_0 : i32, i32
  }
  func.func @transform_5(%arg0: i32) -> (i32, i32, i32) {
    %c0_i32 = arith.constant 0 : i32
    %c0_i32_0 = arith.constant 0 : i32
    %c0_i32_1 = arith.constant 0 : i32
    return %arg0, %c0_i32, %c0_i32_0 : i32, i32, i32
  }
}

</mosaic_0001>

<bundles_post_ra>
// kernel: tpu_custom_call.1
= control target key start
LH: loop header
LB: loop body
LE: loop exit
PB: predicated region body
PF: predicated region fallthrough
CT: control target
= control target key end

     0   :  { %10 = vsyncpa [#allocation6], 0  ;;  %s18686_s0 = inlined_call_operand.vmem [shape: f32[2,342,128], index: 0, kind: input, shape index: {}]   ;;  %s18687_s1 = inlined_call_operand.vmem [shape: bf16[9,128,128], index: 1, kind: input, shape index: {}]   ;;  %s18688_s2 = inlined_call_operand.vmem [shape: f32[1,128], index: 2, kind: input, shape index: {}]   ;;  %s18689_s3 = inlined_call_operand.vmem [shape: bf16[9,128,128], index: 3, kind: input, shape index: {}]   ;;  %s18690_s4 = inlined_call_operand.vmem [shape: f32[1,128], index: 4, kind: input, shape index: {}]   ;;  %s18691_s5 = inlined_call_operand.hbm [shape: f32[2,288,128], index: 5, kind: output, shape index: {}]  }
   0x1   :  { %12 = vsyncpa [#allocation6 + $0x1], 0  ;;  %s16058_s18 = smov 0   ;;  %s16060_s19 = smov 0  }
   0x2   :  { %s16062_s20 = smov 0   ;;  %s16064_s21 = smov 0  }
   0x3 LB: > { %s16079_s22 = sadd.s32 4294967295, %s16022_s21   ;;  %s12345_s23 = sadd.s32 4294967294, %s16022_s21   ;;  %s16022_s21 = sphi %s16064_s21, %s19332_s21   ;;  %s16018_s20 = sphi %s16062_s20, %s19331_s20   ;;  %s16014_s19 = sphi %s16060_s19, %s19330_s19   ;;  %s16010_s18 = sphi %s16058_s18, %s19329_s18  }
   0x4   : > { %s16083_s24 = sadd.s32 1, %s16022_s21   ;;  %s135_s25 = sadd.s32 1, %s16018_s20 }
   0x5   : > { %s132_s26 = ssub.s32 %s16022_s21, %s16083_s24  ;;  %p145_p0 = scmp.ne.s32.totalorder %s16018_s20, %s16014_s19 }
   0x6   : > { %p133_p1 = scmp.eq.s32.totalorder %s132_s26, 0  ;;  %p146_p2 = scmp.eq.s32.totalorder %s16079_s22, 1 }
   0x7   : > { %p151_p3 = scmp.ne.s32.totalorder %s16014_s19, %s16010_s18  ;;  %p152_p4 = scmp.eq.s32.totalorder %s12345_s23, 1 }
   0x8   : > { %s16094_s27 = scalar_select %p133_p1, %s16018_s20, %s135_s25  }
   0x9   : > { %p16096_p5 = por %p146_p2, %p145_p0  ;;  %p16100_p6 = por %p152_p4, %p151_p3 }
   0xa   : > { %p12348_p7 = scmp.ge.s32.totalorder %s16022_s21, 1  ;;  %p190_p8 = scmp.lt.s32.totalorder %s16022_s21, 3 }
   0xc   : > { %p191_p9 = pnand %p12348_p7, %p190_p8 }
   0xe   : > { %194 = sbr.rel (%p191_p9) target bundleno = 1787 (0x6fb), region = 40 }
  0x15   : > { %v15475_v0 = vld [vmem:[%s18687_s1] sm:$0xff]   ;;  %p218_p10 = scmp.lt.s32.totalorder %s16079_s22, 1  ;;  %v15476_v1 = vld [vmem:[%s18687_s1 + $0x8] sm:$0xff]   ;;  %v15477_v2 = vld [vmem:[%s18687_s1 + $0x10] sm:$0xff]   ;;  %vm18697_vm0 = vsmask.f32 7424 }
  0x16   : > { %13846 = vmatprep.subr.bf16.mxu0 %v15475_v0  ;;  %v15478_v3 = vld [vmem:[%s18687_s1 + $0x18] sm:$0xff]   ;;  %v15479_v14 = vld [vmem:[%s18687_s1 + $0x20] sm:$0xff]   ;;  %v15480_v22 = vld [vmem:[%s18687_s1 + $0x28] sm:$0xff]   ;;  %vm18696_vm1 = vcmask 1046528   ;;  %vm18695_vm2 = vsmask.f32 6400 }
  0x17   : > { %s219_s9 = scalar_select %p218_p10, %s16079_s22, 1  ;;  %13847 = vmatpush3.bf16.msra.mxu0 %v15475_v0  ;;  %v15481_v32 = vld [vmem:[%s18687_s1 + $0x30] sm:$0xff]   ;;  %v15482_v38 = vld [vmem:[%s18687_s1 + $0x38] sm:$0xff]   ;;  %v15485_v39 = vld [vmem:[%s18687_s1 + $0x40] sm:$0xff]   ;;  %vm18694_vm3 = vcmask 1045504   ;;  %vm18692_vm5 = vcmask 1044480  }
  0x18   : > { %13848 = vmatprep.subr.bf16.mxu0 %v15476_v1  ;;  %v15488_v48 = vld [vmem:[%s18687_s1 + $0x48] sm:$0xff]   ;;  %v15491_v54 = vld [vmem:[%s18687_s1 + $0x50] sm:$0xff]   ;;  %vm18693_vm4 = vsmask.f32 5376  ;;  %vm6441_vm6 = vcmask 1041408   ;;  %vm6447_vm9 = vcmask 1043457  }
  0x19   : > { %s15359_s12 = smul.u32 344, %s219_s9  ;;  %vm18698_vm7 = vsmask.f32 1280  ;;  %vm6448_vm10 = vsmask.f32 7942  ;;  %s215_s17 = sand.u32 1, %s16014_s19  }
  0x1a   : > { %vm16541_vm8 = vmand %vm6441_vm6, %vm18698_vm7  ;;  %s15358_s23 = smul.u32 288, %s215_s17  ;;  %s18645_s9 = scalar_lea.sflag [#allocation6], %s215_s17 }
  0x1b   : > { %s16120_s15 = scalar_lea.vmem %s18686_s0, %s15359_s12  ;;  %13849 = vmatpush3.bf16.msra.mxu0 %v15476_v1  ;;  %vm16550_vm11 = vmand %vm6447_vm9, %vm6448_vm10  ;;  %s15432_s6 = smul.u32 4608, %s16079_s22 }
  0x1c   : > { %13850 = vmatprep.subr.bf16.mxu0 %v15477_v2  ;;  %v224_v4 = vld [vmem:[%s16120_s15] sm:$0xff]  ;;  %v225_v5 = vld [vmem:[%s16120_s15 + $0x8] sm:$0xff]  ;;  %v226_v7 = vld [vmem:[%s16120_s15 + $0x10] sm:$0xff]  ;;  %s18530_s30 = scalar_lea.vmem [#allocation5], %s15358_s23  ;;  %s16025_s11 = smov [#allocation5]  }
  0x1d   : > { %v13256_v6 = vpack.c.bf16 %v225_v5, %v224_v4  ;;  %v227_v8 = vld [vmem:[%s16120_s15 + $0x18] sm:$0xff]  ;;  %v228_v10 = vld [vmem:[%s16120_s15 + $0x20] sm:$0xff]  ;;  %v229_v11 = vld [vmem:[%s16120_s15 + $0x28] sm:$0xff]  ;;  %s12283_s7 = sshll.u32 %s18530_s30, 4  ;;  %s18635_s22 = scalar_lea.hbm %s18691_s5, %s15432_s6  ;;  %s18639_s7 = int_to_ptr.vmem [resolvable:$true] %s12283_s7 }
  0x1e   : > { %v13261_v9 = vpack.c.bf16 %v227_v8, %v226_v7  ;;  %v230_v12 = vld [vmem:[%s16120_s15 + $0x30] sm:$0xff]  ;;  %v231_v13 = vld [vmem:[%s16120_s15 + $0x38] sm:$0xff]  ;;  %v13266_v15 = vpack.c.bf16 %v229_v11, %v228_v10  ;;  %v232_v17 = vld [vmem:[%s16120_s15 + $0x40] sm:$0xff]  ;;  %s15960_s10 = scalar_lea.vmem %s18639_s7, 4608  ;;  %s15964_s12 = sshll.u32 %s16025_s11, 4  ;;  %s15965_s12 = int_to_ptr.vmem [resolvable:$false] %s15964_s12 }
  0x1f   : > { %13851 = vmatpush3.bf16.msra.mxu0 %v15477_v2  ;;  %13257 = vst [vmem:[#allocation2] sm:$0xff] %v13256_v6   ;;  %v13271_v16 = vpack.c.bf16 %v231_v13, %v230_v12  ;;  %v233_v18 = vld [vmem:[%s16120_s15 + $0x48] sm:$0xff]  ;;  %v234_v19 = vld [vmem:[%s16120_s15 + $0x50] sm:$0xff]  ;;  %v235_v21 = vld [vmem:[%s16120_s15 + $0x58] sm:$0xff]  ;;  %p15961_p11 = scmp.ne.s32.totalorder %s18639_s7, %s15960_s10  ;;  %s15966_s13 = scalar_lea.vmem %s15965_s12, 9216 }
  0x20   : > { %13852 = vmatprep.subr.bf16.mxu0 %v15478_v3  ;;  %13358 = vst [vmem:[#allocation2 + $0x8] sm:$0xff] %v13261_v9   ;;  %13359 = vst [vmem:[#allocation2 + $0x10] sm:$0xff] %v13266_v15   ;;  %v13276_v20 = vpack.c.bf16 %v233_v18, %v232_v17  ;;  %v13281_v23 = vpack.c.bf16 %v235_v21, %v234_v19  ;;  %v236_v24 = vld [vmem:[%s16120_s15 + $0x60] sm:$0xff]  ;;  %v237_v25 = vld [vmem:[%s16120_s15 + $0x68] sm:$0xff]  ;;  %p15967_p0 = scmp.lt.s32.totalorder %s18639_s7, %s15965_s12  ;;  %p15968_p1 = scmp.lt.s32.totalorder %s15966_s13, %s15960_s10 }
  0x21   : > { %13360 = vst [vmem:[#allocation2 + $0x18] sm:$0xff] %v13271_v16   ;;  %v13286_v26 = vpack.c.bf16 %v237_v25, %v236_v24  ;;  %v238_v27 = vld [vmem:[%s16120_s15 + $0x70] sm:$0xff]  ;;  %v239_v28 = vld [vmem:[%s16120_s15 + $0x78] sm:$0xff]  ;;  %v240_v30 = vld [vmem:[%s16120_s15 + $0x80] sm:$0xff]  ;;  %p15962_p12 = pnand %p15961_p11, %p16096_p5 }
  0x22   : > { %13361 = vst [vmem:[#allocation2 + $0x20] sm:$0xff] %v13276_v20   ;;  %13362 = vst [vmem:[#allocation2 + $0x28] sm:$0xff] %v13281_v23   ;;  %v13291_v29 = vpack.c.bf16 %v239_v28, %v238_v27  ;;  %v241_v33 = vld [vmem:[%s16120_s15 + $0x88] sm:$0xff]  ;;  %v242_v34 = vld [vmem:[%s16120_s15 + $0x90] sm:$0xff]  ;;  %p15969_p2 = por %p15968_p1, %p15967_p0 }
  0x23   : > { %13853 = vmatpush3.bf16.msra.mxu0 %v15478_v3  ;;  %13363 = vst [vmem:[#allocation2 + $0x30] sm:$0xff] %v13286_v26   ;;  %v243_v35 = vld [vmem:[%s16120_s15 + $0x98] sm:$0xff]  ;;  %v13296_v36 = vpack.c.bf16 %v241_v33, %v240_v30  ;;  %v244_v40 = vld [vmem:[%s16120_s15 + $0xa0] sm:$0xff]  ;;  %v245_v41 = vld [vmem:[%s16120_s15 + $0xa8] sm:$0xff]  ;;  %p15963_p13 = pneg %p15962_p12 }
  0x24   : > { %13854 = vmatprep.subr.bf16.mxu0 %v15479_v14  ;;  %13364 = vst [vmem:[#allocation2 + $0x38] sm:$0xff] %v13291_v29   ;;  %v13301_v37 = vpack.c.bf16 %v243_v35, %v242_v34  ;;  %v246_v42 = vld [vmem:[%s16120_s15 + $0xb0] sm:$0xff]  ;;  %v13306_v43 = vpack.c.bf16 %v245_v41, %v244_v40  ;;  %v247_v44 = vld [vmem:[%s16120_s15 + $0xb8] sm:$0xff]  ;;  %v248_v49 = vld [vmem:[%s16120_s15 + $0xc0] sm:$0xff] }
  0x25   : > { %13365 = vst [vmem:[#allocation2 + $0x40] sm:$0xff] %v13296_v36   ;;  %v13311_v46 = vpack.c.bf16 %v247_v44, %v246_v42  ;;  %v249_v50 = vld [vmem:[%s16120_s15 + $0xc8] sm:$0xff]  ;;  %v250_v52 = vld [vmem:[%s16120_s15 + $0xd0] sm:$0xff]  ;;  %v251_v53 = vld [vmem:[%s16120_s15 + $0xd8] sm:$0xff]  ;;  %p15970_p3 = pnand %p15969_p2, %p15963_p13 }
  0x26   : > { %v15483_v31 = vld [vmem:[#allocation2] sm:$0xff]   ;;  %13366 = vst [vmem:[#allocation2 + $0x48] sm:$0xff] %v13301_v37   ;;  %13367 = vst [vmem:[#allocation2 + $0x50] sm:$0xff] %v13306_v43   ;;  %v13316_v51 = vpack.c.bf16 %v249_v50, %v248_v49  ;;  %v13321_v55 = vpack.c.bf16 %v251_v53, %v250_v52  ;;  %v253_v57 = vld [vmem:[%s16120_s15 + $0xe8] sm:$0xff] }
  0x27   : > { %13855 = vmatpush3.bf16.msra.mxu0 %v15479_v14  ;;  %13862 = vmatprep.mubr.bf16.mxu0 %v15483_v31  ;;  %v15484_v45 = vld [vmem:[#allocation2 + $0x8] sm:$0xff]   ;;  %v15486_v47 = vld [vmem:[#allocation2 + $0x10] sm:$0xff]   ;;  %13368 = vst [vmem:[#allocation2 + $0x58] sm:$0xff] %v13311_v46   ;;  %v252_v56 = vld [vmem:[%s16120_s15 + $0xe0] sm:$0xff] }
  0x28   : > { %13856 = vmatprep.subr.bf16.mxu0 %v15480_v22  ;;  %13369 = vst [vmem:[#allocation2 + $0x60] sm:$0xff] %v13316_v51   ;;  %v254_v58 = vld [vmem:[%s16120_s15 + $0xf0] sm:$0xff]  ;;  %v255_v59 = vld [vmem:[%s16120_s15 + $0xf8] sm:$0xff]  ;;  %13370 = vst [vmem:[#allocation2 + $0x68] sm:$0xff] %v13321_v55   ;;  %v13326_v60 = vpack.c.bf16 %v253_v57, %v252_v56 }
  0x29   : > { %v13331_v61 = vpack.c.bf16 %v255_v59, %v254_v58  ;;  %v256_v62 = vld [vmem:[%s16120_s15 + $0x100] sm:$0xff]  ;;  %v257_v63 = vld [vmem:[%s16120_s15 + $0x108] sm:$0xff]  ;;  %v15487_v0 = vld [vmem:[#allocation2 + $0x18] sm:$0xff]  }
  0x2a   : > { %v13336_v1 = vpack.c.bf16 %v257_v63, %v256_v62  ;;  %v15494_v2 = vld [vmem:[%s18687_s1 + $0x58] sm:$0xff]   ;;  %13371 = vst [vmem:[#allocation2 + $0x70] sm:$0xff] %v13326_v60   ;;  %v258_v3 = vld [vmem:[%s16120_s15 + $0x110] sm:$0xff]  ;;  %v15489_v4 = vld [vmem:[#allocation2 + $0x20] sm:$0xff]  }
  0x2b   : > { %13857 = vmatpush3.bf16.msra.mxu0 %v15480_v22  ;;  %13372 = vst [vmem:[#allocation2 + $0x78] sm:$0xff] %v13331_v61   ;;  %v259_v5 = vld [vmem:[%s16120_s15 + $0x118] sm:$0xff]  ;;  %v15497_v7 = vld [vmem:[%s18687_s1 + $0x60] sm:$0xff]   ;;  %v15490_v8 = vld [vmem:[#allocation2 + $0x28] sm:$0xff]  }
  0x2c   : > { %13858 = vmatprep.subr.bf16.mxu0 %v15481_v32  ;;  %13373 = vst [vmem:[#allocation2 + $0x80] sm:$0xff] %v13336_v1   ;;  %v13341_v6 = vpack.c.bf16 %v259_v5, %v258_v3  ;;  %v15492_v9 = vld [vmem:[#allocation2 + $0x30] sm:$0xff]   ;;  %v15500_v10 = vld [vmem:[%s18687_s1 + $0x68] sm:$0xff]   ;;  %v15493_v12 = vld [vmem:[#allocation2 + $0x38] sm:$0xff]  }
  0x2d   : > { %v15503_v11 = vld [vmem:[%s18687_s1 + $0x70] sm:$0xff]   ;;  %v15495_v13 = vld [vmem:[#allocation2 + $0x40] sm:$0xff]   ;;  %v15507_v14 = vld [vmem:[%s18687_s1 + $0x78] sm:$0xff]  }
  0x2e   : > { %13374 = vst [vmem:[#allocation2 + $0x88] sm:$0xff] %v13341_v6   ;;  %v15512_v15 = vld [vmem:[%s18687_s1 + $0x80] sm:$0xff]   ;;  %v15496_v16 = vld [vmem:[#allocation2 + $0x48] sm:$0xff]   ;;  %v15498_v17 = vld [vmem:[#allocation2 + $0x50] sm:$0xff]  }
  0x2f   : > { %13859 = vmatpush3.bf16.msra.mxu0 %v15481_v32  ;;  %v15499_v18 = vld [vmem:[#allocation2 + $0x58] sm:$0xff]   ;;  %v15501_v19 = vld [vmem:[#allocation2 + $0x60] sm:$0xff]   ;;  %v261_v21 = vld [vmem:[%s16120_s15 + $0x128] sm:$0xff] }
  0x30   : > { %13860 = vmatprep.subr.bf16.mxu0 %v15482_v38  ;;  %v260_v20 = vld [vmem:[%s16120_s15 + $0x120] sm:$0xff]  ;;  %v15502_v23 = vld [vmem:[#allocation2 + $0x68] sm:$0xff]   ;;  %v15511_v33 = vld [vmem:[#allocation2 + $0x10] sm:$0xff]  }
  0x31   : > { %v13346_v22 = vpack.c.bf16 %v261_v21, %v260_v20  ;;  %v15504_v24 = vld [vmem:[#allocation2 + $0x70] sm:$0xff]   ;;  %v15509_v25 = vld [vmem:[#allocation2] sm:$0xff]   ;;  %v15510_v26 = vld [vmem:[#allocation2 + $0x8] sm:$0xff]   ;;  %v1072_v41 = vshrl.u32 %v15511_v33, 16 }
  0x32   : > { %v1055_v27 = vshll.u32 %v15509_v25, 16  ;;  %v15505_v28 = vld [vmem:[#allocation2 + $0x78] sm:$0xff]   ;;  %v1053_v30 = vshrl.u32 %v15509_v25, 16  ;;  %v1060_v32 = vshll.u32 %v15510_v26, 16  ;;  %v15514_v43 = vld [vmem:[#allocation2 + $0x20] sm:$0xff]   ;;  %v15516_v46 = vld [vmem:[#allocation2 + $0x28] sm:$0xff]  }
  0x33   : > { %13861 = vmatpush3.bf16.msra.mxu0 %v15482_v38  ;;  %13375 = vst [vmem:[#allocation2 + $0x90] sm:$0xff] %v13346_v22   ;;  %v15506_v29 = vld [vmem:[#allocation2 + $0x80] sm:$0xff]   ;;  %v15513_v36 = vld [vmem:[#allocation2 + $0x18] sm:$0xff]   ;;  %v1068_v38 = vshll.u32 %v15511_v33, 16  ;;  %v1084_v50 = vshll.u32 %v15514_v43, 16  ;;  %v15515_v51 = vld [vmem:[%s18687_s1 + $0x88] sm:$0xff]  }
  0x34   : > { %13898 = vmatprep.subr.bf16.mxu0 %v15485_v39  ;;  %v1057_v31 = vrot.slane %v1055_v27, 1  ;;  %v1062_v35 = vrot.slane %v1060_v32, 1  ;;  %v1076_v42 = vshll.u32 %v15513_v36, 16  ;;  %v1080_v49 = vshrl.u32 %v15513_v36, 16  ;;  %v15517_v53 = vld [vmem:[#allocation2 + $0x30] sm:$0xff]   ;;  %v15519_v56 = vld [vmem:[#allocation2 + $0x38] sm:$0xff]  }
  0x35   : > { %v15508_v37 = vld [vmem:[#allocation2 + $0x88] sm:$0xff]   ;;  %v1070_v44 = vrot.slane %v1068_v38, 1  ;;  %v1088_v52 = vshrl.u32 %v15514_v43, 16  ;;  %v1092_v55 = vshll.u32 %v15516_v46, 16  ;;  %v1086_v58 = vrot.slane %v1084_v50, 1  ;;  %v15518_v62 = vld [vmem:[%s18687_s1 + $0x90] sm:$0xff]  }
  0x36   : > { %13863 = vmatmul.mubr.bf16.vlgmr.msra.gmra.mrb[0].mxu0 %v15484_v45  ;;  %v1058_v34 = vor.u32 %v1057_v31, %v1053_v30  ;;  %v1096_v61 = vshrl.u32 %v15516_v46, 16  ;;  %v1104_v1 = vshrl.u32 %v15517_v53, 16  ;;  %v15520_v3 = vld [vmem:[#allocation2 + $0x40] sm:$0xff]   ;;  %v15522_v6 = vld [vmem:[#allocation2 + $0x48] sm:$0xff]   ;;  %v15525_v20 = vld [vmem:[#allocation2 + $0x58] sm:$0xff]  }
  0x37   : > { %13899 = vmatpush3.bf16.msra.mxu0 %v15485_v39  ;;  %13866 = vmatprep.mubr.bf16.mxu0 %v15486_v47  ;;  %v1064_v39 = vshrl.u32 %v15510_v26, 16  ;;  %v1074_v47 = vor.u32 %v1072_v41, %v1070_v44  ;;  %v1094_v60 = vrot.slane %v1092_v55, 1  ;;  %v1090_v63 = vor.u32 %v1088_v52, %v1086_v58  ;;  %v15526_v31 = vld [vmem:[#allocation2 + $0x60] sm:$0xff]   ;;  %v15534_v32 = vld [vmem:[%s18687_s1 + $0xb8] sm:$0xff]  }
  0x38   : > { %13900 = vmatprep.subr.bf16.mxu0 %v15488_v48  ;;  %v1063_v40 = vsel %vm18697_vm0, %v1058_v34, %v1062_v35  ;;  %v1140_v30 = vshll.u32 %v15525_v20, 16  ;;  %v15528_v34 = vld [vmem:[#allocation2 + $0x68] sm:$0xff]   ;;  %v1144_v38 = vshrl.u32 %v15525_v20, 16  ;;  %v1152_v43 = vshrl.u32 %v15526_v31, 16 }
  0x39   : > { %v1066_v45 = vor.u32 %v1064_v39, %v1062_v35  ;;  %v1148_v39 = vshll.u32 %v15526_v31, 16  ;;  %v15541_v31 = vld [vmem:[#allocation2 + $0x20] sm:$0xff]  }
  0x3a   : > { %v1142_v41 = vrot.slane %v1140_v30, 1 }
  0x3b   : > { %13901 = vmatpush3.bf16.msra.mxu0 %v15488_v48  ;;  %v1078_v48 = vrot.slane %v1076_v42, 1  ;;  %v16235_v42 = vld [vmem:[%s18687_s1 + $0xc0] sm:$0xff]  }
  0x3c   : > { %13902 = vmatprep.subr.bf16.mxu0 %v15491_v54  ;;  %v1146_v50 = vor.u32 %v1144_v38, %v1142_v41  ;;  %v15545_v38 = vld [vmem:[%s18687_s1 + $0xd0] sm:$0xff]  }
  0x3d   : > { %v1079_v57 = vsel %vm18697_vm0, %v1074_v47, %v1078_v48  ;;  %v1082_v59 = vor.u32 %v1080_v49, %v1078_v48  ;;  %v15531_v47 = vld [vmem:[#allocation2 + $0x78] sm:$0xff]   ;;  %v1150_v49 = vrot.slane %v1148_v39, 1 }
  0x3e   : > { %13867 = vmatmul.mubr.bf16.gmra.mrb[4].mxu0 %v15487_v0  ;;  %v1100_v0 = vshll.u32 %v15517_v53, 16 }
  0x3f   : > { %13870 = vmatprep.mubr.bf16.mxu0 %v15489_v4  ;;  %13903 = vmatpush3.bf16.msra.mxu0 %v15491_v54  ;;  %v1071_v54 = vsel %vm18697_vm0, %v1066_v45, %v1070_v44  ;;  %v15521_v4 = vld [vmem:[%s18687_s1 + $0x98] sm:$0xff]   ;;  %v1087_v5 = vsel %vm18697_vm0, %v1082_v59, %v1086_v58  ;;  %v1156_v44 = vshll.u32 %v15528_v34, 16  ;;  %v15529_v45 = vld [vmem:[#allocation2 + $0x70] sm:$0xff]   ;;  %v1154_v52 = vor.u32 %v1152_v43, %v1150_v49  ;;  %v15533_v59 = vld [vmem:[#allocation2 + $0x88] sm:$0xff]  }
  0x40   : > { %13904 = vmatprep.subr.bf16.mxu0 %v15494_v2  ;;  %v1168_v55 = vshrl.u32 %v15529_v45, 16  ;;  %v1151_v58 = vsel %vm18697_vm0, %v1146_v50, %v1150_v49  ;;  %v15546_v43 = vld [vmem:[#allocation2 + $0x38] sm:$0xff]  }
  0x41   : > { %v1158_v53 = vrot.slane %v1156_v44, 1 }
  0x43   : > { %13905 = vmatpush3.bf16.msra.mxu0 %v15494_v2  ;;  %v1108_v2 = vshll.u32 %v15519_v56, 16 }
  0x44   : > { %13906 = vmatprep.subr.bf16.mxu0 %v15497_v7 }
  0x46   : > { %13871 = vmatmul.mubr.bf16.gmra.mrb[8].mxu0 %v15490_v8  ;;  %v1102_v8 = vrot.slane %v1100_v0, 1 }
  0x47   : > { %13874 = vmatprep.mubr.bf16.mxu0 %v15492_v9  ;;  %13907 = vmatpush3.bf16.msra.mxu0 %v15497_v7  ;;  %v1095_v7 = vsel %vm18697_vm0, %v1090_v63, %v1094_v60  ;;  %v1112_v9 = vshrl.u32 %v15519_v56, 16  ;;  %v1172_v56 = vshll.u32 %v15531_v47, 16  ;;  %v1176_v63 = vshrl.u32 %v15531_v47, 16  ;;  %v15547_v47 = vld [vmem:[#allocation2 + $0x40] sm:$0xff]  }
  0x48   : > { %13908 = vmatprep.subr.bf16.mxu0 %v15500_v10 }
  0x4b   : > { %13909 = vmatpush3.bf16.msra.mxu0 %v15500_v10  ;;  %v1098_v10 = vor.u32 %v1096_v61, %v1094_v60  ;;  %v1159_v60 = vsel %vm18697_vm0, %v1154_v52, %v1158_v53  ;;  %v1714_v52 = vrot.slane %v15547_v47, 1  ;;  %v15574_v47 = vld [vmem:[#allocation2 + $0x48] sm:$0xff]  }
  0x4c   : > { %13910 = vmatprep.subr.bf16.mxu0 %v15503_v11 }
  0x4e   : > { %13875 = vmatmul.mubr.bf16.gmra.mrb[12].mxu0 %v15493_v12  ;;  %v1120_v12 = vshrl.u32 %v15520_v3, 16 }
  0x4f   : > { %13878 = vmatprep.mubr.bf16.mxu0 %v15495_v13  ;;  %13911 = vmatpush3.bf16.msra.mxu0 %v15503_v11  ;;  %v1116_v11 = vshll.u32 %v15520_v3, 16  ;;  %v1106_v13 = vor.u32 %v1104_v1, %v1102_v8  ;;  %v1174_v1 = vrot.slane %v1172_v56, 1  ;;  %v15552_v56 = vld [vmem:[#allocation2 + $0x58] sm:$0xff]  }
  0x50   : > { %13912 = vmatprep.subr.bf16.mxu0 %v15507_v14 }
  0x51   : > { %v1118_v22 = vrot.slane %v1116_v11, 1 }
  0x53   : > { %13913 = vmatpush3.bf16.msra.mxu0 %v15507_v14  ;;  %v1110_v14 = vrot.slane %v1108_v2, 1 }
  0x54   : > { %13950 = vmatprep.subr.bf16.mxu0 %v15512_v15 }
  0x55   : > { %v1111_v21 = vsel %vm18697_vm0, %v1106_v13, %v1110_v14 }
  0x56   : > { %13879 = vmatmul.mubr.bf16.gmra.mrb[16].mxu0 %v15496_v16  ;;  %v1124_v16 = vshll.u32 %v15522_v6, 16 }
  0x57   : > { %13882 = vmatprep.mubr.bf16.mxu0 %v15498_v17  ;;  %v15523_v17 = vld [vmem:[#allocation2 + $0x50] sm:$0xff]  }
  0x58   : > { %v1126_v25 = vrot.slane %v1124_v16, 1  ;;  %v1132_v26 = vshll.u32 %v15523_v17, 16  ;;  %v1136_v27 = vshrl.u32 %v15523_v17, 16 }
  0x5a   : > { %v1134_v36 = vrot.slane %v1132_v26, 1 }
  0x5e   : > { %13883 = vmatmul.mubr.bf16.gmra.mrb[20].mxu0 %v15499_v18  ;;  %v15527_v18 = vld [vmem:[%s18687_s1 + $0xa8] sm:$0xff]  }
  0x5f   : > { %13886 = vmatprep.mubr.bf16.mxu0 %v15501_v19  ;;  %v1103_v19 = vsel %vm18697_vm0, %v1098_v10, %v1102_v8 }
  0x66   : > { %13887 = vmatmul.mubr.bf16.gmra.mrb[24].mxu0 %v15502_v23  ;;  %v1128_v23 = vshrl.u32 %v15522_v6, 16  ;;  %v15535_v6 = vld [vmem:[#allocation2 + $0x90] ss:$0 sps:$4 sm:$0x11]  }
  0x67   : > { %13890 = vmatprep.mubr.bf16.mxu0 %v15504_v24  ;;  %v1114_v24 = vor.u32 %v1112_v9, %v1110_v14  ;;  %v1178_v9 = vor.u32 %v1176_v63, %v1174_v1  ;;  %v1196_v13 = vshll.u32 %v15535_v6, 16  ;;  %v15536_v14 = vld [vmem:[#allocation2] sm:$0xfe]  }
  0x68   : > { %v1699_v20 = vrot.slane %v15536_v14, 1  ;;  %v15553_v63 = vld [vmem:[#allocation2 + $0x60] sm:$0xff]   ;;  %v15560_v14 = vld [vmem:[#allocation2 + $0x88] sm:$0xff]  }
  0x69   : > { %v1119_v33 = vsel %vm18697_vm0, %v1114_v24, %v1118_v22 }
  0x6e   : > { %13891 = vmatmul.mubr.bf16.gmra.mrb[28].mxu0 %v15505_v28  ;;  %v15530_v28 = vld [vmem:[%s18687_s1 + $0xb0] sm:$0xff]  }
  0x6f   : > { %13894 = vmatprep.mubr.bf16.mxu0 %v15506_v29  ;;  %v1122_v29 = vor.u32 %v1120_v12, %v1118_v22  ;;  %v1192_v12 = vshrl.u32 %v15533_v59, 16  ;;  %v15538_v22 = vld [vmem:[#allocation2 + $0x10] sm:$0xff]  }
  0x70   : > { %v1702_v26 = vrot.slane %v15538_v22, 1 }
  0x71   : > { %v1127_v35 = vsel %vm18697_vm0, %v1122_v29, %v1126_v25 }
  0x76   : > { %13895 = vmatmul.mubr.bf16.gmra.mrb[32].mxu0 %v15508_v37  ;;  %v1130_v37 = vor.u32 %v1128_v23, %v1126_v25  ;;  %v15540_v23 = vld [vmem:[#allocation2 + $0x18] sm:$0xff]  }
  0x77   : > { %13914 = vmatprep.mubr.bf16.mxu0 %v1063_v40  ;;  %v1138_v40 = vor.u32 %v1136_v27, %v1134_v36  ;;  %v262_v27 = vld [vmem:[%s16120_s15 + $0x130] sm:$0xff]  ;;  %v1704_v29 = vrot.slane %v15540_v23, 1 }
  0x78   : > { %v1135_v46 = vsel %vm18697_vm0, %v1130_v37, %v1134_v36  ;;  %v1706_v36 = vrot.slane %v15541_v31, 1  ;;  %v15568_v31 = vld [vmem:[#allocation2 + $0x28] sm:$0xff]  }
  0x79   : > { %v1143_v48 = vsel %vm18697_vm0, %v1138_v40, %v1142_v41  ;;  %v15544_v40 = vld [vmem:[#allocation2 + $0x30] sm:$0xff]  }
  0x7a   : > { %v1707_v39 = vsel %vm18696_vm1, %v1704_v29, %v1706_v36  ;;  %v1710_v44 = vrot.slane %v15544_v40, 1  ;;  %v15573_v40 = vld [vmem:[#allocation2 + $0x40] sm:$0xff]  }
  0x7e   : > { %13915 = vmatmul.mubr.bf16.vlgmr.msra.gmra.mrb[0].mxu0 %v1071_v54  ;;  %v1164_v54 = vshll.u32 %v15529_v45, 16  ;;  %v1712_v45 = vrot.slane %v15546_v43, 1 }
  0x7f   : > { %13951 = vmatpush3.bf16.msra.mxu0 %v15512_v15  ;;  %13918 = vmatprep.mubr.bf16.mxu0 %v1079_v57  ;;  %v15524_v15 = vld [vmem:[%s18687_s1 + $0xa0] sm:$0xff]  }
  0x80   : > { %13952 = vmatprep.subr.bf16.mxu0 %v15515_v51  ;;  %v15532_v57 = vld [vmem:[#allocation2 + $0x80] sm:$0xff]   ;;  %v1166_v61 = vrot.slane %v1164_v54, 1  ;;  %v1713_v50 = vsel %vm18696_vm1, %v1710_v44, %v1712_v45  ;;  %v15557_v54 = vld [vmem:[%s18687_s1 + $0xf0] sm:$0xff]  }
  0x81   : > { %v1180_v2 = vshll.u32 %v15532_v57, 16  ;;  %v1184_v3 = vshrl.u32 %v15532_v57, 16  ;;  %v1715_v57 = vsel %vm18696_vm1, %v1712_v45, %v1714_v52  ;;  %v2247_v45 = vrot.slane %v15573_v40, 1 }
  0x82   : > { %v1170_v0 = vor.u32 %v1168_v55, %v1166_v61  ;;  %v15550_v55 = vld [vmem:[#allocation2 + $0x50] sm:$0xff]  }
  0x83   : > { %13953 = vmatpush3.bf16.msra.mxu0 %v15515_v51  ;;  %v1160_v51 = vshrl.u32 %v15528_v34, 16  ;;  %v1182_v8 = vrot.slane %v1180_v2, 1  ;;  %v15555_v2 = vld [vmem:[#allocation2 + $0x68] sm:$0xff]  }
  0x84   : > { %13954 = vmatprep.subr.bf16.mxu0 %v15518_v62 }
  0x85   : > { %v1186_v10 = vor.u32 %v1184_v3, %v1182_v8  ;;  %v1183_v16 = vsel %vm18697_vm0, %v1178_v9, %v1182_v8  ;;  %v1722_v3 = vrot.slane %v15553_v63, 1  ;;  %v15558_v8 = vld [vmem:[#allocation2 + $0x78] sm:$0xff]   ;;  %v15580_v63 = vld [vmem:[#allocation2 + $0x68] sm:$0xff]  }
  0x86   : > { %13919 = vmatmul.mubr.bf16.gmra.mrb[4].mxu0 %v1087_v5 }
  0x87   : > { %13922 = vmatprep.mubr.bf16.mxu0 %v1095_v7  ;;  %13955 = vmatpush3.bf16.msra.mxu0 %v15518_v62  ;;  %v1162_v62 = vor.u32 %v1160_v51, %v1158_v53  ;;  %v1175_v7 = vsel %vm18697_vm0, %v1170_v0, %v1174_v1  ;;  %v15554_v51 = vld [vmem:[%s18687_s1 + $0xe8] sm:$0xff]  }
  0x88   : > { %13956 = vmatprep.subr.bf16.mxu0 %v15521_v4 }
  0x89   : > { %v1167_v5 = vsel %vm18697_vm0, %v1162_v62, %v1166_v61  ;;  %v1720_v61 = vrot.slane %v15552_v56, 1  ;;  %v15566_v62 = vld [vmem:[%s18687_s1 + $0x100] sm:$0xff]  }
  0x8a   : > { %v15579_v56 = vld [vmem:[#allocation2 + $0x60] sm:$0xff]  }
  0x8b   : > { %13957 = vmatpush3.bf16.msra.mxu0 %v15521_v4  ;;  %v1188_v4 = vshll.u32 %v15533_v59, 16  ;;  %v15561_v59 = vld [vmem:[%s18687_s1 + $0xf8] sm:$0xff]   ;;  %v1723_v6 = vsel %vm18696_vm1, %v1720_v61, %v1722_v3 }
  0x8c   : > { %13958 = vmatprep.subr.bf16.mxu0 %v15524_v15 }
  0x8d   : > { %v1190_v11 = vrot.slane %v1188_v4, 1  ;;  %v1724_v4 = vrot.slane %v15555_v2, 1 }
  0x8e   : > { %13923 = vmatmul.mubr.bf16.gmra.mrb[8].mxu0 %v1103_v19  ;;  %v1198_v19 = vrot.slane %v1196_v13, 1 }
  0x8f   : > { %13926 = vmatprep.mubr.bf16.mxu0 %v1111_v21  ;;  %13959 = vmatpush3.bf16.msra.mxu0 %v15524_v15  ;;  %v15537_v15 = vld [vmem:[#allocation2 + $0x8] sm:$0xff]   ;;  %v1191_v17 = vsel %vm18697_vm0, %v1186_v10, %v1190_v11  ;;  %v1728_v10 = vrot.slane %v15558_v8, 1 }
  0x90   : > { %13960 = vmatprep.subr.bf16.mxu0 %v15527_v18  ;;  %v1700_v21 = vrot.slane %v15537_v15, 1 }
  0x92   : > { %v1701_v25 = vsel %vm18696_vm1, %v1699_v20, %v1700_v21  ;;  %v1703_v34 = vsel %vm18696_vm1, %v1700_v21, %v1702_v26  ;;  %v15564_v21 = vld [vmem:[#allocation2 + $0x10] sm:$0xff]  }
  0x93   : > { %13961 = vmatpush3.bf16.msra.mxu0 %v15527_v18  ;;  %v1194_v18 = vor.u32 %v1192_v12, %v1190_v11  ;;  %v15559_v11 = vld [vmem:[#allocation2 + $0x80] sm:$0xff]  }
  0x94   : > { %13962 = vmatprep.subr.bf16.mxu0 %v15530_v28  ;;  %v1730_v15 = vrot.slane %v15559_v11, 1  ;;  %v15586_v11 = vld [vmem:[#allocation2 + $0x88] sm:$0xff]  }
  0x95   : > { %v1199_v24 = vsel %vm18697_vm0, %v1194_v18, %v1198_v19  ;;  %v15563_v18 = vld [vmem:[#allocation2 + $0x8] sm:$0xfe]  }
  0x96   : > { %13927 = vmatmul.mubr.bf16.gmra.mrb[12].mxu0 %v1119_v33  ;;  %v15543_v33 = vld [vmem:[#allocation2 + $0x28] sm:$0xff]   ;;  %v1731_v19 = vsel %vm18696_vm1, %v1728_v10, %v1730_v15  ;;  %v2234_v23 = vrot.slane %v15563_v18, 1 }
  0x97   : > { %13930 = vmatprep.mubr.bf16.mxu0 %v1127_v35  ;;  %13963 = vmatpush3.bf16.msra.mxu0 %v15530_v28  ;;  %v263_v28 = vld [vmem:[%s16120_s15 + $0x138] sm:$0xff]  ;;  %v1705_v35 = vsel %vm18696_vm1, %v1702_v26, %v1704_v29  ;;  %v1708_v37 = vrot.slane %v15543_v33, 1 }
  0x98   : > { %13964 = vmatprep.subr.bf16.mxu0 %v15534_v32  ;;  %v13351_v30 = vpack.c.bf16 %v263_v28, %v262_v27  ;;  %v15567_v28 = vld [vmem:[#allocation2 + $0x20] sm:$0xff]  }
  0x99   : > { %v1709_v41 = vsel %vm18696_vm1, %v1706_v36, %v1708_v37  ;;  %v1711_v49 = vsel %vm18696_vm1, %v1708_v37, %v1710_v44  ;;  %v2241_v36 = vrot.slane %v15568_v31, 1  ;;  %v15594_v31 = vld [vmem:[#allocation2 + $0x20] sm:$0xff]  }
  0x9a   : > { %13376 = vst [vmem:[#allocation2 + $0x98] sm:$0xff] %v13351_v30   ;;  %v2239_v30 = vrot.slane %v15567_v28, 1 }
  0x9b   : > { %13965 = vmatpush3.bf16.msra.mxu0 %v15534_v32  ;;  %v15542_v32 = vld [vmem:[%s18687_s1 + $0xc8] sm:$0xff]  }
  0x9c   : > { %14002 = vmatprep.subr.bf16.mxu0 %v16235_v42  ;;  %v2242_v43 = vsel %vm18696_vm1, %v2239_v30, %v2241_v36 }
  0x9e   : > { %13931 = vmatmul.mubr.bf16.gmra.mrb[16].mxu0 %v1135_v46  ;;  %v15551_v46 = vld [vmem:[%s18687_s1 + $0xe0] sm:$0xff]  }
  0x9f   : > { %13934 = vmatprep.mubr.bf16.mxu0 %v1143_v48  ;;  %v15549_v48 = vld [vmem:[#allocation2 + $0x48] sm:$0xff]  }
  0xa0   : > { %v1716_v53 = vrot.slane %v15549_v48, 1  ;;  %v15576_v48 = vld [vmem:[#allocation2 + $0x50] sm:$0xff]  }
  0xa6   : > { %13935 = vmatmul.mubr.bf16.gmra.mrb[20].mxu0 %v1151_v58  ;;  %v1717_v58 = vsel %vm18696_vm1, %v1714_v52, %v1716_v53  ;;  %v2249_v52 = vrot.slane %v15574_v47, 1 }
  0xa7   : > { %13938 = vmatprep.mubr.bf16.mxu0 %v1159_v60  ;;  %v1718_v60 = vrot.slane %v15550_v55, 1  ;;  %v15577_v55 = vld [vmem:[#allocation2 + $0x58] sm:$0xff]  }
  0xa9   : > { %v1719_v0 = vsel %vm18696_vm1, %v1716_v53, %v1718_v60  ;;  %v1721_v1 = vsel %vm18696_vm1, %v1718_v60, %v1720_v61  ;;  %v2251_v53 = vrot.slane %v15576_v48, 1  ;;  %v2253_v60 = vrot.slane %v15577_v55, 1 }
  0xaa   : > { %v2255_v61 = vrot.slane %v15579_v56, 1  ;;  %v15598_v56 = vld [vmem:[#allocation2 + $0x38] sm:$0xff]  }
  0xac   : > { %v2256_v2 = vsel %vm18696_vm1, %v2253_v60, %v2255_v61 }
  0xae   : > { %13939 = vmatmul.mubr.bf16.gmra.mrb[24].mxu0 %v1167_v5  ;;  %v15556_v5 = vld [vmem:[#allocation2 + $0x70] sm:$0xff]  }
  0xaf   : > { %13942 = vmatprep.mubr.bf16.mxu0 %v1175_v7  ;;  %v1725_v7 = vsel %vm18696_vm1, %v1722_v3, %v1724_v4  ;;  %v1726_v9 = vrot.slane %v15556_v5, 1  ;;  %v2257_v3 = vrot.slane %v15580_v63, 1  ;;  %v15583_v5 = vld [vmem:[#allocation2 + $0x78] sm:$0xff]  }
  0xb1   : > { %v1727_v12 = vsel %vm18696_vm1, %v1724_v4, %v1726_v9  ;;  %v1729_v13 = vsel %vm18696_vm1, %v1726_v9, %v1728_v10  ;;  %v2261_v9 = vrot.slane %v15583_v5, 1 }
  0xb6   : > { %13943 = vmatmul.mubr.bf16.gmra.mrb[28].mxu0 %v1183_v16  ;;  %v1732_v16 = vrot.slane %v15560_v14, 1  ;;  %v15591_v14 = vld [vmem:[#allocation2 + $0x10] sm:$0xff]  }
  0xb7   : > { %13946 = vmatprep.mubr.bf16.mxu0 %v1191_v17  ;;  %v15562_v17 = vld [vmem:[#allocation2 + $0x90] ss:$0 sps:$4 sm:$0x11]  }
  0xb8   : > { %v1733_v20 = vsel %vm18696_vm1, %v1730_v15, %v1732_v16  ;;  %v1734_v22 = vrot.slane %v15562_v17, 1  ;;  %v2265_v17 = vrot.slane %v15586_v11, 1 }
  0xba   : > { %v1735_v26 = vsel %vm18696_vm1, %v1732_v16, %v1734_v22  ;;  %v2782_v22 = vshll.u32 %v15591_v14, 16 }
  0xbe   : > { %13947 = vmatmul.mubr.bf16.gmra.mrb[32].mxu0 %v1199_v24  ;;  %v2235_v24 = vrot.slane %v15564_v21, 1  ;;  %v2779_v21 = vshrl.u32 %v15591_v14, 16 }
  0xbf   : > { %13966 = vmatprep.mubr.bf16.mxu0 %v1701_v25  ;;  %v15565_v25 = vld [vmem:[#allocation2 + $0x18] sm:$0xff]  }
  0xc0   : > { %v2236_v27 = vsel %vm18696_vm1, %v2234_v23, %v2235_v24  ;;  %v2237_v29 = vrot.slane %v15565_v25, 1  ;;  %v15589_v25 = vld [vmem:[#allocation2 + $0x98] ss:$0 sps:$4 sm:$0x11]  }
  0xc2   : > { %v2238_v33 = vsel %vm18696_vm1, %v2235_v24, %v2237_v29 }
  0xc6   : > { %13967 = vmatmul.mubr.bf16.vlgmr.msra.gmra.mrb[0].mxu0 %v1703_v34  ;;  %v2240_v34 = vsel %vm18696_vm1, %v2237_v29, %v2239_v30  ;;  %v2781_v29 = vrot.slane %v2779_v21, 1  ;;  %v2784_v30 = vrot.slane %v2782_v22, 2 }
  0xc7   : > { %14003 = vmatpush3.bf16.msra.mxu0 %v16235_v42  ;;  %13970 = vmatprep.mubr.bf16.mxu0 %v1705_v35  ;;  %v15548_v42 = vld [vmem:[%s18687_s1 + $0xd8] sm:$0xff]   ;;  %v15570_v35 = vld [vmem:[#allocation2 + $0x30] sm:$0xff]  }
  0xc8   : > { %14004 = vmatprep.subr.bf16.mxu0 %v15542_v32  ;;  %v2243_v37 = vrot.slane %v15570_v35, 1 }
  0xcb   : > { %14005 = vmatpush3.bf16.msra.mxu0 %v15542_v32  ;;  %v15569_v32 = vld [vmem:[%s18687_s1 + $0x108] sm:$0xff]  }
  0xcc   : > { %14006 = vmatprep.subr.bf16.mxu0 %v15545_v38 }
  0xce   : > { %13971 = vmatmul.mubr.bf16.gmra.mrb[4].mxu0 %v1707_v39  ;;  %v15571_v39 = vld [vmem:[#allocation2 + $0x38] sm:$0xff]  }
  0xcf   : > { %13974 = vmatprep.mubr.bf16.mxu0 %v1709_v41  ;;  %14007 = vmatpush3.bf16.msra.mxu0 %v15545_v38  ;;  %v15572_v38 = vld [vmem:[%s18687_s1 + $0x110] sm:$0xff]   ;;  %v15575_v41 = vld [vmem:[%s18687_s1 + $0x118] sm:$0xff]   ;;  %v2245_v44 = vrot.slane %v15571_v39, 1 }
  0xd0   : > { %14008 = vmatprep.subr.bf16.mxu0 %v15548_v42 }
  0xd3   : > { %14009 = vmatpush3.bf16.msra.mxu0 %v15548_v42  ;;  %v2244_v42 = vsel %vm18696_vm1, %v2241_v36, %v2243_v37  ;;  %v2785_v36 = vor.u32 %v2784_v30, %v2781_v29  ;;  %v15608_v29 = vld [vmem:[%s18687_s1 + $0x168] sm:$0xff]  }
  0xd4   : > { %14010 = vmatprep.subr.bf16.mxu0 %v15551_v46 }
  0xd6   : > { %13975 = vmatmul.mubr.bf16.gmra.mrb[8].mxu0 %v1711_v49  ;;  %v15581_v49 = vld [vmem:[%s18687_s1 + $0x128] sm:$0xff]  }
  0xd7   : > { %13978 = vmatprep.mubr.bf16.mxu0 %v1713_v50  ;;  %14011 = vmatpush3.bf16.msra.mxu0 %v15551_v46  ;;  %v15578_v46 = vld [vmem:[%s18687_s1 + $0x120] sm:$0xff]   ;;  %v2246_v50 = vsel %vm18696_vm1, %v2243_v37, %v2245_v44  ;;  %v2797_v37 = vshrl.u32 %v15594_v31, 16 }
  0xd8   : > { %14012 = vmatprep.subr.bf16.mxu0 %v15554_v51 }
  0xdb   : > { %14013 = vmatpush3.bf16.msra.mxu0 %v15554_v51  ;;  %v2248_v51 = vsel %vm18696_vm1, %v2245_v44, %v2247_v45  ;;  %v2799_v44 = vrot.slane %v2797_v37, 1 }
  0xdc   : > { %14014 = vmatprep.subr.bf16.mxu0 %v15557_v54 }
  0xde   : > { %13979 = vmatmul.mubr.bf16.gmra.mrb[12].mxu0 %v1715_v57  ;;  %v15588_v57 = vld [vmem:[%s18687_s1 + $0x138] sm:$0xff]  }
  0xdf   : > { %13982 = vmatprep.mubr.bf16.mxu0 %v1717_v58  ;;  %14015 = vmatpush3.bf16.msra.mxu0 %v15557_v54  ;;  %v15584_v54 = vld [vmem:[%s18687_s1 + $0x130] sm:$0xff]   ;;  %v2250_v58 = vsel %vm18696_vm1, %v2247_v45, %v2249_v52 }
  0xe0   : > { %14016 = vmatprep.subr.bf16.mxu0 %v15561_v59 }
  0xe3   : > { %14017 = vmatpush3.bf16.msra.mxu0 %v15561_v59  ;;  %v2252_v59 = vsel %vm18696_vm1, %v2249_v52, %v2251_v53 }
  0xe4   : > { %14054 = vmatprep.subr.bf16.mxu0 %v15566_v62 }
  0xe6   : > { %13983 = vmatmul.mubr.bf16.gmra.mrb[16].mxu0 %v1719_v0  ;;  %v15582_v0 = vld [vmem:[#allocation2 + $0x70] sm:$0xff]  }
  0xe7   : > { %13986 = vmatprep.mubr.bf16.mxu0 %v1721_v1  ;;  %v2254_v1 = vsel %vm18696_vm1, %v2251_v53, %v2253_v60  ;;  %v2259_v4 = vrot.slane %v15582_v0, 1  ;;  %v2824_v0 = vshrl.u32 %v15598_v56, 16 }
  0xe9   : > { %v2260_v8 = vsel %vm18696_vm1, %v2257_v3, %v2259_v4  ;;  %v2262_v15 = vsel %vm18696_vm1, %v2259_v4, %v2261_v9 }
  0xee   : > { %13987 = vmatmul.mubr.bf16.gmra.mrb[20].mxu0 %v1723_v6  ;;  %v15585_v6 = vld [vmem:[#allocation2 + $0x80] sm:$0xff]  }
  0xef   : > { %13990 = vmatprep.mubr.bf16.mxu0 %v1725_v7  ;;  %v2258_v7 = vsel %vm18696_vm1, %v2255_v61, %v2257_v3  ;;  %v2263_v10 = vrot.slane %v15585_v6, 1  ;;  %v15600_v61 = vld [vmem:[#allocation2 + $0x40] sm:$0xff]   ;;  %v15599_v3 = vld [vmem:[%s18687_s1 + $0x150] sm:$0xff]  }
  0xf0   : > { %v2833_v4 = vshrl.u32 %v15600_v61, 16  ;;  %v2836_v5 = vshll.u32 %v15600_v61, 16 }
  0xf1   : > { %v2264_v16 = vsel %vm18696_vm1, %v2261_v9, %v2263_v10  ;;  %v2266_v23 = vsel %vm18696_vm1, %v2263_v10, %v2265_v17  ;;  %v15601_v9 = vld [vmem:[#allocation2 + $0x48] sm:$0xff]  }
  0xf2   : > { %v2835_v10 = vrot.slane %v2833_v4, 1  ;;  %v2838_v11 = vrot.slane %v2836_v5, 2 }
  0xf6   : > { %13991 = vmatmul.mubr.bf16.gmra.mrb[24].mxu0 %v1727_v12  ;;  %v15587_v12 = vld [vmem:[#allocation2 + $0x90] sm:$0xff]  }
  0xf7   : > { %13994 = vmatprep.mubr.bf16.mxu0 %v1729_v13  ;;  %v15590_v13 = vld [vmem:[#allocation2 + $0x8] sm:$0xfe]   ;;  %v2267_v18 = vrot.slane %v15587_v12, 1  ;;  %v15602_v12 = vld [vmem:[%s18687_s1 + $0x158] sm:$0xff]  }
  0xf9   : > { %v2268_v24 = vsel %vm18696_vm1, %v2265_v17, %v2267_v18  ;;  %v2839_v17 = vor.u32 %v2838_v11, %v2835_v10  ;;  %v15614_v10 = vld [vmem:[#allocation2 + $0x90] sm:$0xff]  }
  0xfe   : > { %13995 = vmatmul.mubr.bf16.gmra.mrb[28].mxu0 %v1731_v19  ;;  %v2771_v19 = vshrl.u32 %v15590_v13, 16 }
  0xff   : > { %13998 = vmatprep.mubr.bf16.mxu0 %v1733_v20  ;;  %v2774_v20 = vshll.u32 %v15590_v13, 16  ;;  %v15603_v13 = vld [vmem:[#allocation2 + $0x50] sm:$0xff]  }
 0x101   : > { %v2776_v28 = vrot.slane %v2774_v20, 2  ;;  %v15605_v20 = vld [vmem:[%s18687_s1 + $0x160] sm:$0xff]  }
 0x106   : > { %13999 = vmatmul.mubr.bf16.gmra.mrb[32].mxu0 %v1735_v26  ;;  %v15592_v26 = vld [vmem:[#allocation2 + $0x18] sm:$0xff]  }
 0x107   : > { %14018 = vmatprep.mubr.bf16.mxu0 %v2236_v27  ;;  %v2773_v27 = vrot.slane %v2771_v19, 1  ;;  %v2854_v19 = vshll.u32 %v15603_v13, 16 }
 0x109   : > { %v2777_v35 = vor.u32 %v2776_v28, %v2773_v27  ;;  %v2856_v27 = vrot.slane %v2854_v19, 2  ;;  %v15606_v28 = vld [vmem:[#allocation2 + $0x60] sm:$0xff]  }
 0x10e   : > { %14019 = vmatmul.mubr.bf16.vlgmr.msra.gmra.mrb[0].mxu0 %v2238_v33  ;;  %v2788_v33 = vshrl.u32 %v15592_v26, 16 }
 0x10f   : > { %14055 = vmatpush3.bf16.msra.mxu0 %v15566_v62  ;;  %14022 = vmatprep.mubr.bf16.mxu0 %v2240_v34  ;;  %v16325_v62 = vld [vmem:[%s18687_s1 + $0x140] sm:$0xff]   ;;  %v2791_v34 = vshll.u32 %v15592_v26, 16 }
 0x110   : > { %14056 = vmatprep.subr.bf16.mxu0 %v15569_v32  ;;  %v2790_v40 = vrot.slane %v2788_v33, 1 }
 0x113   : > { %14057 = vmatpush3.bf16.msra.mxu0 %v15569_v32  ;;  %v2269_v32 = vrot.slane %v15589_v25, 1 }
 0x114   : > { %14058 = vmatprep.subr.bf16.mxu0 %v15572_v38 }
 0x115   : > { %v2270_v39 = vsel %vm18696_vm1, %v2267_v18, %v2269_v32  ;;  %v2851_v18 = vshrl.u32 %v15603_v13, 16 }
 0x116   : > { %14023 = vmatmul.mubr.bf16.gmra.mrb[4].mxu0 %v2242_v43  ;;  %v15595_v43 = vld [vmem:[#allocation2 + $0x28] sm:$0xff]  }
 0x117   : > { %14026 = vmatprep.mubr.bf16.mxu0 %v2244_v42  ;;  %14059 = vmatpush3.bf16.msra.mxu0 %v15572_v38  ;;  %v2800_v38 = vshll.u32 %v15594_v31, 16  ;;  %v2786_v42 = vsel %vm18695_vm2, %v2777_v35, %v2785_v36  ;;  %v2806_v48 = vshrl.u32 %v15595_v43, 16  ;;  %v2853_v26 = vrot.slane %v2851_v18, 1 }
 0x118   : > { %14060 = vmatprep.subr.bf16.mxu0 %v15575_v41  ;;  %v2872_v35 = vshll.u32 %v15606_v28, 16 }
 0x119   : > { %v2802_v45 = vrot.slane %v2800_v38, 2  ;;  %v2857_v33 = vor.u32 %v2856_v27, %v2853_v26 }
 0x11b   : > { %14061 = vmatpush3.bf16.msra.mxu0 %v15575_v41  ;;  %v2793_v41 = vrot.slane %v2791_v34, 2  ;;  %v2869_v34 = vshrl.u32 %v15606_v28, 16 }
 0x11c   : > { %14062 = vmatprep.subr.bf16.mxu0 %v15578_v46 }
 0x11d   : > { %v2794_v47 = vor.u32 %v2793_v41, %v2790_v40  ;;  %v15607_v40 = vld [vmem:[#allocation2 + $0x68] sm:$0xff]  }
 0x11e   : > { %14027 = vmatmul.mubr.bf16.gmra.mrb[8].mxu0 %v2246_v50  ;;  %v2803_v50 = vor.u32 %v2802_v45, %v2799_v44  ;;  %v15609_v44 = vld [vmem:[#allocation2 + $0x70] sm:$0xff]   ;;  %v15615_v45 = vld [vmem:[%s18687_s1 + $0x178] sm:$0xff]  }
 0x11f   : > { %14030 = vmatprep.mubr.bf16.mxu0 %v2248_v51  ;;  %14063 = vmatpush3.bf16.msra.mxu0 %v15578_v46  ;;  %v15597_v46 = vld [vmem:[#allocation2 + $0x30] sm:$0xff]   ;;  %v2795_v53 = vsel %vm18695_vm2, %v2785_v36, %v2794_v47 }
 0x120   : > { %14064 = vmatprep.subr.bf16.mxu0 %v15581_v49  ;;  %v2815_v51 = vshrl.u32 %v15597_v46, 16  ;;  %v2818_v52 = vshll.u32 %v15597_v46, 16  ;;  %v15611_v36 = vld [vmem:[%s18687_s1 + $0x170] sm:$0xff]  }
 0x122   : > { %v2820_v60 = vrot.slane %v2818_v52, 2  ;;  %v16371_v52 = vld [vmem:[%s18687_s1 + $0x180] sm:$0xff]  }
 0x123   : > { %14065 = vmatpush3.bf16.msra.mxu0 %v15581_v49  ;;  %v2809_v49 = vshll.u32 %v15595_v43, 16  ;;  %v2871_v43 = vrot.slane %v2869_v34, 1 }
 0x124   : > { %14066 = vmatprep.subr.bf16.mxu0 %v15584_v54 }
 0x125   : > { %v2811_v55 = vrot.slane %v2809_v49, 2 }
 0x126   : > { %14031 = vmatmul.mubr.bf16.gmra.mrb[12].mxu0 %v2250_v58  ;;  %v15596_v58 = vld [vmem:[%s18687_s1 + $0x148] sm:$0xff]  }
 0x127   : > { %14034 = vmatprep.mubr.bf16.mxu0 %v2252_v59  ;;  %14067 = vmatpush3.bf16.msra.mxu0 %v15584_v54  ;;  %v2808_v54 = vrot.slane %v2806_v48, 1  ;;  %v2817_v59 = vrot.slane %v2815_v51, 1  ;;  %v2881_v48 = vshll.u32 %v15607_v40, 16  ;;  %v2890_v51 = vshll.u32 %v15609_v44, 16 }
 0x128   : > { %14068 = vmatprep.subr.bf16.mxu0 %v15588_v57 }
 0x129   : > { %v2812_v63 = vor.u32 %v2811_v55, %v2808_v54  ;;  %v2883_v55 = vrot.slane %v2881_v48, 2 }
 0x12b   : > { %14069 = vmatpush3.bf16.msra.mxu0 %v15588_v57  ;;  %v2804_v57 = vsel %vm18695_vm2, %v2794_v47, %v2803_v50  ;;  %v2813_v6 = vsel %vm18695_vm2, %v2803_v50, %v2812_v63  ;;  %v2878_v47 = vshrl.u32 %v15607_v40, 16  ;;  %v2887_v50 = vshrl.u32 %v15609_v44, 16  ;;  %v15621_v40 = vld [vmem:[#allocation2 + $0x20] sm:$0xff]  }
 0x12c   : > { %14106 = vmatprep.subr.bf16.mxu0 %v16325_v62  ;;  %v3444_v44 = vrot.slane %v15621_v40, 2 }
 0x12d   : > { %v2880_v54 = vrot.slane %v2878_v47, 1  ;;  %v15622_v47 = vld [vmem:[#allocation2 + $0x28] sm:$0xff]  }
 0x12e   : > { %14035 = vmatmul.mubr.bf16.gmra.mrb[16].mxu0 %v2254_v1  ;;  %v2827_v1 = vshll.u32 %v15598_v56, 16  ;;  %v15610_v56 = vld [vmem:[#allocation2 + $0x78] sm:$0xff]  }
 0x12f   : > { %14038 = vmatprep.mubr.bf16.mxu0 %v2256_v2  ;;  %v2821_v2 = vor.u32 %v2820_v60, %v2817_v59  ;;  %v2892_v59 = vrot.slane %v2890_v51, 2  ;;  %v15612_v60 = vld [vmem:[#allocation2 + $0x80] sm:$0xff]   ;;  %v2884_v61 = vor.u32 %v2883_v55, %v2880_v54  ;;  %v3446_v51 = vrot.slane %v15622_v47, 2  ;;  %v15626_v54 = vld [vmem:[%s18687_s1 + $0x190] sm:$0xff]  }
 0x130   : > { %v15649_v47 = vld [vmem:[#allocation2 + $0x30] sm:$0xff]  }
 0x131   : > { %v3447_v55 = vsel %vm18694_vm3, %v3444_v44, %v3446_v51 }
 0x136   : > { %14039 = vmatmul.mubr.bf16.gmra.mrb[20].mxu0 %v2258_v7  ;;  %v2826_v7 = vrot.slane %v2824_v0, 1  ;;  %v2899_v0 = vshll.u32 %v15610_v56, 16 }
 0x137   : > { %14042 = vmatprep.mubr.bf16.mxu0 %v2260_v8  ;;  %v2829_v8 = vrot.slane %v2827_v1, 2 }
 0x139   : > { %v2830_v14 = vor.u32 %v2829_v8, %v2826_v7  ;;  %v15613_v7 = vld [vmem:[#allocation2 + $0x88] sm:$0xff]  }
 0x13a   : > { %v2917_v13 = vshll.u32 %v15613_v7, 16 }
 0x13b   : > { %v2831_v21 = vsel %vm18695_vm2, %v2821_v2, %v2830_v14  ;;  %v2840_v25 = vsel %vm18695_vm2, %v2830_v14, %v2839_v17 }
 0x13c   : > { %v2919_v19 = vrot.slane %v2917_v13, 2  ;;  %v15647_v13 = vld [vmem:[%s18687_s1 + $0x1c0] sm:$0xff]  }
 0x13e   : > { %14043 = vmatmul.mubr.bf16.gmra.mrb[24].mxu0 %v2262_v15  ;;  %v2842_v15 = vshrl.u32 %v15601_v9, 16 }
 0x13f   : > { %14046 = vmatprep.mubr.bf16.mxu0 %v2264_v16  ;;  %v2845_v16 = vshll.u32 %v15601_v9, 16 }
 0x140   : > { %v2844_v22 = vrot.slane %v2842_v15, 1  ;;  %v2923_v15 = vshrl.u32 %v15614_v10, 16 }
 0x146   : > { %14047 = vmatmul.mubr.bf16.gmra.mrb[28].mxu0 %v2266_v23  ;;  %v2847_v23 = vrot.slane %v2845_v16, 2  ;;  %v2926_v16 = vshll.u32 %v15614_v10, 16  ;;  %v15642_v10 = vld [vmem:[%s18687_s1 + $0x1b8] sm:$0xff]  }
 0x147   : > { %14050 = vmatprep.mubr.bf16.mxu0 %v2268_v24  ;;  %v15604_v24 = vld [vmem:[#allocation2 + $0x58] sm:$0xff]  }
 0x148   : > { %v2848_v30 = vor.u32 %v2847_v23, %v2844_v22  ;;  %v2860_v31 = vshrl.u32 %v15604_v24, 16  ;;  %v2863_v32 = vshll.u32 %v15604_v24, 16  ;;  %v2925_v22 = vrot.slane %v2923_v15, 1  ;;  %v15634_v15 = vld [vmem:[#allocation2 + $0x68] sm:$0xff]  }
 0x149   : > { %v2928_v23 = vrot.slane %v2926_v16, 2 }
 0x14a   : > { %v2849_v37 = vsel %vm18695_vm2, %v2839_v17, %v2848_v30  ;;  %v2862_v38 = vrot.slane %v2860_v31, 1  ;;  %v2858_v41 = vsel %vm18695_vm2, %v2848_v30, %v2857_v33 }
 0x14b   : > { %v2929_v27 = vor.u32 %v2928_v23, %v2925_v22  ;;  %v15639_v23 = vld [vmem:[#allocation2 + $0x80] sm:$0xff]  }
 0x14e   : > { %14051 = vmatmul.mubr.bf16.gmra.mrb[32].mxu0 %v2270_v39  ;;  %v2865_v39 = vrot.slane %v2863_v32, 2  ;;  %v15617_v32 = vld [vmem:[#allocation2 + $0x8] sm:$0xfc]  }
 0x14f   : > { %14070 = vmatprep.mubr.bf16.mxu0 %v2786_v42  ;;  %v2874_v42 = vrot.slane %v2872_v35, 2  ;;  %v3439_v35 = vrot.slane %v15617_v32, 2 }
 0x150   : > { %v2866_v46 = vor.u32 %v2865_v39, %v2862_v38  ;;  %v15619_v38 = vld [vmem:[#allocation2 + $0x18] sm:$0xff]  }
 0x151   : > { %v2875_v49 = vor.u32 %v2874_v42, %v2871_v43  ;;  %v264_v43 = vld [vmem:[%s16120_s15 + $0x140] sm:$0xff]  ;;  %v265_v42 = vld [vmem:[%s16120_s15 + $0x148] sm:$0xff] }
 0x153   : > { %v2885_v4 = vsel %vm18695_vm2, %v2875_v49, %v2884_v61 }
 0x156   : > { %14071 = vmatmul.mubr.bf16.vlgmr.msra.gmra.mrb[0].mxu0 %v2795_v53  ;;  %v2867_v53 = vsel %vm18695_vm2, %v2857_v33, %v2866_v46  ;;  %v15618_v33 = vld [vmem:[#allocation2 + $0x10] sm:$0xff]  }
 0x157   : > { %14107 = vmatpush3.bf16.msra.mxu0 %v16325_v62  ;;  %14074 = vmatprep.mubr.bf16.mxu0 %v2804_v57  ;;  %v2822_v62 = vsel %vm18695_vm2, %v2812_v63, %v2821_v2  ;;  %v2876_v57 = vsel %vm18695_vm2, %v2866_v46, %v2875_v49  ;;  %v2896_v63 = vshrl.u32 %v15610_v56, 16  ;;  %v2905_v2 = vshrl.u32 %v15612_v60, 16  ;;  %v15623_v49 = vld [vmem:[%s18687_s1 + $0x188] sm:$0xff]   ;;  %v15625_v56 = vld [vmem:[#allocation2 + $0x38] sm:$0xff]  }
 0x158   : > { %14108 = vmatprep.subr.bf16.mxu0 %v15596_v58 }
 0x159   : > { %v2898_v5 = vrot.slane %v2896_v63, 1  ;;  %v2907_v9 = vrot.slane %v2905_v2, 1  ;;  %v15630_v2 = vld [vmem:[#allocation2 + $0x50] sm:$0xff]  }
 0x15b   : > { %14109 = vmatpush3.bf16.msra.mxu0 %v15596_v58  ;;  %v2889_v58 = vrot.slane %v2887_v50, 1  ;;  %v15624_v50 = vld [vmem:[#allocation2 + $0x30] sm:$0xff]  }
 0x15c   : > { %14110 = vmatprep.subr.bf16.mxu0 %v15599_v3 }
 0x15d   : > { %v2893_v1 = vor.u32 %v2892_v59, %v2889_v58  ;;  %v15627_v58 = vld [vmem:[#allocation2 + $0x40] sm:$0xff]   ;;  %v3450_v59 = vrot.slane %v15625_v56, 2 }
 0x15e   : > { %14075 = vmatmul.mubr.bf16.gmra.mrb[4].mxu0 %v2813_v6  ;;  %v2901_v6 = vrot.slane %v2899_v0, 2  ;;  %v15628_v0 = vld [vmem:[#allocation2 + $0x48] sm:$0xff]   ;;  %v15652_v56 = vld [vmem:[#allocation2 + $0x40] sm:$0xff]  }
 0x15f   : > { %14078 = vmatprep.mubr.bf16.mxu0 %v2822_v62  ;;  %14111 = vmatpush3.bf16.msra.mxu0 %v15599_v3  ;;  %v2908_v3 = vshll.u32 %v15612_v60, 16  ;;  %v2894_v8 = vsel %vm18695_vm2, %v2884_v61, %v2893_v1  ;;  %v3452_v60 = vrot.slane %v15627_v58, 2  ;;  %v15632_v61 = vld [vmem:[%s18687_s1 + $0x1a0] sm:$0xff]   ;;  %v15654_v58 = vld [vmem:[#allocation2 + $0x48] sm:$0xff]  }
 0x160   : > { %14112 = vmatprep.subr.bf16.mxu0 %v15602_v12  ;;  %v2902_v11 = vor.u32 %v2901_v6, %v2898_v5  ;;  %v3456_v5 = vrot.slane %v15630_v2, 2  ;;  %v15638_v6 = vld [vmem:[%s18687_s1 + $0x1b0] sm:$0xff]   ;;  %v15657_v2 = vld [vmem:[#allocation2 + $0x58] sm:$0xff]  }
 0x161   : > { %v2910_v62 = vrot.slane %v2908_v3, 2  ;;  %v15635_v3 = vld [vmem:[%s18687_s1 + $0x1a8] sm:$0xff]  }
 0x162   : > { %v2903_v17 = vsel %vm18695_vm2, %v2893_v1, %v2902_v11  ;;  %v3453_v1 = vsel %vm18694_vm3, %v3450_v59, %v3452_v60 }
 0x163   : > { %14113 = vmatpush3.bf16.msra.mxu0 %v15602_v12  ;;  %v2914_v12 = vshrl.u32 %v15613_v7, 16  ;;  %v2911_v14 = vor.u32 %v2910_v62, %v2907_v9  ;;  %v15633_v62 = vld [vmem:[#allocation2 + $0x60] sm:$0xff]  }
 0x164   : > { %14114 = vmatprep.subr.bf16.mxu0 %v15605_v20 }
 0x165   : > { %v2916_v18 = vrot.slane %v2914_v12, 1  ;;  %v3460_v12 = vrot.slane %v15633_v62, 2  ;;  %v15660_v62 = vld [vmem:[#allocation2 + $0x68] sm:$0xff]  }
 0x166   : > { %14079 = vmatmul.mubr.bf16.gmra.mrb[8].mxu0 %v2831_v21  ;;  %v2912_v21 = vsel %vm18695_vm2, %v2902_v11, %v2911_v14 }
 0x167   : > { %14082 = vmatprep.mubr.bf16.mxu0 %v2840_v25  ;;  %14115 = vmatpush3.bf16.msra.mxu0 %v15605_v20  ;;  %v15616_v20 = vld [vmem:[#allocation2 + $0x98] ss:$0 sps:$4 sm:$0x33]   ;;  %v2920_v24 = vor.u32 %v2919_v19, %v2916_v18  ;;  %v3462_v18 = vrot.slane %v15634_v15, 2  ;;  %v15661_v15 = vld [vmem:[#allocation2 + $0x70] sm:$0xff]  }
 0x168   : > { %14116 = vmatprep.subr.bf16.mxu0 %v15608_v29  ;;  %v2932_v25 = vshrl.u32 %v15616_v20, 16  ;;  %v2935_v26 = vshll.u32 %v15616_v20, 16 }
 0x169   : > { %v2921_v28 = vsel %vm18695_vm2, %v2911_v14, %v2920_v24  ;;  %v2930_v31 = vsel %vm18695_vm2, %v2920_v24, %v2929_v27  ;;  %v3463_v20 = vsel %vm18694_vm3, %v3460_v12, %v3462_v18 }
 0x16a   : > { %v2937_v30 = vrot.slane %v2935_v26, 2 }
 0x16b   : > { %14117 = vmatpush3.bf16.msra.mxu0 %v15608_v29  ;;  %v2934_v29 = vrot.slane %v2932_v25, 1  ;;  %v3468_v25 = vrot.slane %v15639_v23, 2  ;;  %v15666_v23 = vld [vmem:[#allocation2 + $0x88] sm:$0xff]  }
 0x16c   : > { %14118 = vmatprep.subr.bf16.mxu0 %v15611_v36 }
 0x16d   : > { %v2938_v34 = vor.u32 %v2937_v30, %v2934_v29  ;;  %v15641_v29 = vld [vmem:[#allocation2 + $0x90] sm:$0xff]  }
 0x16e   : > { %14083 = vmatmul.mubr.bf16.gmra.mrb[12].mxu0 %v2849_v37 }
 0x16f   : > { %14086 = vmatprep.mubr.bf16.mxu0 %v2858_v41  ;;  %14119 = vmatpush3.bf16.msra.mxu0 %v15611_v36  ;;  %v3440_v36 = vrot.slane %v15618_v33, 2  ;;  %v2939_v37 = vsel %vm18695_vm2, %v2929_v27, %v2938_v34  ;;  %v3442_v41 = vrot.slane %v15619_v38, 2  ;;  %v15640_v27 = vld [vmem:[#allocation2 + $0x88] sm:$0xff]   ;;  %v15643_v33 = vld [vmem:[#allocation2 + $0x98] ss:$0 sps:$4 sm:$0x33]  }
 0x170   : > { %14120 = vmatprep.subr.bf16.mxu0 %v15615_v45  ;;  %v3470_v30 = vrot.slane %v15640_v27, 2  ;;  %v15667_v27 = vld [vmem:[#allocation2 + $0x90] sm:$0xff]  }
 0x171   : > { %v3441_v39 = vsel %vm18694_vm3, %v3439_v35, %v3440_v36  ;;  %v3443_v46 = vsel %vm18694_vm3, %v3440_v36, %v3442_v41  ;;  %v3445_v48 = vsel %vm18694_vm3, %v3442_v41, %v3444_v44  ;;  %v15644_v35 = vld [vmem:[#allocation2 + $0x10] sm:$0xfc]   ;;  %v15645_v36 = vld [vmem:[#allocation2 + $0x18] sm:$0xff]   ;;  %v15646_v41 = vld [vmem:[#allocation2 + $0x20] sm:$0xff]  }
 0x172   : > { %v3471_v32 = vsel %vm18694_vm3, %v3468_v25, %v3470_v30  ;;  %v3974_v38 = vrot.slane %v15644_v35, 2  ;;  %v3977_v44 = vrot.slane %v15646_v41, 2  ;;  %v15673_v41 = vld [vmem:[#allocation2 + $0x20] sm:$0xff]  }
 0x173   : > { %14121 = vmatpush3.bf16.msra.mxu0 %v15615_v45  ;;  %v13356_v45 = vpack.c.bf16 %v265_v42, %v264_v43  ;;  %v15648_v42 = vld [vmem:[#allocation2 + $0x28] sm:$0xff]  }
 0x174   : > { %14158 = vmatprep.subr.bf16.mxu0 %v16371_v52 }
 0x175   : > { %13377 = vst [vmem:[#allocation2 + $0xa0] sm:$0xff] %v13356_v45   ;;  %v3979_v45 = vrot.slane %v15648_v42, 2 }
 0x176   : > { %14087 = vmatmul.mubr.bf16.gmra.mrb[16].mxu0 %v2867_v53  ;;  %v3448_v53 = vrot.slane %v15624_v50, 2  ;;  %v15651_v50 = vld [vmem:[#allocation2 + $0x38] sm:$0xff]  }
 0x177   : > { %14090 = vmatprep.mubr.bf16.mxu0 %v2876_v57 }
 0x178   : > { %v3449_v57 = vsel %vm18694_vm3, %v3446_v51, %v3448_v53  ;;  %v3451_v63 = vsel %vm18694_vm3, %v3448_v53, %v3450_v59  ;;  %v3981_v51 = vrot.slane %v15649_v47, 2  ;;  %v3983_v53 = vrot.slane %v15651_v50, 2 }
 0x179   : > { %v3985_v59 = vrot.slane %v15652_v56, 2 }
 0x17e   : > { %14091 = vmatmul.mubr.bf16.gmra.mrb[20].mxu0 %v2885_v4  ;;  %v3454_v4 = vrot.slane %v15628_v0, 2  ;;  %v15655_v0 = vld [vmem:[#allocation2 + $0x50] sm:$0xff]  }
 0x17f   : > { %14094 = vmatprep.mubr.bf16.mxu0 %v2894_v8  ;;  %v15631_v8 = vld [vmem:[#allocation2 + $0x58] sm:$0xff]  }
 0x180   : > { %v3455_v7 = vsel %vm18694_vm3, %v3452_v60, %v3454_v4  ;;  %v3457_v9 = vsel %vm18694_vm3, %v3454_v4, %v3456_v5  ;;  %v3458_v11 = vrot.slane %v15631_v8, 2  ;;  %v3987_v60 = vrot.slane %v15654_v58, 2  ;;  %v15658_v8 = vld [vmem:[#allocation2 + $0x60] sm:$0xff]   ;;  %v15676_v58 = vld [vmem:[#allocation2 + $0x30] sm:$0xff]  }
 0x181   : > { %v3989_v4 = vrot.slane %v15655_v0, 2  ;;  %v4546_v0 = vshrl.u32 %v15676_v58, 16 }
 0x182   : > { %v3459_v14 = vsel %vm18694_vm3, %v3456_v5, %v3458_v11  ;;  %v3461_v16 = vsel %vm18694_vm3, %v3458_v11, %v3460_v12  ;;  %v3991_v5 = vrot.slane %v15657_v2, 2  ;;  %v3993_v11 = vrot.slane %v15658_v8, 2  ;;  %v15679_v8 = vld [vmem:[#allocation2 + $0x40] sm:$0xff]  }
 0x183   : > { %v3995_v12 = vrot.slane %v15660_v62, 2  ;;  %v15677_v62 = vld [vmem:[%s18687_s1 + $0x208] sm:$0xff]  }
 0x186   : > { %14095 = vmatmul.mubr.bf16.gmra.mrb[24].mxu0 %v2903_v17  ;;  %v15636_v17 = vld [vmem:[#allocation2 + $0x70] sm:$0xff]  }
 0x187   : > { %14098 = vmatprep.mubr.bf16.mxu0 %v2912_v21  ;;  %v3464_v19 = vrot.slane %v15636_v17, 2  ;;  %v15637_v21 = vld [vmem:[#allocation2 + $0x78] sm:$0xff]  }
 0x188   : > { %v3466_v24 = vrot.slane %v15637_v21, 2  ;;  %v15663_v17 = vld [vmem:[#allocation2 + $0x78] sm:$0xff]   ;;  %v15664_v21 = vld [vmem:[#allocation2 + $0x80] sm:$0xff]  }
 0x189   : > { %v3465_v22 = vsel %vm18694_vm3, %v3462_v18, %v3464_v19  ;;  %v3997_v18 = vrot.slane %v15661_v15, 2  ;;  %v4564_v15 = vshrl.u32 %v15679_v8, 16 }
 0x18a   : > { %v3467_v26 = vsel %vm18694_vm3, %v3464_v19, %v3466_v24  ;;  %v3999_v19 = vrot.slane %v15663_v17, 2 }
 0x18e   : > { %14099 = vmatmul.mubr.bf16.gmra.mrb[28].mxu0 %v2921_v28  ;;  %v3469_v28 = vsel %vm18694_vm3, %v3466_v24, %v3468_v25  ;;  %v4001_v24 = vrot.slane %v15664_v21, 2  ;;  %v4003_v25 = vrot.slane %v15666_v23, 2 }
 0x18f   : > { %14102 = vmatprep.mubr.bf16.mxu0 %v2930_v31  ;;  %v3472_v31 = vrot.slane %v15641_v29, 2 }
 0x190   : > { %v4004_v29 = vsel %vm18694_vm3, %v4001_v24, %v4003_v25 }
 0x191   : > { %v3473_v34 = vsel %vm18694_vm3, %v3470_v30, %v3472_v31  ;;  %v15671_v30 = vld [vmem:[#allocation2 + $0x10] sm:$0xfc]  }
 0x192   : > { %v4514_v35 = vshll.u32 %v15671_v30, 16 }
 0x194   : > { %v4516_v42 = vrot.slane %v4514_v35, 3 }
 0x196   : > { %14103 = vmatmul.mubr.bf16.gmra.mrb[32].mxu0 %v2939_v37  ;;  %v3474_v37 = vrot.slane %v15643_v33, 2 }
 0x197   : > { %14122 = vmatprep.mubr.bf16.mxu0 %v3441_v39  ;;  %v3975_v39 = vrot.slane %v15645_v36, 2 }
 0x198   : > { %v3475_v40 = vsel %vm18694_vm3, %v3472_v31, %v3474_v37  ;;  %v15672_v31 = vld [vmem:[#allocation2 + $0x18] sm:$0xff]  }
 0x199   : > { %v3976_v43 = vsel %vm18694_vm3, %v3974_v38, %v3975_v39  ;;  %v4519_v36 = vshrl.u32 %v15672_v31, 16  ;;  %v4522_v37 = vshll.u32 %v15672_v31, 16 }
 0x19e   : > { %14123 = vmatmul.mubr.bf16.vlgmr.msra.gmra.mrb[0].mxu0 %v3443_v46  ;;  %v3978_v46 = vsel %vm18694_vm3, %v3975_v39, %v3977_v44 }
 0x19f   : > { %14159 = vmatpush3.bf16.msra.mxu0 %v16371_v52  ;;  %14126 = vmatprep.mubr.bf16.mxu0 %v3445_v48  ;;  %v15629_v52 = vld [vmem:[%s18687_s1 + $0x198] sm:$0xff]   ;;  %v3980_v48 = vsel %vm18694_vm3, %v3977_v44, %v3979_v45  ;;  %v4521_v44 = vrot.slane %v4519_v36, 2  ;;  %v15686_v36 = vld [vmem:[%s18687_s1 + $0x220] sm:$0xff]  }
 0x1a0   : > { %14160 = vmatprep.subr.bf16.mxu0 %v15623_v49 }
 0x1a3   : > { %14161 = vmatpush3.bf16.msra.mxu0 %v15623_v49  ;;  %v15650_v49 = vld [vmem:[%s18687_s1 + $0x1c8] sm:$0xff]  }
 0x1a4   : > { %14162 = vmatprep.subr.bf16.mxu0 %v15626_v54 }
 0x1a6   : > { %14127 = vmatmul.mubr.bf16.gmra.mrb[4].mxu0 %v3447_v55  ;;  %v3982_v55 = vsel %vm18694_vm3, %v3979_v45, %v3981_v51  ;;  %v4524_v45 = vrot.slane %v4522_v37, 3 }
 0x1a7   : > { %14130 = vmatprep.mubr.bf16.mxu0 %v3449_v57  ;;  %14163 = vmatpush3.bf16.msra.mxu0 %v15626_v54  ;;  %v15653_v54 = vld [vmem:[%s18687_s1 + $0x1d0] sm:$0xff]   ;;  %v3984_v57 = vsel %vm18694_vm3, %v3981_v51, %v3983_v53 }
 0x1a8   : > { %14164 = vmatprep.subr.bf16.mxu0 %v15629_v52  ;;  %v4525_v51 = vor.u32 %v4524_v45, %v4521_v44  ;;  %v15687_v44 = vld [vmem:[#allocation2 + $0x68] sm:$0xff]  }
 0x1a9   : > { %v15689_v45 = vld [vmem:[%s18687_s1 + $0x228] sm:$0xff]  }
 0x1ab   : > { %14165 = vmatpush3.bf16.msra.mxu0 %v15629_v52  ;;  %v15656_v52 = vld [vmem:[%s18687_s1 + $0x1d8] sm:$0xff]  }
 0x1ac   : > { %14166 = vmatprep.subr.bf16.mxu0 %v15632_v61 }
 0x1ae   : > { %14131 = vmatmul.mubr.bf16.gmra.mrb[8].mxu0 %v3451_v63  ;;  %v3986_v63 = vsel %vm18694_vm3, %v3983_v53, %v3985_v59 }
 0x1af   : > { %14134 = vmatprep.mubr.bf16.mxu0 %v3453_v1  ;;  %14167 = vmatpush3.bf16.msra.mxu0 %v15632_v61  ;;  %v15659_v61 = vld [vmem:[%s18687_s1 + $0x1e0] sm:$0xff]   ;;  %v3988_v1 = vsel %vm18694_vm3, %v3985_v59, %v3987_v60 }
 0x1b0   : > { %14168 = vmatprep.subr.bf16.mxu0 %v15635_v3 }
 0x1b3   : > { %14169 = vmatpush3.bf16.msra.mxu0 %v15635_v3  ;;  %v15662_v3 = vld [vmem:[%s18687_s1 + $0x1e8] sm:$0xff]  }
 0x1b4   : > { %14170 = vmatprep.subr.bf16.mxu0 %v15638_v6 }
 0x1b6   : > { %14135 = vmatmul.mubr.bf16.gmra.mrb[12].mxu0 %v3455_v7  ;;  %v3990_v7 = vsel %vm18694_vm3, %v3987_v60, %v3989_v4 }
 0x1b7   : > { %14138 = vmatprep.mubr.bf16.mxu0 %v3457_v9  ;;  %14171 = vmatpush3.bf16.msra.mxu0 %v15638_v6  ;;  %v15665_v6 = vld [vmem:[%s18687_s1 + $0x1f0] sm:$0xff]   ;;  %v3992_v9 = vsel %vm18694_vm3, %v3989_v4, %v3991_v5 }
 0x1b8   : > { %14172 = vmatprep.subr.bf16.mxu0 %v15642_v10 }
 0x1bb   : > { %14173 = vmatpush3.bf16.msra.mxu0 %v15642_v10  ;;  %v15669_v10 = vld [vmem:[%s18687_s1 + $0x1f8] sm:$0xff]  }
 0x1bc   : > { %14210 = vmatprep.subr.bf16.mxu0 %v15647_v13 }
 0x1be   : > { %14139 = vmatmul.mubr.bf16.gmra.mrb[16].mxu0 %v3459_v14  ;;  %v3994_v14 = vsel %vm18694_vm3, %v3991_v5, %v3993_v11 }
 0x1bf   : > { %14142 = vmatprep.mubr.bf16.mxu0 %v3461_v16  ;;  %v3996_v16 = vsel %vm18694_vm3, %v3993_v11, %v3995_v12 }
 0x1c6   : > { %14143 = vmatmul.mubr.bf16.gmra.mrb[20].mxu0 %v3463_v20  ;;  %v3998_v20 = vsel %vm18694_vm3, %v3995_v12, %v3997_v18  ;;  %v15681_v12 = vld [vmem:[#allocation2 + $0x48] sm:$0xff]  }
 0x1c7   : > { %14146 = vmatprep.mubr.bf16.mxu0 %v3465_v22  ;;  %v4000_v22 = vsel %vm18694_vm3, %v3997_v18, %v3999_v19  ;;  %v15680_v18 = vld [vmem:[%s18687_s1 + $0x210] sm:$0xff]  }
 0x1ce   : > { %14147 = vmatmul.mubr.bf16.gmra.mrb[24].mxu0 %v3467_v26  ;;  %v4002_v26 = vsel %vm18694_vm3, %v3999_v19, %v4001_v24  ;;  %v4573_v19 = vshrl.u32 %v15681_v12, 16  ;;  %v15682_v24 = vld [vmem:[#allocation2 + $0x50] sm:$0xff]  }
 0x1cf   : > { %14150 = vmatprep.mubr.bf16.mxu0 %v3469_v28  ;;  %v15668_v28 = vld [vmem:[#allocation2 + $0x98] sm:$0xff]   ;;  %v4582_v31 = vshrl.u32 %v15682_v24, 16 }
 0x1d0   : > { %v4007_v33 = vrot.slane %v15668_v28, 2  ;;  %v15684_v28 = vld [vmem:[#allocation2 + $0x58] sm:$0xff]  }
 0x1d1   : > { %v4594_v35 = vshll.u32 %v15684_v28, 16 }
 0x1d6   : > { %14151 = vmatmul.mubr.bf16.gmra.mrb[28].mxu0 %v3471_v32  ;;  %v4005_v32 = vrot.slane %v15667_v27, 2  ;;  %v15683_v27 = vld [vmem:[%s18687_s1 + $0x218] sm:$0xff]  }
 0x1d7   : > { %14154 = vmatprep.mubr.bf16.mxu0 %v3473_v34  ;;  %v4511_v34 = vshrl.u32 %v15671_v30, 16 }
 0x1d8   : > { %v4006_v38 = vsel %vm18694_vm3, %v4003_v25, %v4005_v32  ;;  %v4008_v39 = vsel %vm18694_vm3, %v4005_v32, %v4007_v33  ;;  %v4575_v25 = vrot.slane %v4573_v19, 2  ;;  %v4585_v32 = vshll.u32 %v15682_v24, 16 }
 0x1de   : > { %14155 = vmatmul.mubr.bf16.gmra.mrb[32].mxu0 %v3475_v40  ;;  %v15670_v40 = vld [vmem:[#allocation2 + $0xa0] ss:$0 sps:$4 sm:$0x33]  }
 0x1df   : > { %14174 = vmatprep.mubr.bf16.mxu0 %v3976_v43  ;;  %v4513_v43 = vrot.slane %v4511_v34, 2  ;;  %v4009_v47 = vrot.slane %v15670_v40, 2  ;;  %v4591_v34 = vshrl.u32 %v15684_v28, 16  ;;  %v15685_v40 = vld [vmem:[#allocation2 + $0x60] sm:$0xff]  }
 0x1e1   : > { %v4517_v50 = vor.u32 %v4516_v42, %v4513_v43  ;;  %v4593_v43 = vrot.slane %v4591_v34, 2  ;;  %v4596_v42 = vrot.slane %v4594_v35, 3  ;;  %v15697_v35 = vld [vmem:[#allocation2 + $0xa0] ss:$0 sps:$4 sm:$0x77]  }
 0x1e6   : > { %14175 = vmatmul.mubr.bf16.vlgmr.msra.gmra.mrb[0].mxu0 %v3978_v46  ;;  %v15675_v46 = vld [vmem:[#allocation2 + $0x28] sm:$0xff]  }
 0x1e7   : > { %14211 = vmatpush3.bf16.msra.mxu0 %v15647_v13  ;;  %14178 = vmatprep.mubr.bf16.mxu0 %v3980_v48  ;;  %v16461_v13 = vld [vmem:[%s18687_s1 + $0x200] sm:$0xff]   ;;  %v4528_v48 = vshrl.u32 %v15673_v41, 16  ;;  %v4537_v53 = vshrl.u32 %v15675_v46, 16 }
 0x1e8   : > { %14212 = vmatprep.subr.bf16.mxu0 %v15650_v49 }
 0x1e9   : > { %v4530_v56 = vrot.slane %v4528_v48, 2  ;;  %v4539_v59 = vrot.slane %v4537_v53, 2  ;;  %v4603_v48 = vshll.u32 %v15685_v40, 16  ;;  %v15692_v53 = vld [vmem:[%s18687_s1 + $0x230] sm:$0xff]  }
 0x1eb   : > { %14213 = vmatpush3.bf16.msra.mxu0 %v15650_v49  ;;  %v4531_v49 = vshll.u32 %v15673_v41, 16 }
 0x1ec   : > { %14214 = vmatprep.subr.bf16.mxu0 %v15653_v54 }
 0x1ee   : > { %14179 = vmatmul.mubr.bf16.gmra.mrb[4].mxu0 %v3982_v55  ;;  %v4010_v55 = vsel %vm18694_vm3, %v4007_v33, %v4009_v47  ;;  %v4600_v47 = vshrl.u32 %v15685_v40, 16  ;;  %v4672_v40 = vshrl.u32 %v15697_v35, 16 }
 0x1ef   : > { %14182 = vmatprep.mubr.bf16.mxu0 %v3984_v57  ;;  %14215 = vmatpush3.bf16.msra.mxu0 %v15653_v54  ;;  %v4540_v54 = vshll.u32 %v15675_v46, 16  ;;  %v4533_v57 = vrot.slane %v4531_v49, 3  ;;  %v4597_v49 = vor.u32 %v4596_v42, %v4593_v43 }
 0x1f0   : > { %14216 = vmatprep.subr.bf16.mxu0 %v15656_v52 }
 0x1f1   : > { %v4542_v60 = vrot.slane %v4540_v54, 3 }
 0x1f3   : > { %14217 = vmatpush3.bf16.msra.mxu0 %v15656_v52  ;;  %v4526_v52 = vsel %vm18693_vm4, %v4517_v50, %v4525_v51  ;;  %v4543_v2 = vor.u32 %v4542_v60, %v4539_v59  ;;  %v4609_v50 = vshrl.u32 %v15687_v44, 16  ;;  %v15690_v60 = vld [vmem:[#allocation2 + $0x78] sm:$0xff]  }
 0x1f4   : > { %14218 = vmatprep.subr.bf16.mxu0 %v15659_v61 }
 0x1f6   : > { %14183 = vmatmul.mubr.bf16.gmra.mrb[8].mxu0 %v3986_v63  ;;  %v4534_v63 = vor.u32 %v4533_v57, %v4530_v56  ;;  %v4605_v56 = vrot.slane %v4603_v48, 3  ;;  %v15688_v57 = vld [vmem:[#allocation2 + $0x70] sm:$0xff]   ;;  %v15699_v48 = vld [vmem:[#allocation2 + $0x18] sm:$0xff]  }
 0x1f7   : > { %14186 = vmatprep.mubr.bf16.mxu0 %v3988_v1  ;;  %14219 = vmatpush3.bf16.msra.mxu0 %v15659_v61  ;;  %v15678_v61 = vld [vmem:[#allocation2 + $0x38] sm:$0xff]   ;;  %v4549_v1 = vshll.u32 %v15676_v58, 16 }
 0x1f8   : > { %14220 = vmatprep.subr.bf16.mxu0 %v15662_v3  ;;  %v4558_v4 = vshll.u32 %v15678_v61, 16  ;;  %v4535_v5 = vsel %vm18693_vm4, %v4525_v51, %v4534_v63  ;;  %v4612_v51 = vshll.u32 %v15687_v44, 16  ;;  %v4674_v44 = vrot.slane %v4672_v40, 2 }
 0x1fa   : > { %v4560_v11 = vrot.slane %v4558_v4, 3  ;;  %v4614_v59 = vrot.slane %v4612_v51, 3  ;;  %v4630_v4 = vshll.u32 %v15690_v60, 16  ;;  %v5180_v51 = vrot.slane %v15699_v48, 3  ;;  %v6450_v48 = vld [vmem:[#allocation3 + $0x98] sm:$0xe] }
 0x1fb   : > { %14221 = vmatpush3.bf16.msra.mxu0 %v15662_v3  ;;  %v4555_v3 = vshrl.u32 %v15678_v61, 16  ;;  %v15696_v61 = vld [vmem:[%s18687_s1 + $0x238] sm:$0xff]  }
 0x1fc   : > { %14222 = vmatprep.subr.bf16.mxu0 %v15665_v6 }
 0x1fe   : > { %14187 = vmatmul.mubr.bf16.gmra.mrb[12].mxu0 %v3990_v7  ;;  %v4551_v7 = vrot.slane %v4549_v1, 3  ;;  %v4621_v1 = vshll.u32 %v15688_v57, 16 }
 0x1ff   : > { %14190 = vmatprep.mubr.bf16.mxu0 %v3992_v9  ;;  %14223 = vmatpush3.bf16.msra.mxu0 %v15665_v6  ;;  %v4548_v6 = vrot.slane %v4546_v0, 2  ;;  %v4544_v9 = vsel %vm18693_vm4, %v4534_v63, %v4543_v2  ;;  %v4618_v0 = vshrl.u32 %v15688_v57, 16 }
 0x200   : > { %14224 = vmatprep.subr.bf16.mxu0 %v15669_v10 }
 0x203   : > { %14225 = vmatpush3.bf16.msra.mxu0 %v15669_v10  ;;  %v4557_v10 = vrot.slane %v4555_v3, 2  ;;  %v4627_v3 = vshrl.u32 %v15690_v60, 16 }
 0x204   : > { %14262 = vmatprep.subr.bf16.mxu0 %v16461_v13 }
 0x205   : > { %v4561_v17 = vor.u32 %v4560_v11, %v4557_v10  ;;  %v4632_v10 = vrot.slane %v4630_v4, 3  ;;  %v15693_v11 = vld [vmem:[#allocation2 + $0x88] sm:$0xff]  }
 0x206   : > { %14191 = vmatmul.mubr.bf16.gmra.mrb[16].mxu0 %v3994_v14  ;;  %v4552_v14 = vor.u32 %v4551_v7, %v4548_v6  ;;  %v4620_v6 = vrot.slane %v4618_v0, 2  ;;  %v4623_v7 = vrot.slane %v4621_v1, 3  ;;  %v15705_v4 = vld [vmem:[#allocation2 + $0x48] sm:$0xff]  }
 0x207   : > { %14194 = vmatprep.mubr.bf16.mxu0 %v3996_v16  ;;  %v4567_v16 = vshll.u32 %v15679_v8, 16  ;;  %v15691_v8 = vld [vmem:[#allocation2 + $0x80] sm:$0xff]  }
 0x208   : > { %v4553_v21 = vsel %vm18693_vm4, %v4543_v2, %v4552_v14 }
 0x209   : > { %v4569_v23 = vrot.slane %v4567_v16, 3 }
 0x20e   : > { %14195 = vmatmul.mubr.bf16.gmra.mrb[20].mxu0 %v3998_v20  ;;  %v4576_v20 = vshll.u32 %v15681_v12, 16  ;;  %v4624_v12 = vor.u32 %v4623_v7, %v4620_v6  ;;  %v5192_v6 = vrot.slane %v15705_v4, 3 }
 0x20f   : > { %14198 = vmatprep.mubr.bf16.mxu0 %v4000_v22  ;;  %v4566_v22 = vrot.slane %v4564_v15, 2  ;;  %v4639_v15 = vshll.u32 %v15691_v8, 16 }
 0x211   : > { %v4570_v30 = vor.u32 %v4569_v23, %v4566_v22  ;;  %v15694_v22 = vld [vmem:[#allocation2 + $0x90] sm:$0xff]  }
 0x212   : > { %v4657_v28 = vshll.u32 %v15694_v22, 16 }
 0x213   : > { %v4571_v37 = vsel %vm18693_vm4, %v4561_v17, %v4570_v30 }
 0x214   : > { %v4659_v34 = vrot.slane %v4657_v28, 3 }
 0x216   : > { %14199 = vmatmul.mubr.bf16.gmra.mrb[24].mxu0 %v4002_v26  ;;  %v4578_v26 = vrot.slane %v4576_v20, 3 }
 0x217   : > { %14202 = vmatprep.mubr.bf16.mxu0 %v4004_v29  ;;  %v15717_v29 = vld [vmem:[%s18689_s3] sm:$0xff]  }
 0x218   : > { %v4579_v33 = vor.u32 %v4578_v26, %v4575_v25  ;;  %14314 = vmatprep.subr.bf16.mxu1 %v15717_v29  ;;  %v15695_v25 = vld [vmem:[#allocation2 + $0x98] sm:$0xff]  }
 0x219   : > { %14315 = vmatpush3.bf16.msra.mxu1 %v15717_v29 }
 0x21a   : > { %v4580_v41 = vsel %vm18693_vm4, %v4570_v30, %v4579_v33  ;;  %v4663_v30 = vshrl.u32 %v15695_v25, 16 }
 0x21e   : > { %14203 = vmatmul.mubr.bf16.gmra.mrb[28].mxu0 %v4006_v38  ;;  %v4584_v38 = vrot.slane %v4582_v31, 2  ;;  %v4666_v31 = vshll.u32 %v15695_v25, 16  ;;  %v15712_v25 = vld [vmem:[#allocation2 + $0x80] sm:$0xff]  }
 0x21f   : > { %14206 = vmatprep.mubr.bf16.mxu0 %v4008_v39  ;;  %v4587_v39 = vrot.slane %v4585_v32, 3  ;;  %v5206_v28 = vrot.slane %v15712_v25, 3 }
 0x221   : > { %v4588_v46 = vor.u32 %v4587_v39, %v4584_v38  ;;  %v4668_v38 = vrot.slane %v4666_v31, 3  ;;  %v15714_v31 = vld [vmem:[#allocation2 + $0x90] sm:$0xff]  }
 0x223   : > { %v4589_v54 = vsel %vm18693_vm4, %v4579_v33, %v4588_v46  ;;  %v4598_v58 = vsel %vm18693_vm4, %v4588_v46, %v4597_v49 }
 0x226   : > { %14207 = vmatmul.mubr.bf16.gmra.mrb[32].mxu0 %v4010_v55  ;;  %v4602_v55 = vrot.slane %v4600_v47, 2  ;;  %v15698_v47 = vld [vmem:[#allocation2 + $0x10] sm:$0xf8]  }
 0x227   : > { %14226 = vmatprep.mubr.bf16.mxu0 %v4526_v52  ;;  %v4611_v52 = vrot.slane %v4609_v50, 2  ;;  %v5179_v50 = vrot.slane %v15698_v47, 3  ;;  %v18797_v47 = vmov 0 }
 0x228   : > { %v4606_v63 = vor.u32 %v4605_v56, %v4602_v55  ;;  %v15701_v56 = vld [vmem:[#allocation2 + $0x28] sm:$0xff]   ;;  %v18798_v47 = vsel %vm16550_vm11, 4294967295, %v18797_v47 }
 0x229   : > { %v4615_v2 = vor.u32 %v4614_v59, %v4611_v52  ;;  %v5181_v55 = vsel %vm18692_vm5, %v5179_v50, %v5180_v51  ;;  %v15702_v59 = vld [vmem:[#allocation2 + $0x30] sm:$0xff]   ;;  %18799 = vst [vmem:[#allocation9_spill] sm:$0xff] %v18798_v47  ;;  %v15721_v50 = vld [vmem:[%s18689_s3 + $0x20] sm:$0xff]  }
 0x22b   : > { %v4625_v19 = vsel %vm18693_vm4, %v4615_v2, %v4624_v12 }
 0x22e   : > { %14227 = vmatmul.mubr.bf16.vlgmr.msra.gmra.mrb[0].mxu0 %v4535_v5  ;;  %v4607_v5 = vsel %vm18693_vm4, %v4597_v49, %v4606_v63 }
 0x22f   : > { %14263 = vmatpush3.bf16.msra.mxu0 %v16461_v13  ;;  %14230 = vmatprep.mubr.bf16.mxu0 %v4544_v9  ;;  %v4562_v13 = vsel %vm18693_vm4, %v4552_v14, %v4561_v17  ;;  %v4616_v9 = vsel %vm18693_vm4, %v4606_v63, %v4615_v2  ;;  %v4636_v14 = vshrl.u32 %v15691_v8, 16  ;;  %v4645_v17 = vshrl.u32 %v15693_v11, 16  ;;  %v15704_v2 = vld [vmem:[#allocation2 + $0x40] sm:$0xff]   ;;  %v15706_v8 = vld [vmem:[#allocation2 + $0x50] sm:$0xff]  }
 0x230   : > { %14264 = vmatprep.subr.bf16.mxu0 %v15677_v62  ;;  %v5186_v63 = vrot.slane %v15702_v59, 3 }
 0x231   : > { %v4638_v20 = vrot.slane %v4636_v14, 2  ;;  %v4647_v24 = vrot.slane %v4645_v17, 2  ;;  %v15708_v14 = vld [vmem:[#allocation2 + $0x60] sm:$0xff]  }
 0x232   : > { %v5198_v17 = vrot.slane %v15708_v14, 3 }
 0x233   : > { %14265 = vmatpush3.bf16.msra.mxu0 %v15677_v62  ;;  %v4629_v62 = vrot.slane %v4627_v3, 2 }
 0x234   : > { %14266 = vmatprep.subr.bf16.mxu0 %v15680_v18 }
 0x235   : > { %v4633_v16 = vor.u32 %v4632_v10, %v4629_v62  ;;  %v15707_v62 = vld [vmem:[#allocation2 + $0x58] sm:$0xff]   ;;  %v5194_v10 = vrot.slane %v15706_v8, 3 }
 0x236   : > { %14231 = vmatmul.mubr.bf16.gmra.mrb[4].mxu0 %v4553_v21  ;;  %v4641_v21 = vrot.slane %v4639_v15, 3 }
 0x237   : > { %14234 = vmatprep.mubr.bf16.mxu0 %v4562_v13  ;;  %14267 = vmatpush3.bf16.msra.mxu0 %v15680_v18  ;;  %v4648_v18 = vshll.u32 %v15693_v11, 16  ;;  %v4634_v23 = vsel %vm18693_vm4, %v4624_v12, %v4633_v16  ;;  %v5196_v11 = vrot.slane %v15707_v62, 3  ;;  %v5195_v12 = vsel %vm18692_vm5, %v5192_v6, %v5194_v10 }
 0x238   : > { %14268 = vmatprep.subr.bf16.mxu0 %v15683_v27  ;;  %v4642_v26 = vor.u32 %v4641_v21, %v4638_v20  ;;  %v15710_v20 = vld [vmem:[#allocation2 + $0x70] sm:$0xff]  }
 0x239   : > { %v4650_v13 = vrot.slane %v4648_v18, 3  ;;  %v5197_v15 = vsel %vm18692_vm5, %v5194_v10, %v5196_v11 }
 0x23a   : > { %v4643_v32 = vsel %vm18693_vm4, %v4633_v16, %v4642_v26  ;;  %v15709_v16 = vld [vmem:[#allocation2 + $0x68] sm:$0xff]  }
 0x23b   : > { %14269 = vmatpush3.bf16.msra.mxu0 %v15683_v27  ;;  %v4654_v27 = vshrl.u32 %v15694_v22, 16  ;;  %v4651_v29 = vor.u32 %v4650_v13, %v4647_v24  ;;  %v5200_v18 = vrot.slane %v15709_v16, 3  ;;  %v15711_v22 = vld [vmem:[#allocation2 + $0x78] sm:$0xff]  }
 0x23c   : > { %14270 = vmatprep.subr.bf16.mxu0 %v15686_v36  ;;  %v5204_v24 = vrot.slane %v15711_v22, 3 }
 0x23d   : > { %v4656_v33 = vrot.slane %v4654_v27, 2  ;;  %v5201_v21 = vsel %vm18692_vm5, %v5198_v17, %v5200_v18  ;;  %v15713_v27 = vld [vmem:[#allocation2 + $0x88] sm:$0xff]  }
 0x23e   : > { %14235 = vmatmul.mubr.bf16.gmra.mrb[8].mxu0 %v4571_v37  ;;  %v4665_v37 = vrot.slane %v4663_v30, 2  ;;  %v5207_v30 = vsel %vm18692_vm5, %v5204_v24, %v5206_v28 }
 0x23f   : > { %14238 = vmatprep.mubr.bf16.mxu0 %v4580_v41  ;;  %14271 = vmatpush3.bf16.msra.mxu0 %v15686_v36  ;;  %v4652_v36 = vsel %vm18693_vm4, %v4642_v26, %v4651_v29  ;;  %v4660_v39 = vor.u32 %v4659_v34, %v4656_v33  ;;  %v4675_v41 = vshll.u32 %v15697_v35, 16  ;;  %v15715_v33 = vld [vmem:[#allocation2 + $0x98] sm:$0xff]   ;;  %v5210_v34 = vrot.slane %v15714_v31, 3 }
 0x240   : > { %14272 = vmatprep.subr.bf16.mxu0 %v15689_v45  ;;  %v4669_v43 = vor.u32 %v4668_v38, %v4665_v37  ;;  %v5212_v35 = vrot.slane %v15715_v33, 3  ;;  %v15716_v37 = vld [vmem:[#allocation2 + $0xa0] ss:$0 sps:$4 sm:$0x77]  }
 0x241   : > { %v4661_v42 = vsel %vm18693_vm4, %v4651_v29, %v4660_v39  ;;  %v5208_v29 = vrot.slane %v15713_v27, 3 }
 0x242   : > { %v4670_v46 = vsel %vm18693_vm4, %v4660_v39, %v4669_v43  ;;  %v5213_v38 = vsel %vm18692_vm5, %v5210_v34, %v5212_v35  ;;  %v5214_v39 = vrot.slane %v15716_v37, 3 }
 0x243   : > { %14273 = vmatpush3.bf16.msra.mxu0 %v15689_v45  ;;  %v4677_v45 = vrot.slane %v4675_v41, 3  ;;  %v15718_v41 = vld [vmem:[%s18689_s3 + $0x8] sm:$0xff]  }
 0x244   : > { %14274 = vmatprep.subr.bf16.mxu0 %v15692_v53  ;;  %v5215_v40 = vsel %vm18692_vm5, %v5212_v35, %v5214_v39  ;;  %14316 = vmatprep.subr.bf16.mxu1 %v15718_v41 }
 0x245   : > { %v4678_v49 = vor.u32 %v4677_v45, %v4674_v44  ;;  %14317 = vmatpush3.bf16.msra.mxu1 %v15718_v41  ;;  %v6444_v44 = vld [vmem:[#allocation3 + $0x8] sm:$0x3]  ;;  %v16642_v41 = vld [vmem:[%s18689_s3 + $0x40] sm:$0xff]  }
 0x246   : > { %14239 = vmatmul.mubr.bf16.gmra.mrb[12].mxu0 %v4589_v54  ;;  %v15700_v54 = vld [vmem:[#allocation2 + $0x20] sm:$0xff]   ;;  %v6445_v45 = vsel %vm16541_vm8, 0, %v6444_v44  ;;  %18800 = vst [vmem:[#allocation10_spill] sm:$0xff] %v16642_v41 }
 0x247   : > { %14242 = vmatprep.mubr.bf16.mxu0 %v4598_v58  ;;  %14275 = vmatpush3.bf16.msra.mxu0 %v15692_v53  ;;  %v4679_v53 = vsel %vm18693_vm4, %v4669_v43, %v4678_v49  ;;  %v5182_v57 = vrot.slane %v15700_v54, 3  ;;  %v5184_v58 = vrot.slane %v15701_v56, 3  ;;  %v15719_v43 = vld [vmem:[%s18689_s3 + $0x10] sm:$0xff]   ;;  %6446 = vst [vmem:[#allocation3 + $0x8] sm:$0x3] %v6445_v45  ;;  %v6451_v49 = vsel %vm16550_vm11, 0, %v6450_v48 }
 0x248   : > { %14276 = vmatprep.subr.bf16.mxu0 %v15696_v61  ;;  %14318 = vmatprep.subr.bf16.mxu1 %v15719_v43  ;;  %6452 = vst [vmem:[#allocation3 + $0x98] sm:$0xe] %v6451_v49 }
 0x249   : > { %v5183_v52 = vsel %vm18692_vm5, %v5180_v51, %v5182_v57  ;;  %v5185_v60 = vsel %vm18692_vm5, %v5182_v57, %v5184_v58  ;;  %v5187_v1 = vsel %vm18692_vm5, %v5184_v58, %v5186_v63  ;;  %14319 = vmatpush3.bf16.msra.mxu1 %v15719_v43  ;;  %v15722_v51 = vld [vmem:[%s18689_s3 + $0x28] sm:$0xff]   ;;  %v15724_v58 = vld [vmem:[%s18689_s3 + $0x38] sm:$0xff]  }
 0x24b   : > { %14277 = vmatpush3.bf16.msra.mxu0 %v15696_v61  ;;  %v15703_v61 = vld [vmem:[#allocation2 + $0x38] sm:$0xff]  }
 0x24c   : > { %v5188_v0 = vrot.slane %v15703_v61, 3 }
 0x24e   : > { %14243 = vmatmul.mubr.bf16.gmra.mrb[16].mxu0 %v4607_v5  ;;  %v5189_v3 = vsel %vm18692_vm5, %v5186_v63, %v5188_v0  ;;  %v5190_v5 = vrot.slane %v15704_v2, 3  ;;  %v16024_v2 = vmov 0  }
 0x24f   : > { %14246 = vmatprep.mubr.bf16.mxu0 %v4616_v9  ;;  %6439 = vst [vmem:[#allocation3] sm:$0xf] %v16024_v2  ;;  %6440 = vst [vmem:[#allocation3 + $0x4] sm:$0xf] %v16024_v2 }
 0x250   : > { %v5191_v7 = vsel %vm18692_vm5, %v5188_v0, %v5190_v5  ;;  %v5193_v9 = vsel %vm18692_vm5, %v5190_v5, %v5192_v6  ;;  %6453 = vst [vmem:[#allocation3 + $0x9c] sm:$0xf] %v16024_v2  ;;  %6454 = vst [vmem:[#allocation3 + $0xa0] sm:$0xf] %v16024_v2 }
 0x256   : > { %14247 = vmatmul.mubr.bf16.gmra.mrb[20].mxu0 %v4625_v19  ;;  %v5199_v19 = vsel %vm18692_vm5, %v5196_v11, %v5198_v17  ;;  %v15725_v14 = vld [vmem:[#allocation3] sm:$0xff]  }
 0x257   : > { %14250 = vmatprep.mubr.bf16.mxu0 %v4634_v23  ;;  %v5202_v23 = vrot.slane %v15710_v20, 3  ;;  %14330 = vmatprep.mubr.bf16.mxu1 %v15725_v14 }
 0x259   : > { %v5203_v13 = vsel %vm18692_vm5, %v5200_v18, %v5202_v23  ;;  %v5205_v26 = vsel %vm18692_vm5, %v5202_v23, %v5204_v24 }
 0x25e   : > { %14251 = vmatmul.mubr.bf16.gmra.mrb[24].mxu0 %v4643_v32  ;;  %v5209_v32 = vsel %vm18692_vm5, %v5206_v28, %v5208_v29 }
 0x25f   : > { %14254 = vmatprep.mubr.bf16.mxu0 %v4652_v36  ;;  %v5211_v36 = vsel %vm18692_vm5, %v5208_v29, %v5210_v34 }
 0x266   : > { %14255 = vmatmul.mubr.bf16.gmra.mrb[28].mxu0 %v4661_v42  ;;  %v18794_v42 = vmov 0 }
 0x267   : > { %14258 = vmatprep.mubr.bf16.mxu0 %v4670_v46  ;;  %v18795_v42 = vsel %vm16541_vm8, 4294967295, %v18794_v42  ;;  %v15720_v46 = vld [vmem:[%s18689_s3 + $0x18] sm:$0xff]  }
 0x268   : > { %18796 = vst [vmem:[#allocation8_spill] sm:$0xff] %v18795_v42  ;;  %14320 = vmatprep.subr.bf16.mxu1 %v15720_v46 }
 0x269   : > { %14321 = vmatpush3.bf16.msra.mxu1 %v15720_v46 }
 0x26a   : > { %14322 = vmatprep.subr.bf16.mxu1 %v15721_v50 }
 0x26d   : > { %14323 = vmatpush3.bf16.msra.mxu1 %v15721_v50 }
 0x26e   : > { %14259 = vmatmul.mubr.bf16.gmra.mrb[32].mxu0 %v4679_v53  ;;  %v5682_v53 = vlaneseq  ;;  %14324 = vmatprep.subr.bf16.mxu1 %v15722_v51 }
 0x26f   : > { %14278 = vmatprep.mubr.bf16.mxu0 %v5181_v55  ;;  %v15723_v55 = vld [vmem:[%s18689_s3 + $0x30] sm:$0xff]  }
 0x270   : > { %v16562_v54 = vshrl.u32 %v5682_v53, 7 }
 0x271   : > { %14325 = vmatpush3.bf16.msra.mxu1 %v15722_v51 }
 0x272   : > { %v5685_v56 = vadd.s32 16, %v16562_v54  ;;  %14326 = vmatprep.subr.bf16.mxu1 %v15723_v55  ;;  %v5686_v57 = vadd.s32 24, %v16562_v54  ;;  %v5684_v63 = vadd.s32 8, %v16562_v54  ;;  %v5689_v5 = vadd.s32 48, %v16562_v54 }
 0x273   : > { %v5687_v6 = vadd.s32 32, %v16562_v54  ;;  %v5688_v8 = vadd.s32 40, %v16562_v54  ;;  %v16654_v48 = vadd.s32 72, %v16562_v54 }
 0x274   : > { %v16592_v10 = vmul.u32.u64.low 3817748708, %v5689_v5  ;;  %v16593_v11 = vmul.u32.u64.high 3817748708, %v5689_v5, %v16592_v10 }
 0x275   : > { %14327 = vmatpush3.bf16.msra.mxu1 %v15723_v55 }
 0x276   : > { %14279 = vmatmul.mubr.bf16.vlgmr.msra.gmra.mrb[0].mxu0 %v5183_v52  ;;  %v16572_v52 = vmul.u32.u64.low 3817748708, %v5685_v56  ;;  %v16573_v59 = vmul.u32.u64.high 3817748708, %v5685_v56, %v16572_v52  ;;  %14328 = vmatprep.subr.bf16.mxu1 %v15724_v58  ;;  %v5791_v27 = vshrl.u32 %v16593_v11, 4 }
 0x277   : > { %14282 = vmatprep.mubr.bf16.mxu0 %v5185_v60  ;;  %v16576_v60 = vmul.u32.u64.low 3817748708, %v16562_v54  ;;  %v16577_v61 = vmul.u32.u64.high 3817748708, %v16562_v54, %v16576_v60 }
 0x278   : > { %v5792_v37 = vmul.u32 18, %v5791_v27  ;;  %v16681_v60 = vadd.s32 96, %v16562_v54 }
 0x279   : > { %14329 = vmatpush3.bf16.msra.mxu1 %v15724_v58  ;;  %v5725_v62 = vshrl.u32 %v16577_v61, 4 }
 0x27a   : > { %14366 = vmatprep.subr.bf16.mxu1 %v16642_v41  ;;  %v16658_v49 = vsub.s32 %v5689_v5, %v5792_v37  ;;  %v16965_v37 = vadd.s32 168, %v16562_v54 }
 0x27b   : > { %v5726_v23 = vmul.u32 18, %v5725_v62 }
 0x27c   : > { %vm6121_vm3 = vcmp.ne.s32.totalorder %v16658_v49, 0  ;;  %vm6157_vm2 = vcmp.lt.s32.totalorder %v16658_v49, 0 }
 0x27d   : > { %v16613_v28 = vsub.s32 %v16562_v54, %v5726_v23  ;;  %v18818_v23 = vmov 0 }
 0x27e   : > { %14283 = vmatmul.mubr.bf16.gmra.mrb[4].mxu0 %v5187_v1  ;;  %v16580_v0 = vmul.u32.u64.low 3817748708, %v5686_v57  ;;  %v16581_v1 = vmul.u32.u64.high 3817748708, %v5686_v57, %v16580_v0 }
 0x27f   : > { %14286 = vmatprep.mubr.bf16.mxu0 %v5189_v3  ;;  %v16583_v3 = vmul.u32.u64.low 3817748708, %v5684_v63  ;;  %v16584_v4 = vmul.u32.u64.high 3817748708, %v5684_v63, %v16583_v3  ;;  %vm6115_vm14 = vcmp.ne.s32.totalorder %v16613_v28, 0  ;;  %vm6151_vm15 = vcmp.lt.s32.totalorder %v16613_v28, 0 }
 0x280   : > { %v16645_v43 = vadd.s32 18, %v16613_v28  ;;  %v16702_v3 = vadd.s32 18, %v16658_v49  ;;  %vm16711_vm1 = vmand %vm6151_vm15, %vm6115_vm14 }
 0x281   : > { %v5736_v22 = vshrl.u32 %v16584_v4, 4  ;;  %v16705_v4 = vadd.s32 104, %v16562_v54 }
 0x283   : > { %v5737_v25 = vmul.u32 18, %v5736_v22 }
 0x285   : > { %v16621_v33 = vsub.s32 %v5684_v63, %v5737_v25  ;;  %v16685_v63 = vmul.u32.u64.low 3817748708, %v16654_v48  ;;  %v16686_v0 = vmul.u32.u64.high 3817748708, %v16654_v48, %v16685_v63 }
 0x286   : > { %14287 = vmatmul.mubr.bf16.gmra.mrb[8].mxu0 %v5191_v7  ;;  %v5690_v7 = vadd.s32 56, %v16562_v54  ;;  %v16839_v63 = vadd.s32 152, %v16562_v54 }
 0x287   : > { %14290 = vmatprep.mubr.bf16.mxu0 %v5193_v9  ;;  %v5747_v9 = vshrl.u32 %v16573_v59, 4  ;;  %vm6116_vm10 = vcmp.ne.s32.totalorder %v16621_v33, 0  ;;  %vm6152_vm5 = vcmp.lt.s32.totalorder %v16621_v33, 0  ;;  %v16674_v58 = vadd.s32 18, %v16621_v33 }
 0x288   : > { %v16599_v17 = vmul.u32.u64.low 3817748708, %v5690_v7  ;;  %v16600_v18 = vmul.u32.u64.high 3817748708, %v5690_v7, %v16599_v17  ;;  %vm16739_vm7 = vmand %vm6152_vm5, %vm6116_vm10 }
 0x28a   : > { %v5802_v31 = vshrl.u32 %v16600_v18, 4  ;;  %v16759_v17 = vmul.u32.u64.low 3817748708, %v16705_v4  ;;  %v16760_v18 = vmul.u32.u64.high 3817748708, %v16705_v4, %v16759_v17 }
 0x28c   : > { %v5803_v44 = vmul.u32 18, %v5802_v31  ;;  %v18822_v31 = vmov 0 }
 0x28e   : > { %14291 = vmatmul.mubr.bf16.gmra.mrb[12].mxu0 %v5195_v12  ;;  %v5758_v12 = vshrl.u32 %v16581_v1, 4  ;;  %v16676_v52 = vsub.s32 %v5690_v7, %v5803_v44  ;;  %v16689_v1 = vadd.s32 120, %v16562_v54  ;;  %v16819_v44 = vadd.s32 144, %v16562_v54 }
 0x28f   : > { %14294 = vmatprep.mubr.bf16.mxu0 %v5197_v15  ;;  %v16596_v15 = vmul.u32.u64.low 3817748708, %v5687_v6  ;;  %v16597_v16 = vmul.u32.u64.high 3817748708, %v5687_v6, %v16596_v15 }
 0x290   : > { %v5759_v24 = vmul.u32 18, %v5758_v12  ;;  %18802 = vst [vmem:[#allocation12_spill] sm:$0xff] %v16676_v52  ;;  %vm6122_vm14 = vcmp.ne.s32.totalorder %v16676_v52, 0  ;;  %vm6158_vm15 = vcmp.lt.s32.totalorder %v16676_v52, 0  ;;  %v18812_v15 = vmov 0 }
 0x291   : > { %v5769_v29 = vshrl.u32 %v16597_v16, 4  ;;  %v16745_v12 = vmul.u32.u64.low 3817748708, %v16689_v1  ;;  %v16746_v14 = vmul.u32.u64.high 3817748708, %v16689_v1, %v16745_v12 }
 0x293   : > { %v5770_v39 = vmul.u32 18, %v5769_v29 }
 0x295   : > { %v16664_v53 = vsub.s32 %v5687_v6, %v5770_v39 }
 0x296   : > { %14295 = vmatmul.mubr.bf16.gmra.mrb[16].mxu0 %v5199_v19  ;;  %v16602_v19 = vmul.u32.u64.low 3817748708, %v5688_v8  ;;  %v16603_v20 = vmul.u32.u64.high 3817748708, %v5688_v8, %v16602_v19 }
 0x297   : > { %14298 = vmatprep.mubr.bf16.mxu0 %v5201_v21  ;;  %v5748_v21 = vmul.u32 18, %v5747_v9  ;;  %18801 = vst [vmem:[#allocation11_spill] sm:$0xff] %v16664_v53  ;;  %v16732_v9 = vmul.u32.u64.low 3817748708, %v16681_v60  ;;  %v16733_v62 = vmul.u32.u64.high 3817748708, %v16681_v60, %v16732_v9  ;;  %v18814_v19 = vmov 0 }
 0x29e   : > { %14299 = vmatmul.mubr.bf16.gmra.mrb[20].mxu0 %v5203_v13  ;;  %v16606_v13 = vsub.s32 %v5685_v56, %v5748_v21  ;;  %v16774_v21 = vadd.s32 18, %v16676_v52 }
 0x29f   : > { %14302 = vmatprep.mubr.bf16.mxu0 %v5205_v26  ;;  %v16609_v26 = vadd.s32 80, %v16562_v54 }
 0x2a0   : > { %vm6117_vm12 = vcmp.ne.s32.totalorder %v16606_v13, 0  ;;  %vm6153_vm13 = vcmp.lt.s32.totalorder %v16606_v13, 0  ;;  %18817 = vst [vmem:[#allocation15_spill] sm:$0xff] %v16774_v21 }
 0x2a1   : > { %v16624_v34 = vmul.u32.u64.low 3817748708, %v16609_v26  ;;  %v16625_v35 = vmul.u32.u64.high 3817748708, %v16609_v26, %v16624_v34  ;;  %vm16695_vm4 = vmand %vm6153_vm13, %vm6117_vm12  ;;  %vm6119_vm12 = vcmp.ne.s32.totalorder %v16664_v53, 0  ;;  %vm6155_vm13 = vcmp.lt.s32.totalorder %v16664_v53, 0 }
 0x2a2   : > { %vm16766_vm10 = vmand %vm6155_vm13, %vm6119_vm12  ;;  %v5824_v34 = vshrl.u32 %v16686_v0, 4 }
 0x2a3   : > { %v5835_v61 = vshrl.u32 %v16625_v35, 4  ;;  %v18815_v19 = vsel %vm16766_vm10, 4294967295, %v18814_v19 }
 0x2a4   : > { %v5825_v0 = vmul.u32 18, %v5824_v34  ;;  %v16859_v34 = vadd.s32 176, %v16562_v54 }
 0x2a5   : > { %v5836_v11 = vmul.u32 18, %v5835_v61  ;;  %v5857_v61 = vshrl.u32 %v16733_v62, 4 }
 0x2a6   : > { %14303 = vmatmul.mubr.bf16.gmra.mrb[24].mxu0 %v5207_v30  ;;  %v16616_v30 = vsub.s32 %v5686_v57, %v5759_v24  ;;  %v16671_v57 = vadd.s32 112, %v16562_v54 }
 0x2a7   : > { %14306 = vmatprep.mubr.bf16.mxu0 %v5209_v32  ;;  %v5780_v32 = vshrl.u32 %v16603_v20, 4  ;;  %v16771_v20 = vadd.s32 18, %v16664_v53 }
 0x2a8   : > { %vm6118_vm6 = vcmp.ne.s32.totalorder %v16616_v30, 0  ;;  %vm6154_vm9 = vcmp.lt.s32.totalorder %v16616_v30, 0  ;;  %v16650_v46 = vadd.s32 18, %v16616_v30 }
 0x2a9   : > { %v5781_v45 = vmul.u32 18, %v5780_v32  ;;  %v16718_v6 = vmul.u32.u64.low 3817748708, %v16671_v57  ;;  %v16719_v7 = vmul.u32.u64.high 3817748708, %v16671_v57, %v16718_v6  ;;  %vm16725_vm0 = vmand %vm6154_vm9, %vm6118_vm6  ;;  %18816 = vst [vmem:[#allocation14_spill] sm:$0xff] %v16771_v20  ;;  %v16807_v32 = vsub.s32 %v16609_v26, %v5836_v11 }
 0x2aa   : > { %vm16752_vm9 = vmand %vm6157_vm2, %vm6121_vm3  ;;  %v5890_v6 = vshrl.u32 %v16746_v14, 4  ;;  %v5868_v11 = vshrl.u32 %v16760_v18, 4 }
 0x2ab   : > { %v16678_v59 = vsub.s32 %v5688_v8, %v5781_v45  ;;  %v18813_v15 = vsel %vm16752_vm9, 4294967295, %v18812_v15  ;;  %vm16784_vm2 = vmand %vm6158_vm15, %vm6122_vm14  ;;  %18825 = vst [vmem:[#allocation19_spill] sm:$0xff] %v16807_v32  ;;  %vm6125_vm12 = vcmp.ne.s32.totalorder %v16807_v32, 0  ;;  %vm6161_vm13 = vcmp.lt.s32.totalorder %v16807_v32, 0 }
 0x2ac   : > { %v18819_v23 = vsel %vm16784_vm2, 4294967295, %v18818_v23  ;;  %v5891_v18 = vmul.u32 18, %v5890_v6 }
 0x2ad   : > { %18803 = vst [vmem:[#allocation13_spill] sm:$0xff] %v16678_v59  ;;  %vm6120_vm6 = vcmp.ne.s32.totalorder %v16678_v59, 0  ;;  %vm6156_vm5 = vcmp.lt.s32.totalorder %v16678_v59, 0  ;;  %18820 = vst [vmem:[#allocation16_spill] sm:$0xff] %v18819_v23  ;;  %v16789_v24 = vadd.s32 18, %v16678_v59 }
 0x2ae   : > { %14307 = vmatmul.mubr.bf16.gmra.mrb[28].mxu0 %v5211_v36  ;;  %v16629_v36 = vadd.s32 18, %v16606_v13  ;;  %vm16802_vm3 = vmand %vm6156_vm5, %vm6120_vm6 }
 0x2af   : > { %14310 = vmatprep.mubr.bf16.mxu0 %v5213_v38  ;;  %v16632_v38 = vadd.s32 64, %v16562_v54  ;;  %18821 = vst [vmem:[#allocation17_spill] sm:$0xff] %v16789_v24  ;;  %v18823_v31 = vsel %vm16802_vm3, 4294967295, %v18822_v31  ;;  %vm16918_vm5 = vmand %vm6161_vm13, %vm6125_vm12 }
 0x2b0   : > { %18824 = vst [vmem:[#allocation18_spill] sm:$0xff] %v18823_v31 }
 0x2b1   : > { %v16661_v50 = vmul.u32.u64.low 3817748708, %v16632_v38  ;;  %v16662_v51 = vmul.u32.u64.high 3817748708, %v16632_v38, %v16661_v50 }
 0x2b2   : > { %v5879_v50 = vshrl.u32 %v16719_v7, 4  ;;  %v16844_v7 = vadd.s32 136, %v16562_v54 }
 0x2b3   : > { %v5813_v16 = vshrl.u32 %v16662_v51, 4  ;;  %v16831_v51 = vadd.s32 128, %v16562_v54 }
 0x2b4   : > { %v5880_v62 = vmul.u32 18, %v5879_v50  ;;  %v16873_v50 = vadd.s32 160, %v16562_v54  ;;  %v19005_v2 = vld [vmem:[#allocation16_spill] sm:$0xff] }
 0x2b5   : > { %v5814_v39 = vmul.u32 18, %v5813_v16  ;;  %v16851_v12 = vmul.u32.u64.low 3817748708, %v16819_v44  ;;  %v16852_v16 = vmul.u32.u64.high 3817748708, %v16819_v44, %v16851_v12 }
 0x2b6   : > { %14311 = vmatmul.mubr.bf16.gmra.mrb[32].mxu0 %v5215_v40  ;;  %v16637_v40 = vadd.s32 88, %v16562_v54  ;;  %v16869_v45 = vmul.u32.u64.low 3817748708, %v16844_v7  ;;  %v16870_v12 = vmul.u32.u64.high 3817748708, %v16844_v7, %v16869_v45  ;;  %v19014_v8 = vld [vmem:[#allocation17_spill] sm:$0xff] }
 0x2b7   : > { %v16847_v9 = vsub.s32 %v16632_v38, %v5814_v39  ;;  %v16865_v38 = vmul.u32.u64.low 3817748708, %v16839_v63  ;;  %v16866_v39 = vmul.u32.u64.high 3817748708, %v16839_v63, %v16865_v38 }
 0x2b8   : > { %v16667_v55 = vmul.u32.u64.low 3817748708, %v16637_v40  ;;  %v16668_v56 = vmul.u32.u64.high 3817748708, %v16637_v40, %v16667_v55  ;;  %v16893_v38 = vsub.s32 %v16671_v57, %v5880_v62 }
 0x2b9   : > { %18826 = vst [vmem:[#allocation20_spill] sm:$0xff] %v16847_v9  ;;  %v5858_v55 = vmul.u32 18, %v5857_v61  ;;  %vm6123_vm14 = vcmp.ne.s32.totalorder %v16847_v9, 0  ;;  %v16885_v61 = vmul.u32.u64.low 3817748708, %v16859_v34  ;;  %v16886_v6 = vmul.u32.u64.high 3817748708, %v16859_v34, %v16885_v61 }
 0x2ba   : > { %v5846_v25 = vshrl.u32 %v16668_v56, 4  ;;  %v16889_v45 = vadd.s32 18, %v16847_v9  ;;  %18831 = vst [vmem:[#allocation25_spill] sm:$0xff] %v16893_v38  ;;  %vm18840_vm6 = vcmp.lt.s32.totalorder %v16847_v9, 0  ;;  %vm6165_vm13 = vcmp.lt.s32.totalorder %v16893_v38, 0 }
 0x2bb   : > { %vm16934_vm8 = vmand %vm18840_vm6, %vm6123_vm14  ;;  %vm18854_vm12 = vcmp.ne.s32.totalorder %v16893_v38, 0  ;;  %v5967_v29 = vshrl.u32 %v16886_v6, 4  ;;  %v16983_v42 = vadd.s32 18, %v16893_v38 }
 0x2bc   : > { %v5847_v56 = vmul.u32 18, %v5846_v25  ;;  %v16855_v17 = vmul.u32.u64.low 3817748708, %v16831_v51  ;;  %v16856_v25 = vmul.u32.u64.high 3817748708, %v16831_v51, %v16855_v17  ;;  %18830 = vst [vmem:[#allocation24_spill] sm:$0xff] %v16889_v45  ;;  %vm16969_vm6 = vmand %vm6165_vm13, %vm18854_vm12 }
 0x2bd   : > { %v16877_v17 = vadd.s32 18, %v16807_v32  ;;  %18858 = vst [vmem:[#allocation36_spill] sm:$0xff] %v16983_v42  ;;  %v5968_v45 = vmul.u32 18, %v5967_v29  ;;  %v17142_v42 = vadd.s32 272, %v16562_v54 }
 0x2be   : > { %v16862_v14 = vsub.s32 %v16637_v40, %v5847_v56  ;;  %v16880_v40 = vsub.s32 %v16654_v48, %v5825_v0  ;;  %v5869_v56 = vmul.u32 18, %v5868_v11  ;;  %v16896_v48 = vsub.s32 %v16681_v60, %v5858_v55 }
 0x2bf   : > { %18828 = vst [vmem:[#allocation22_spill] sm:$0xff] %v16877_v17  ;;  %v16900_v0 = vsub.s32 %v16689_v1, %v5891_v18  ;;  %v16903_v11 = vmul.u32.u64.low 3817748708, %v16873_v50  ;;  %v16904_v26 = vmul.u32.u64.high 3817748708, %v16873_v50, %v16903_v11  ;;  %v5923_v60 = vshrl.u32 %v16852_v16, 4 }
 0x2c0   : > { %18827 = vst [vmem:[#allocation21_spill] sm:$0xff] %v16862_v14  ;;  %18829 = vst [vmem:[#allocation23_spill] sm:$0xff] %v16880_v40  ;;  %v16907_v61 = vadd.s32 18, %v16862_v14  ;;  %v16911_v57 = vsub.s32 %v16705_v4, %v5869_v56  ;;  %v18836_v1 = vmov 0  ;;  %v16924_v55 = vadd.s32 18, %v16880_v40 }
 0x2c1   : > { %18832 = vst [vmem:[#allocation26_spill] sm:$0xff] %v16896_v48  ;;  %18833 = vst [vmem:[#allocation27_spill] sm:$0xff] %v16900_v0  ;;  %v18837_v1 = vsel %vm16918_vm5, 4294967295, %v18836_v1  ;;  %v5901_v62 = vshrl.u32 %v16856_v25, 4  ;;  %v16928_v4 = vadd.s32 184, %v16562_v54  ;;  %v18841_v16 = vmov 0 }
 0x2c2   : > { %18834 = vst [vmem:[#allocation28_spill] sm:$0xff] %v16907_v61  ;;  %18835 = vst [vmem:[#allocation29_spill] sm:$0xff] %v16911_v57  ;;  %v18842_v16 = vsel %vm16934_vm8, 4294967295, %v18841_v16  ;;  %v5934_v18 = vshrl.u32 %v16866_v39, 4  ;;  %vm18844_vm11 = vcmp.ne.s32.totalorder %v16862_v14, 0  ;;  %vm18845_vm3 = vcmp.lt.s32.totalorder %v16862_v14, 0 }
 0x2c3   : > { %18838 = vst [vmem:[#allocation30_spill] sm:$0xff] %v18837_v1  ;;  %18839 = vst [vmem:[#allocation31_spill] sm:$0xff] %v16924_v55  ;;  %v18846_v25 = vmov 0  ;;  %vm6163_vm14 = vcmp.lt.s32.totalorder %v16896_v48, 0  ;;  %v5912_v56 = vshrl.u32 %v16870_v12, 4  ;;  %vm18849_vm15 = vcmp.ne.s32.totalorder %v16880_v40, 0 }
 0x2c4   : > { %18843 = vst [vmem:[#allocation32_spill] sm:$0xff] %v18842_v16  ;;  %vm16946_vm2 = vmand %vm18845_vm3, %vm18844_vm11  ;;  %vm18850_vm10 = vcmp.lt.s32.totalorder %v16880_v40, 0  ;;  %v18851_v39 = vmov 0  ;;  %vm6128_vm11 = vcmp.ne.s32.totalorder %v16911_v57, 0  ;;  %v5924_v11 = vmul.u32 18, %v5923_v60 }
 0x2c5   : > { %v18847_v25 = vsel %vm16946_vm2, 4294967295, %v18846_v25  ;;  %vm16958_vm9 = vmand %vm18850_vm10, %vm18849_vm15  ;;  %v18855_v12 = vmov 0  ;;  %v5902_v35 = vmul.u32 18, %v5901_v62  ;;  %vm18859_vm10 = vcmp.ne.s32.totalorder %v16896_v48, 0 }
 0x2c6   : > { %18848 = vst [vmem:[#allocation33_spill] sm:$0xff] %v18847_v25  ;;  %v18852_v39 = vsel %vm16958_vm9, 4294967295, %v18851_v39  ;;  %v18856_v12 = vsel %vm16969_vm6, 4294967295, %v18855_v12  ;;  %v16975_v27 = vmul.u32.u64.low 3817748708, %v16928_v4  ;;  %v16976_v22 = vmul.u32.u64.high 3817748708, %v16928_v4, %v16975_v27  ;;  %vm16989_vm15 = vmand %vm6163_vm14, %vm18859_vm10 }
 0x2c7   : > { %18853 = vst [vmem:[#allocation34_spill] sm:$0xff] %v18852_v39  ;;  %18857 = vst [vmem:[#allocation35_spill] sm:$0xff] %v18856_v12  ;;  %v18860_v62 = vmov 0  ;;  %v16994_v6 = vadd.s32 18, %v16896_v48  ;;  %v5935_v27 = vmul.u32 18, %v5934_v18  ;;  %vm18864_vm12 = vcmp.ne.s32.totalorder %v16900_v0, 0 }
 0x2c8   : > { %v18861_v62 = vsel %vm16989_vm15, 4294967295, %v18860_v62  ;;  %vm18865_vm13 = vcmp.lt.s32.totalorder %v16900_v0, 0  ;;  %v18866_v60 = vmov 0  ;;  %v17005_v41 = vadd.s32 18, %v16900_v0 }
 0x2c9   : > { %18862 = vst [vmem:[#allocation37_spill] sm:$0xff] %v18861_v62  ;;  %18863 = vst [vmem:[#allocation38_spill] sm:$0xff] %v16994_v6  ;;  %v17008_v47 = vadd.s32 18, %v16911_v57  ;;  %v5913_v32 = vmul.u32 18, %v5912_v56  ;;  %v5945_v17 = vshrl.u32 %v16904_v26, 4  ;;  %vm18871_vm14 = vcmp.lt.s32.totalorder %v16911_v57, 0 }
 0x2ca   : > { %vm17000_vm3 = vmand %vm18865_vm13, %vm18864_vm12  ;;  %18869 = vst [vmem:[#allocation40_spill] sm:$0xff] %v17005_v41  ;;  %v18872_v1 = vmov 0  ;;  %v17024_v59 = vsub.s32 %v16819_v44, %v5924_v11  ;;  %v17027_v56 = vmul.u32.u64.low 3817748708, %v16965_v37  ;;  %v17028_v24 = vmul.u32.u64.high 3817748708, %v16965_v37, %v17027_v56 }
 0x2cb   : > { %v18867_v60 = vsel %vm17000_vm3, 4294967295, %v18866_v60  ;;  %18870 = vst [vmem:[#allocation41_spill] sm:$0xff] %v17008_v47  ;;  %vm17019_vm10 = vmand %vm18871_vm14, %vm6128_vm11  ;;  %v17039_v9 = vsub.s32 %v16831_v51, %v5902_v35  ;;  %v17050_v56 = vsub.s32 %v16839_v63, %v5935_v27  ;;  %v17053_v26 = vadd.s32 208, %v16562_v54 }
 0x2cc   : > { %18868 = vst [vmem:[#allocation39_spill] sm:$0xff] %v18867_v60  ;;  %v18873_v1 = vsel %vm17019_vm10, 4294967295, %v18872_v1  ;;  %v17064_v51 = vsub.s32 %v16844_v7, %v5913_v32  ;;  %v5946_v11 = vmul.u32 18, %v5945_v17  ;;  %v17069_v63 = vadd.s32 18, %v17024_v59 }
 0x2cd   : > { %18874 = vst [vmem:[#allocation42_spill] sm:$0xff] %v18873_v1  ;;  %18875 = vst [vmem:[#allocation43_spill] sm:$0xff] %v17039_v9  ;;  %v17072_v27 = vadd.s32 192, %v16562_v54  ;;  %v17077_v35 = vadd.s32 18, %v17039_v9  ;;  %v17080_v32 = vsub.s32 %v16859_v34, %v5968_v45  ;;  %v5978_v7 = vshrl.u32 %v16976_v22, 4 }
 0x2ce   : > { %18876 = vst [vmem:[#allocation44_spill] sm:$0xff] %v17064_v51  ;;  %v17086_v17 = vadd.s32 18, %v17050_v56  ;;  %v17089_v29 = vmul.u32.u64.low 3817748708, %v17053_v26  ;;  %v17090_v44 = vmul.u32.u64.high 3817748708, %v17053_v26, %v17089_v29  ;;  %v17093_v18 = vadd.s32 216, %v16562_v54 }
 0x2cf   : > { %18877 = vst [vmem:[#allocation45_spill] sm:$0xff] %v17077_v35  ;;  %18878 = vst [vmem:[#allocation46_spill] sm:$0xff] %v17080_v32  ;;  %v17098_v22 = vadd.s32 18, %v17064_v51  ;;  %v17101_v34 = vsub.s32 %v16873_v50, %v5946_v11  ;;  %v17104_v45 = vadd.s32 200, %v16562_v54  ;;  %v5956_v57 = vshrl.u32 %v17028_v24, 4 }
 0x2d0   : > { %v17108_v29 = vmul.u32.u64.low 3817748708, %v17072_v27  ;;  %v17109_v47 = vmul.u32.u64.high 3817748708, %v17072_v27, %v17108_v29  ;;  %v17112_v1 = vadd.s32 240, %v16562_v54  ;;  %v5979_v0 = vmul.u32 18, %v5978_v7 }
 0x2d1   : > { %v17117_v50 = vadd.s32 224, %v16562_v54  ;;  %v17120_v11 = vadd.s32 18, %v17080_v32  ;;  %v17123_v24 = vmul.u32.u64.low 3817748708, %v17093_v18  ;;  %v17124_v41 = vmul.u32.u64.high 3817748708, %v17093_v18, %v17123_v24 }
 0x2d2   : > { %v17127_v29 = vadd.s32 248, %v16562_v54  ;;  %v17131_v60 = vmul.u32.u64.low 3817748708, %v17104_v45  ;;  %v17132_v48 = vmul.u32.u64.high 3817748708, %v17104_v45, %v17131_v60  ;;  %v17135_v7 = vadd.s32 232, %v16562_v54 }
 0x2d3   : > { %18879 = vst [vmem:[#allocation47_spill] sm:$0xff] %v17120_v11  ;;  %v5957_v6 = vmul.u32 18, %v5956_v57  ;;  %v17138_v62 = vmul.u32.u64.low 3817748708, %v17112_v1  ;;  %v17139_v38 = vmul.u32.u64.high 3817748708, %v17112_v1, %v17138_v62  ;;  %v17145_v24 = vsub.s32 %v16928_v4, %v5979_v0 }
 0x2d4   : > { %v17148_v12 = vmul.u32.u64.low 3817748708, %v17117_v50  ;;  %v17149_v40 = vmul.u32.u64.high 3817748708, %v17117_v50, %v17148_v12  ;;  %v17152_v60 = vadd.s32 256, %v16562_v54  ;;  %v6011_v55 = vshrl.u32 %v17090_v44, 4 }
 0x2d5   : > { %v17156_v57 = vmul.u32.u64.low 3817748708, %v17127_v29  ;;  %v17157_v39 = vmul.u32.u64.high 3817748708, %v17127_v29, %v17156_v57  ;;  %v17160_v62 = vadd.s32 280, %v16562_v54  ;;  %vm18880_vm11 = vcmp.ne.s32.totalorder %v17024_v59, 0 }
 0x2d6   : > { %vm18881_vm14 = vcmp.lt.s32.totalorder %v17024_v59, 0  ;;  %v18882_v0 = vmov 0  ;;  %v17172_v4 = vmul.u32.u64.low 3817748708, %v17135_v7  ;;  %v17173_v12 = vmul.u32.u64.high 3817748708, %v17135_v7, %v17172_v4 }
 0x2d7   : > { %vm17166_vm13 = vmand %vm18881_vm14, %vm18880_vm11  ;;  %v17176_v44 = vadd.s32 264, %v16562_v54  ;;  %vm18884_vm10 = vcmp.ne.s32.totalorder %v17039_v9, 0  ;;  %vm18885_vm3 = vcmp.lt.s32.totalorder %v17039_v9, 0  ;;  %v18886_v57 = vmov 0 }
 0x2d8   : > { %v18883_v0 = vsel %vm17166_vm13, 4294967295, %v18882_v0  ;;  %vm17182_vm15 = vmand %vm18885_vm3, %vm18884_vm10  ;;  %v17187_v14 = vadd.s32 18, %v17101_v34  ;;  %v5989_v61 = vshrl.u32 %v17109_v47, 4  ;;  %vm18888_vm11 = vcmp.ne.s32.totalorder %v17050_v56, 0 }
 0x2d9   : > { %v18887_v57 = vsel %vm17182_vm15, 4294967295, %v18886_v57  ;;  %v17191_v25 = vmul.u32.u64.low 3817748708, %v17142_v42  ;;  %v17192_v16 = vmul.u32.u64.high 3817748708, %v17142_v42, %v17191_v25  ;;  %vm18889_vm14 = vcmp.lt.s32.totalorder %v17050_v56, 0 }
 0x2da   : > { %vm17198_vm12 = vmand %vm18889_vm14, %vm18888_vm11  ;;  %v18890_v54 = vmov 0  ;;  %v17204_v4 = vsub.s32 %v16965_v37, %v5957_v6  ;;  %v17207_v31 = vmul.u32.u64.low 3817748708, %v17152_v60  ;;  %v17208_v47 = vmul.u32.u64.high 3817748708, %v17152_v60, %v17207_v31 }
 0x2db   : > { %v18891_v54 = vsel %vm17198_vm12, 4294967295, %v18890_v54  ;;  %vm18892_vm10 = vcmp.ne.s32.totalorder %v17064_v51, 0  ;;  %vm18893_vm6 = vcmp.lt.s32.totalorder %v17064_v51, 0  ;;  %v18894_v25 = vmov 0 }
 0x2dc   : > { %vm17214_vm9 = vmand %vm18893_vm6, %vm18892_vm10  ;;  %v6012_v52 = vmul.u32 18, %v6011_v55  ;;  %v6022_v21 = vshrl.u32 %v17124_v41, 4  ;;  %v17220_v23 = vmul.u32.u64.low 3817748708, %v17160_v62  ;;  %v17221_v53 = vmul.u32.u64.high 3817748708, %v17160_v62, %v17220_v23 }
 0x2dd   : > { %v18895_v25 = vsel %vm17214_vm9, 4294967295, %v18894_v25  ;;  %vm18896_vm11 = vcmp.ne.s32.totalorder %v17080_v32, 0  ;;  %vm18897_vm14 = vcmp.lt.s32.totalorder %v17080_v32, 0  ;;  %v18898_v31 = vmov 0 }
 0x2de   : > { %vm17227_vm3 = vmand %vm18897_vm14, %vm18896_vm11  ;;  %vm6174_vm6 = vcmp.lt.s32.totalorder %v17145_v24, 0  ;;  %v6000_v37 = vshrl.u32 %v17132_v48, 4  ;;  %v17234_v55 = vmul.u32.u64.low 3817748708, %v17176_v44  ;;  %v17235_v6 = vmul.u32.u64.high 3817748708, %v17176_v44, %v17234_v55 }
 0x2df   : > { %v18899_v31 = vsel %vm17227_vm3, 4294967295, %v18898_v31  ;;  %vm18900_vm10 = vcmp.ne.s32.totalorder %v17101_v34, 0  ;;  %vm18901_vm11 = vcmp.lt.s32.totalorder %v17101_v34, 0  ;;  %v18902_v48 = vmov 0 }
 0x2e0   : > { %vm17249_vm14 = vmand %vm18901_vm11, %vm18900_vm10  ;;  %v5990_v20 = vmul.u32 18, %v5989_v61  ;;  %v6055_v55 = vshrl.u32 %v17139_v38, 4  ;;  %v17263_v9 = vadd.s32 18, %v17145_v24  ;;  %v6033_v35 = vshrl.u32 %v17149_v40, 4 }
 0x2e1   : > { %v18903_v48 = vsel %vm17249_vm14, 4294967295, %v18902_v48  ;;  %vm18904_vm10 = vcmp.ne.s32.totalorder %v17145_v24, 0  ;;  %v18905_v61 = vmov 0  ;;  %v17279_v23 = vsub.s32 %v17053_v26, %v6012_v52 }
 0x2e2   : > { %vm17274_vm11 = vmand %vm6174_vm6, %vm18904_vm10  ;;  %v6023_v41 = vmul.u32 18, %v6022_v21  ;;  %v6066_v51 = vshrl.u32 %v17157_v39, 4  ;;  %v6001_v38 = vmul.u32 18, %v6000_v37  ;;  %v6044_v32 = vshrl.u32 %v17173_v12, 4 }
 0x2e3   : > { %v18906_v61 = vsel %vm17274_vm11, 4294967295, %v18905_v61  ;;  %v17290_v11 = vsub.s32 %v17072_v27, %v5990_v20  ;;  %v6056_v52 = vmul.u32 18, %v6055_v55  ;;  %v6099_v21 = vshrl.u32 %v17192_v16, 4 }
 0x2e4   : > { %v17298_v26 = vadd.s32 18, %v17204_v4  ;;  %v6034_v40 = vmul.u32 18, %v6033_v35  ;;  %v6077_v37 = vshrl.u32 %v17208_v47, 4  ;;  %v17303_v12 = vsub.s32 %v17093_v18, %v6023_v41 }
 0x2e5   : > { %v6067_v20 = vmul.u32 18, %v6066_v51  ;;  %v6110_v27 = vshrl.u32 %v17221_v53, 4  ;;  %v17308_v16 = vsub.s32 %v17104_v45, %v6001_v38  ;;  %v6045_v55 = vmul.u32 18, %v6044_v32 }
 0x2e6   : > { %18907 = vst [vmem:[#allocation48_spill] sm:$0xff] %v17303_v12  ;;  %v6088_v39 = vshrl.u32 %v17235_v6, 4  ;;  %v17312_v35 = vadd.s32 18, %v17279_v23  ;;  %v17316_v47 = vsub.s32 %v17112_v1, %v6056_v52  ;;  %v6100_v18 = vmul.u32 18, %v6099_v21 }
 0x2e7   : > { %vm18909_vm10 = vcmp.ne.s32.totalorder %v17204_v4, 0  ;;  %vm18910_vm11 = vcmp.lt.s32.totalorder %v17204_v4, 0  ;;  %v18911_v53 = vmov 0  ;;  %v17328_v51 = vadd.s32 18, %v17290_v11 }
 0x2e8   : > { %18908 = vst [vmem:[#allocation49_spill] sm:$0xff] %v17316_v47  ;;  %vm17322_vm6 = vmand %vm18910_vm11, %vm18909_vm10  ;;  %v17331_v32 = vsub.s32 %v17117_v50, %v6034_v40  ;;  %v6078_v45 = vmul.u32 18, %v6077_v37  ;;  %v17336_v1 = vsub.s32 %v17127_v29, %v6067_v20  ;;  %v6111_v6 = vmul.u32 18, %v6110_v27 }
 0x2e9   : > { %v18912_v53 = vsel %vm17322_vm6, 4294967295, %v18911_v53  ;;  %vm18915_vm11 = vcmp.ne.s32.totalorder %v17279_v23, 0  ;;  %vm18916_vm10 = vcmp.lt.s32.totalorder %v17279_v23, 0  ;;  %v18917_v41 = vmov 0 }
 0x2ea   : > { %18913 = vst [vmem:[#allocation50_spill] sm:$0xff] %v17331_v32  ;;  %18914 = vst [vmem:[#allocation51_spill] sm:$0xff] %v17336_v1  ;;  %v17349_v50 = vsub.s32 %v17135_v7, %v6045_v55  ;;  %v6089_v38 = vmul.u32 18, %v6088_v39  ;;  %v18920_v29 = vsel %vm16695_vm4, %v16629_v36, %v16606_v13  ;;  %v18925_v7 = vmov 0 }
 0x2eb   : > { %vm17342_vm14 = vmand %vm18916_vm10, %vm18915_vm11  ;;  %vm17356_vm9 = vcmp.lt.s32.totalorder %v18920_v29, 16  ;;  %vm18923_vm11 = vcmp.ne.s32.totalorder %v17290_v11, 0  ;;  %vm18924_vm10 = vcmp.lt.s32.totalorder %v17290_v11, 0  ;;  %v17375_v13 = vsub.s32 %v17142_v42, %v6100_v18 }
 0x2ec   : > { %v18918_v41 = vsel %vm17342_vm14, 4294967295, %v18917_v41  ;;  %18919 = vst [vmem:[#allocation52_spill] sm:$0xff] %v17349_v50  ;;  %vm17368_vm15 = vmand %vm18924_vm10, %vm18923_vm11  ;;  %v18928_v36 = vsel %vm16711_vm1, %v16645_v43, %v16613_v28  ;;  %vm18931_vm11 = vcmp.ne.s32.totalorder %v17303_v12, 0  ;;  %vm18932_vm10 = vcmp.lt.s32.totalorder %v17303_v12, 0 }
 0x2ed   : > { %v18926_v7 = vsel %vm17368_vm15, 4294967295, %v18925_v7  ;;  %18927 = vst [vmem:[#allocation53_spill] sm:$0xff] %v17375_v13  ;;  %vm17382_vm3 = vcmp.lt.s32.totalorder %v18928_v36, 16  ;;  %vm17390_vm6 = vmand %vm18932_vm10, %vm18931_vm11  ;;  %v18933_v21 = vmov 0  ;;  %v17395_v42 = vadd.s32 18, %v17303_v12 }
 0x2ee   : > { %v18934_v21 = vsel %vm17390_vm6, 4294967295, %v18933_v21  ;;  %v17400_v28 = vsub.s32 %v17152_v60, %v6078_v45  ;;  %v18937_v43 = vsel %vm16725_vm0, %v16650_v46, %v16616_v30  ;;  %vm18940_vm11 = vcmp.ne.s32.totalorder %v17308_v16, 0 }
 0x2ef   : > { %18935 = vst [vmem:[#allocation54_spill] sm:$0xff] %v17395_v42  ;;  %vm17407_vm1 = vcmp.lt.s32.totalorder %v18937_v43, 16  ;;  %vm18941_vm10 = vcmp.lt.s32.totalorder %v17308_v16, 0  ;;  %v18942_v60 = vmov 0  ;;  %v17426_v30 = vsub.s32 %v17160_v62, %v6111_v6 }
 0x2f0   : > { %18936 = vst [vmem:[#allocation55_spill] sm:$0xff] %v17400_v28  ;;  %vm17419_vm12 = vmand %vm18941_vm10, %vm18940_vm11  ;;  %v18946_v46 = vsel %vm16739_vm7, %v16674_v58, %v16621_v33  ;;  %vm18949_vm11 = vcmp.ne.s32.totalorder %v17316_v47, 0  ;;  %vm18950_vm10 = vcmp.lt.s32.totalorder %v17316_v47, 0  ;;  %v18951_v62 = vmov 0  ;;  %v17457_v58 = vld [vmem:[%s18688_s2] ss:$0 sm:$0xff] }
 0x2f1   : > { %v18943_v60 = vsel %vm17419_vm12, 4294967295, %v18942_v60  ;;  %18945 = vst [vmem:[#allocation57_spill] sm:$0xff] %v17426_v30  ;;  %vm17433_vm14 = vcmp.lt.s32.totalorder %v18946_v46, 16  ;;  %vm17445_vm0 = vmand %vm18950_vm10, %vm18949_vm11  ;;  %v17452_v33 = vsub.s32 %v17176_v44, %v6089_v38  ;;  %v17460_v10 = vadd.s32 18, %v17308_v16 }
 0x2f2   : > { %18944 = vst [vmem:[#allocation56_spill] sm:$0xff] %v18943_v60  ;;  %v18952_v62 = vsel %vm17445_vm0, 4294967295, %v18951_v62  ;;  %v17463_v20 = vadd.s32 18, %v17316_v47  ;;  %vm18956_vm11 = vcmp.ne.s32.totalorder %v17331_v32, 0  ;;  %vm18957_vm10 = vcmp.lt.s32.totalorder %v17331_v32, 0 }
 0x2f3   : > { %18953 = vst [vmem:[#allocation58_spill] sm:$0xff] %v18952_v62  ;;  %18954 = vst [vmem:[#allocation59_spill] sm:$0xff] %v17452_v33  ;;  %vm6185_vm15 = vcmp.lt.s32.totalorder %v17375_v13, 0  ;;  %v17480_v55 = vadd.s32 18, %v17331_v32  ;;  %vm18961_vm13 = vcmp.ne.s32.totalorder %v17336_v1, 0  ;;  %vm18962_vm2 = vcmp.lt.s32.totalorder %v17336_v1, 0 }
 0x2f4   : > { %18955 = vst [vmem:[#allocation60_spill] sm:$0xff] %v17463_v20  ;;  %vm17469_vm4 = vmand %vm18957_vm10, %vm18956_vm11  ;;  %v18963_v18 = vmov 0  ;;  %v17493_v6 = vadd.s32 18, %v17336_v1  ;;  %vm18967_vm6 = vcmp.ne.s32.totalorder %v17349_v50, 0  ;;  %vm18968_vm8 = vcmp.lt.s32.totalorder %v17349_v50, 0 }
 0x2f5   : > { %18960 = vst [vmem:[#allocation61_spill] sm:$0xff] %v17480_v55  ;;  %vm17486_vm11 = vmand %vm18962_vm2, %vm18961_vm13  ;;  %v18969_v38 = vmov 0  ;;  %v17504_v29 = vadd.s32 18, %v17349_v50  ;;  %vm6186_vm13 = vcmp.lt.s32.totalorder %v17426_v30, 0  ;;  %vm18973_vm7 = vcmp.ne.s32.totalorder %v17375_v13, 0  ;;  %v19001_v50 = vld [vmem:[#allocation11_spill] sm:$0xff] }
 0x2f6   : > { %v18964_v18 = vsel %vm17486_vm11, 4294967295, %v18963_v18  ;;  %18966 = vst [vmem:[#allocation63_spill] sm:$0xff] %v17493_v6  ;;  %vm17499_vm5 = vmand %vm18968_vm8, %vm18967_vm6  ;;  %v18974_v46 = vmov 0  ;;  %v17516_v44 = vadd.s32 18, %v17375_v13  ;;  %v18980_v12 = vmov 0 }
 0x2f7   : > { %18965 = vst [vmem:[#allocation62_spill] sm:$0xff] %v18964_v18  ;;  %v18970_v38 = vsel %vm17499_vm5, 4294967295, %v18969_v38  ;;  %18972 = vst [vmem:[#allocation65_spill] sm:$0xff] %v17504_v29  ;;  %vm18984_vm2 = vnez %v18813_v15  ;;  %v18989_v20 = vmov 0  ;;  %v17562_v15 = vadd.s32 18, %v17452_v33 }
 0x2f8   : > { %18971 = vst [vmem:[#allocation64_spill] sm:$0xff] %v18970_v38  ;;  %vm17511_vm10 = vmand %vm6185_vm15, %vm18973_vm7  ;;  %vm18978_vm15 = vcmp.ne.s32.totalorder %v17400_v28, 0  ;;  %vm18979_vm7 = vcmp.lt.s32.totalorder %v17400_v28, 0  ;;  %v18985_v52 = vsel %vm18984_vm2, %v16702_v3, %v16658_v49  ;;  %vm18994_vm2 = vcmp.ne.s32.totalorder %v17452_v33, 0  ;;  %v19000_v3 = vld [vmem:[#allocation14_spill] sm:$0xff]  ;;  %v19032_v38 = vld [vmem:[#allocation32_spill] sm:$0xff] }
 0x2f9   : > { %v18975_v46 = vsel %vm17511_vm10, 4294967295, %v18974_v46  ;;  %18977 = vst [vmem:[#allocation67_spill] sm:$0xff] %v17516_v44  ;;  %vm17533_vm8 = vmand %vm18979_vm7, %vm18978_vm15  ;;  %vm17546_vm6 = vcmp.lt.s32.totalorder %v18985_v52, 16  ;;  %vm18988_vm15 = vcmp.ne.s32.totalorder %v17426_v30, 0  ;;  %v18996_v62 = vmov 0 }
 0x2fa   : > { %18976 = vst [vmem:[#allocation66_spill] sm:$0xff] %v18975_v46  ;;  %v18981_v12 = vsel %vm17533_vm8, 4294967295, %v18980_v12  ;;  %vm17554_vm7 = vmand %vm6186_vm13, %vm18988_vm15  ;;  %vm18995_vm13 = vcmp.lt.s32.totalorder %v17452_v33, 0 }
 0x2fb   : > { %18982 = vst [vmem:[#allocation68_spill] sm:$0xff] %v18981_v12  ;;  %v18990_v20 = vsel %vm17554_vm7, 4294967295, %v18989_v20  ;;  %18993 = vst [vmem:[#allocation72_spill] sm:$0xff] %v17562_v15  ;;  %v19012_v15 = vld [vmem:[#allocation18_spill] sm:$0xff] }
 0x2fc   : > { %18991 = vst [vmem:[#allocation70_spill] sm:$0xff] %v18990_v20  ;;  %vm17577_vm15 = vmand %vm18995_vm13, %vm18994_vm2 }
 0x2fd   : > { %v18997_v62 = vsel %vm17577_vm15, 4294967295, %v18996_v62  ;;  %vm19026_vm15 = vsmask.f32 5392 }
 0x2fe   : > { %18998 = vst [vmem:[#allocation73_spill] sm:$0xff] %v18997_v62 }
 0x349   : > { %v14280_v45 = vpop.f32.mrb[0].mxu0 }
 0x34a   : > { %v5612_v36 = vadd.f32 %v14280_v45, %v17457_v58  ;;  %v5316_v43 = vpop.f32.mrb[1].mxu0 }
 0x34b   : > { %v5610_v37 = vadd.f32 %v17457_v58, %v5316_v43  ;;  %v14281_v39 = vpop.f32.mrb[2].mxu0  ;;  %v17538_v43 = vadd.s32 18, %v17400_v28 }
 0x34c   : > { %v5648_v42 = vmax.f32 %v5612_v36, 0.0  ;;  %v5613_v60 = vadd.f32 %v14281_v39, %v17457_v58  ;;  %v5319_v45 = vpop.f32.mrb[3].mxu0  ;;  %v17559_v39 = vadd.s32 18, %v17426_v30 }
 0x34d   : > { %18983 = vst [vmem:[#allocation69_spill] sm:$0xff] %v17538_v43  ;;  %v5646_v36 = vmax.f32 %v5610_v37, 0.0  ;;  %v5611_v49 = vadd.f32 %v17457_v58, %v5319_v45 }
 0x34e   : > { %18992 = vst [vmem:[#allocation71_spill] sm:$0xff] %v17559_v39  ;;  %v6405_v37 = vsel %vm17356_vm9, %v5648_v42, 0.0  ;;  %v5649_v45 = vmax.f32 %v5613_v60, 0.0  ;;  %vm18999_vm9 = vnez %v18815_v19 }
 0x34f   : > { %v13219_v1 = vpack.c.bf16 %v6405_v37, %v6405_v37  ;;  %v6403_v6 = vsel %vm17382_vm3, %v5646_v36, 0.0  ;;  %v5647_v18 = vmax.f32 %v5611_v49, 0.0  ;;  %v19002_v46 = vsel %vm18999_vm9, %v19000_v3, %v19001_v50  ;;  %v19007_v36 = vld [vmem:[#allocation15_spill] sm:$0xff]  ;;  %v19008_v49 = vld [vmem:[#allocation12_spill] sm:$0xff] }
 0x350   : > { %v13217_v42 = vpack.c.bf16 %v6403_v6, %v6403_v6  ;;  %v6406_v60 = vsel %vm17407_vm1, %v5649_v45, 0.0  ;;  %vm17604_vm2 = vcmp.lt.s32.totalorder %v19002_v46, 16  ;;  %vm19006_vm3 = vnez %v19005_v2 }
 0x351   : > { %v19009_v52 = vsel %vm19006_vm3, %v19007_v36, %v19008_v49  ;;  %v6587_v5 = vshrl.u32 %v13219_v1, 16  ;;  %v6590_v6 = vshll.u32 %v13219_v1, 16  ;;  %v13220_v46 = vpack.c.bf16 %v6406_v60, %v6406_v60 }
 0x352   : > { %vm17613_vm13 = vcmp.lt.s32.totalorder %v19009_v52, 16  ;;  %v6404_v3 = vsel %vm17433_vm14, %v5647_v18, 0.0  ;;  %v14284_v52 = vpop.f32.mrb[4].mxu0  ;;  %v6568_v45 = vshrl.u32 %v13217_v42, 16  ;;  %v6571_v2 = vshll.u32 %v13217_v42, 16  ;;  %v19015_v18 = vld [vmem:[#allocation13_spill] sm:$0xff] }
 0x353   : > { %v13218_v36 = vpack.c.bf16 %v6404_v3, %v6404_v3  ;;  %v5616_v49 = vadd.f32 %v14284_v52, %v17457_v58  ;;  %v5332_v28 = vpop.f32.mrb[5].mxu0  ;;  %v6589_v20 = vrot.slane %v6587_v5, 6  ;;  %v6592_v19 = vrot.slane %v6590_v6, 7  ;;  %v19019_v3 = vld [vmem:[#allocation30_spill] sm:$0xff]  ;;  %v19022_v6 = vld [vmem:[#allocation19_spill] sm:$0xff] }
 0x354   : > { %v6597_v30 = vshrl.u32 %v13220_v46, 16  ;;  %v6600_v39 = vshll.u32 %v13220_v46, 16  ;;  %v14285_v43 = vpop.f32.mrb[6].mxu0  ;;  %v6570_v62 = vrot.slane %v6568_v45, 6  ;;  %v6573_v50 = vrot.slane %v6571_v2, 7  ;;  %v19021_v5 = vld [vmem:[#allocation22_spill] sm:$0xff] }
 0x355   : > { %v6577_v33 = vshrl.u32 %v13218_v36, 16  ;;  %v6580_v1 = vshll.u32 %v13218_v36, 16  ;;  %v5335_v60 = vpop.f32.mrb[7].mxu0  ;;  %vm19013_vm1 = vnez %v19012_v15  ;;  %vm19020_vm9 = vnez %v19019_v3  ;;  %v6963_v2 = vld [vmem:[#allocation3 + $0x8] sm:$0xe] }
 0x356   : > { %v19016_v12 = vsel %vm19013_vm1, %v19014_v8, %v19015_v18  ;;  %v19023_v46 = vsel %vm19020_vm9, %v19021_v5, %v19022_v6  ;;  %v6593_v45 = vor.u32 %v6592_v19, %v6589_v20  ;;  %v6599_v36 = vrot.slane %v6597_v30, 6  ;;  %v19030_v19 = vld [vmem:[#allocation9_spill] sm:$0xff] }
 0x357   : > { %vm17633_vm14 = vcmp.lt.s32.totalorder %v19016_v12, 16  ;;  %vm17642_vm3 = vcmp.lt.s32.totalorder %v19023_v46, 16  ;;  %v6602_v15 = vrot.slane %v6600_v39, 7  ;;  %v5652_v13 = vmax.f32 %v5616_v49, 0.0 }
 0x358   : > { %vm19027_vm1 = vsmask.f32 1280  ;;  %v6574_v8 = vor.u32 %v6573_v50, %v6570_v62  ;;  %v6579_v18 = vrot.slane %v6577_v33, 6  ;;  %v6582_v3 = vrot.slane %v6580_v1, 7  ;;  %v19034_v62 = vld [vmem:[#allocation24_spill] sm:$0xff] }
 0x359   : > { %vm17648_vm7 = vmor %vm19027_vm1, %vm19026_vm15  ;;  %v5614_v5 = vadd.f32 %v17457_v58, %v5332_v28  ;;  %v6595_v6 = vrot.slane %v6593_v45, 4  ;;  %v17653_v46 = vor.u32 %v6602_v15, %v6599_v36  ;;  %v6409_v20 = vsel %vm17546_vm6, %v5652_v13, 0.0  ;;  %v19035_v33 = vld [vmem:[#allocation20_spill] sm:$0xff] }
 0x35a   : > { %v5617_v30 = vadd.f32 %v14285_v43, %v17457_v58  ;;  %v6575_v39 = vrot.slane %v6574_v8, 4  ;;  %vm19031_vm9 = vnez %v19030_v19  ;;  %v6583_v44 = vor.u32 %v6582_v3, %v6579_v18  ;;  %v19041_v19 = vld [vmem:[#allocation28_spill] sm:$0xff] }
 0x35b   : > { %v6964_v49 = vsel %vm19031_vm9, %v6574_v8, %v6963_v2  ;;  %v13223_v29 = vpack.c.bf16 %v6409_v20, %v6409_v20  ;;  %vm19033_vm15 = vnez %v19032_v38  ;;  %v6604_v47 = vsel %vm17648_vm7, %v6595_v6, %v17653_v46  ;;  %v14288_v2 = vpop.f32.mrb[8].mxu0 }
 0x35c   : > { %v19036_v50 = vsel %vm19033_vm15, %v19034_v62, %v19035_v33  ;;  %6965 = vst [vmem:[#allocation3 + $0x8] sm:$0xe] %v6964_v49  ;;  %v6605_v13 = vrot.slane %v17653_v46, 4  ;;  %v5650_v43 = vmax.f32 %v5614_v5, 0.0  ;;  %v5653_v1 = vmax.f32 %v5617_v30, 0.0  ;;  %v5348_v18 = vpop.f32.mrb[9].mxu0 }
 0x35d   : > { %vm17665_vm1 = vcmp.lt.s32.totalorder %v19036_v50, 16  ;;  %6968 = vst [vmem:[#allocation3 + $0x14] sm:$0xf] %v6604_v47  ;;  %v6584_v38 = vsel %vm17648_vm7, %v6575_v39, %v6583_v44  ;;  %v6585_v36 = vrot.slane %v6583_v44, 4  ;;  %v6627_v15 = vshrl.u32 %v13223_v29, 16  ;;  %v14289_v20 = vpop.f32.mrb[10].mxu0 }
 0x35e   : > { %v6630_v8 = vshll.u32 %v13223_v29, 16  ;;  %6966 = vst [vmem:[#allocation3 + $0xc] sm:$0xf] %v6584_v38  ;;  %v6407_v3 = vsel %vm17604_vm2, %v5650_v43, 0.0  ;;  %v6410_v6 = vsel %vm17613_vm13, %v5653_v1, 0.0  ;;  %v5615_v46 = vadd.f32 %v17457_v58, %v5335_v60  ;;  %v19039_v30 = vld [vmem:[#allocation33_spill] sm:$0xff] }
 0x35f   : > { %v5620_v5 = vadd.f32 %v14288_v2, %v17457_v58  ;;  %vm19040_vm6 = vnez %v19039_v30  ;;  %v19042_v39 = vld [vmem:[#allocation21_spill] sm:$0xff]  ;;  %v6594_v37 = vsel %vm17648_vm7, %v6585_v36, %v6593_v45  ;;  %v6629_v49 = vrot.slane %v6627_v15, 6  ;;  %v5351_v33 = vpop.f32.mrb[11].mxu0  ;;  %v15734_v29 = vld [vmem:[%s18689_s3 + $0x50] sm:$0xff]  }
 0x360   : > { %v19043_v44 = vsel %vm19040_vm6, %v19041_v19, %v19042_v39  ;;  %v6632_v40 = vrot.slane %v6630_v8, 7  ;;  %v13221_v62 = vpack.c.bf16 %v6407_v3, %v6407_v3  ;;  %6967 = vst [vmem:[#allocation3 + $0x10] sm:$0xf] %v6594_v37  ;;  %v13224_v60 = vpack.c.bf16 %v6410_v6, %v6410_v6 }
 0x361   : > { %vm17686_vm9 = vcmp.lt.s32.totalorder %v19043_v44, 16  ;;  %v5651_v50 = vmax.f32 %v5615_v46, 0.0  ;;  %v5656_v47 = vmax.f32 %v5620_v5, 0.0  ;;  %v5618_v43 = vadd.f32 %v17457_v58, %v5348_v18  ;;  %v19046_v18 = vld [vmem:[#allocation34_spill] sm:$0xff]  ;;  %v19048_v46 = vld [vmem:[#allocation31_spill] sm:$0xff]  ;;  %v14292_v52 = vpop.f32.mrb[12].mxu0 }
 0x362   : > { %v17693_v1 = vor.u32 %v6632_v40, %v6629_v49  ;;  %v6607_v2 = vshrl.u32 %v13221_v62, 16  ;;  %v6610_v38 = vshll.u32 %v13221_v62, 16  ;;  %v5621_v30 = vadd.f32 %v14289_v20, %v17457_v58  ;;  %v19049_v5 = vld [vmem:[#allocation23_spill] sm:$0xff] }
 0x363   : > { %v6637_v19 = vshrl.u32 %v13224_v60, 16  ;;  %v6640_v39 = vshll.u32 %v13224_v60, 16  ;;  %v6408_v45 = vsel %vm17633_vm14, %v5651_v50, 0.0  ;;  %v6413_v36 = vsel %vm17642_vm3, %v5656_v47, 0.0  ;;  %v19053_v62 = vld [vmem:[#allocation35_spill] sm:$0xff]  ;;  %v19055_v60 = vld [vmem:[#allocation36_spill] sm:$0xff] }
 0x364   : > { %v6635_v15 = vrot.slane %v17693_v1, 4  ;;  %v6609_v8 = vrot.slane %v6607_v2, 6  ;;  %v6612_v3 = vrot.slane %v6610_v38, 7  ;;  %v13222_v6 = vpack.c.bf16 %v6408_v45, %v6408_v45  ;;  %v19056_v50 = vld [vmem:[#allocation25_spill] sm:$0xff] }
 0x365   : > { %vm19047_vm2 = vnez %v19046_v18  ;;  %v6639_v37 = vrot.slane %v6637_v19, 6  ;;  %v6642_v42 = vrot.slane %v6640_v39, 7  ;;  %v13227_v49 = vpack.c.bf16 %v6413_v36, %v6413_v36  ;;  %v19062_v19 = vld [vmem:[#allocation38_spill] sm:$0xff]  ;;  %v19087_v36 = vld [vmem:[#allocation45_spill] sm:$0xff] }
 0x366   : > { %v19050_v44 = vsel %vm19047_vm2, %v19048_v46, %v19049_v5  ;;  %v5654_v40 = vmax.f32 %v5618_v43, 0.0  ;;  %vm19054_vm14 = vnez %v19053_v62  ;;  %v6613_v38 = vor.u32 %v6612_v3, %v6609_v8  ;;  %v5364_v5 = vpop.f32.mrb[13].mxu0  ;;  %v19063_v39 = vld [vmem:[#allocation26_spill] sm:$0xff] }
 0x367   : > { %vm17706_vm13 = vcmp.lt.s32.totalorder %v19050_v44, 16  ;;  %v19057_v47 = vsel %vm19054_vm14, %v19055_v60, %v19056_v50  ;;  %v6617_v45 = vshrl.u32 %v13222_v6, 16  ;;  %v6620_v18 = vshll.u32 %v13222_v6, 16  ;;  %v19060_v44 = vld [vmem:[#allocation37_spill] sm:$0xff]  ;;  %v14293_v3 = vpop.f32.mrb[14].mxu0  ;;  %v15726_v6 = vld [vmem:[#allocation3 + $0x8] sm:$0xff]  }
 0x368   : > { %vm17715_vm3 = vcmp.lt.s32.totalorder %v19057_v47, 16  ;;  %v5657_v46 = vmax.f32 %v5621_v30, 0.0  ;;  %vm19061_vm15 = vnez %v19060_v44  ;;  %v17728_v62 = vor.u32 %v6642_v42, %v6639_v37  ;;  %v15730_v30 = vld [vmem:[%s18689_s3 + $0x48] sm:$0xff]   ;;  %14331 = vmatmul.mubr.bf16.vlgmr.msra.gmra.mrb[0].mxu1 %v15726_v6  ;;  %v19071_v6 = vld [vmem:[#allocation27_spill] sm:$0xff] }
 0x369   : > { %v19064_v43 = vsel %vm19061_vm15, %v19062_v19, %v19063_v39  ;;  %v6667_v60 = vshrl.u32 %v13227_v49, 16  ;;  %v6670_v50 = vshll.u32 %v13227_v49, 16  ;;  %v6411_v8 = vsel %vm17665_vm1, %v5654_v40, 0.0  ;;  %v15728_v40 = vld [vmem:[#allocation3 + $0x10] sm:$0xff]  }
 0x36a   : > { %vm17724_vm6 = vcmp.lt.s32.totalorder %v19064_v43, 16  ;;  %v6614_v47 = vsel %vm17648_vm7, %v6605_v13, %v6613_v38  ;;  %v6615_v44 = vrot.slane %v6613_v38, 4  ;;  %v6619_v19 = vrot.slane %v6617_v45, 6  ;;  %v5367_v43 = vpop.f32.mrb[15].mxu0  ;;  %v19067_v45 = vld [vmem:[#allocation10_spill] sm:$0xff]  ;;  %14334 = vmatprep.mubr.bf16.mxu1 %v15728_v40 }
 0x36b   : > { %v6622_v39 = vrot.slane %v6620_v18, 7  ;;  %6969 = vst [vmem:[#allocation3 + $0x18] sm:$0xf] %v6614_v47  ;;  %v6644_v37 = vsel %vm17648_vm7, %v6635_v15, %v17728_v62  ;;  %v6645_v28 = vrot.slane %v17728_v62, 4  ;;  %v6669_v42 = vrot.slane %v6667_v60, 6  ;;  %14367 = vmatpush3.bf16.msra.mxu1 %v19067_v45  ;;  %v19068_v60 = vld [vmem:[#allocation39_spill] sm:$0xff] }
 0x36c   : > { %v6672_v49 = vrot.slane %v6670_v50, 7  ;;  %6972 = vst [vmem:[#allocation3 + $0x24] sm:$0xf] %v6644_v37  ;;  %v13225_v55 = vpack.c.bf16 %v6411_v8, %v6411_v8  ;;  %v6414_v13 = vsel %vm17686_vm9, %v5657_v46, 0.0  ;;  %v5619_v38 = vadd.f32 %v17457_v58, %v5351_v33  ;;  %v19070_v50 = vld [vmem:[#allocation40_spill] sm:$0xff]  ;;  %v19077_v37 = vld [vmem:[#allocation41_spill] sm:$0xff]  ;;  %14368 = vmatprep.subr.bf16.mxu1 %v15730_v30 }
 0x36d   : > { %v6623_v32 = vor.u32 %v6622_v39, %v6619_v19  ;;  %v13228_v47 = vpack.c.bf16 %v6414_v13, %v6414_v13  ;;  %v5624_v15 = vadd.f32 %v14292_v52, %v17457_v58  ;;  %v5622_v62 = vadd.f32 %v17457_v58, %v5364_v5  ;;  %v19075_v39 = vld [vmem:[#allocation42_spill] sm:$0xff]  ;;  %v19097_v8 = vld [vmem:[#allocation44_spill] sm:$0xff] }
 0x36e   : > { %v17745_v18 = vor.u32 %v6672_v49, %v6669_v42  ;;  %vm19069_vm1 = vnez %v19068_v60  ;;  %v6647_v46 = vshrl.u32 %v13225_v55, 16  ;;  %v6650_v5 = vshll.u32 %v13225_v55, 16  ;;  %v19078_v42 = vld [vmem:[#allocation29_spill] sm:$0xff] }
 0x36f   : > { %v19072_v19 = vsel %vm19069_vm1, %v19070_v50, %v19071_v6  ;;  %v6624_v33 = vsel %vm17648_vm7, %v6615_v44, %v6623_v32  ;;  %v6625_v52 = vrot.slane %v6623_v32, 4  ;;  %vm19076_vm9 = vnez %v19075_v39  ;;  %v14296_v44 = vpop.f32.mrb[16].mxu0  ;;  %14369 = vmatpush3.bf16.msra.mxu1 %v15730_v30  ;;  %v15737_v30 = vld [vmem:[%s18689_s3 + $0x58] sm:$0xff]  }
 0x370   : > { %vm17754_vm2 = vcmp.lt.s32.totalorder %v19072_v19, 16  ;;  %v19079_v49 = vsel %vm19076_vm9, %v19077_v37, %v19078_v42  ;;  %6970 = vst [vmem:[#allocation3 + $0x1c] sm:$0xf] %v6624_v33  ;;  %v6675_v40 = vrot.slane %v17745_v18, 4  ;;  %v6677_v45 = vshrl.u32 %v13228_v47, 16  ;;  %v17776_v39 = vpop.f32.mrb[17].mxu0  ;;  %14370 = vmatprep.subr.bf16.mxu1 %v15734_v29 }
 0x371   : > { %vm17768_vm14 = vcmp.lt.s32.totalorder %v19079_v49, 16  ;;  %v6680_v60 = vshll.u32 %v13228_v47, 16  ;;  %v5655_v50 = vmax.f32 %v5619_v38, 0.0  ;;  %v6634_v32 = vsel %vm17648_vm7, %v6625_v52, %v17693_v1  ;;  %v17789_v47 = vpop.f32.mrb[18].mxu0 }
 0x372   : > { %v6649_v55 = vrot.slane %v6647_v46, 6  ;;  %v6652_v6 = vrot.slane %v6650_v5, 7  ;;  %v5660_v19 = vmax.f32 %v5624_v15, 0.0  ;;  %6971 = vst [vmem:[#allocation3 + $0x20] sm:$0xf] %v6634_v32  ;;  %v6679_v37 = vrot.slane %v6677_v45, 6 }
 0x373   : > { %v6682_v42 = vrot.slane %v6680_v60, 7  ;;  %v6412_v33 = vsel %vm17706_vm13, %v5655_v50, 0.0  ;;  %v5658_v49 = vmax.f32 %v5622_v62, 0.0  ;;  %vm19082_vm15 = vnez %v18883_v0  ;;  %v17797_v52 = vpop.f32.mrb[19].mxu0  ;;  %14371 = vmatpush3.bf16.msra.mxu1 %v15734_v29  ;;  %v15740_v29 = vld [vmem:[%s18689_s3 + $0x60] sm:$0xff]  }
 0x374   : > { %v19083_v38 = vsel %vm19082_vm15, %v17069_v63, %v17024_v59  ;;  %v6653_v15 = vor.u32 %v6652_v6, %v6649_v55  ;;  %v13226_v20 = vpack.c.bf16 %v6412_v33, %v6412_v33  ;;  %v6417_v62 = vsel %vm17715_vm3, %v5660_v19, 0.0  ;;  %14372 = vmatprep.subr.bf16.mxu1 %v15737_v30 }
 0x375   : > { %vm17785_vm1 = vcmp.lt.s32.totalorder %v19083_v38, 16  ;;  %v5625_v0 = vadd.f32 %v14293_v3, %v17457_v58  ;;  %v17799_v59 = vor.u32 %v6682_v42, %v6679_v37  ;;  %v13231_v63 = vpack.c.bf16 %v6417_v62, %v6417_v62  ;;  %v17823_v62 = vpop.f32.mrb[20].mxu0 }
 0x376   : > { %v6415_v46 = vsel %vm17724_vm6, %v5658_v49, 0.0  ;;  %v5623_v5 = vadd.f32 %v17457_v58, %v5367_v43  ;;  %v6654_v45 = vsel %vm17648_vm7, %v6645_v28, %v6653_v15  ;;  %v6655_v60 = vrot.slane %v6653_v15, 4  ;;  %v19088_v43 = vld [vmem:[#allocation43_spill] sm:$0xff]  ;;  %v17849_v13 = vpop.f32.mrb[21].mxu0 }
 0x377   : > { %v6657_v50 = vshrl.u32 %v13226_v20, 16  ;;  %v6660_v32 = vshll.u32 %v13226_v20, 16  ;;  %6973 = vst [vmem:[#allocation3 + $0x28] sm:$0xf] %v6654_v45  ;;  %v6684_v2 = vsel %vm17648_vm7, %v6675_v40, %v17799_v59  ;;  %v6685_v3 = vrot.slane %v17799_v59, 4  ;;  %v15729_v49 = vld [vmem:[#allocation3 + $0x18] sm:$0xff]   ;;  %14373 = vmatpush3.bf16.msra.mxu1 %v15737_v30 }
 0x378   : > { %v6707_v55 = vshrl.u32 %v13231_v63, 16  ;;  %v6710_v6 = vshll.u32 %v13231_v63, 16  ;;  %vm19086_vm13 = vnez %v18887_v57  ;;  %6976 = vst [vmem:[#allocation3 + $0x34] sm:$0xf] %v6684_v2  ;;  %v13229_v42 = vpack.c.bf16 %v6415_v46, %v6415_v46  ;;  %14335 = vmatmul.mubr.bf16.gmra.mrb[4].mxu1 %v15729_v49  ;;  %14374 = vmatprep.subr.bf16.mxu1 %v15740_v29 }
 0x379   : > { %v19089_v19 = vsel %vm19086_vm13, %v19087_v36, %v19088_v43  ;;  %v6659_v40 = vrot.slane %v6657_v50, 6  ;;  %v6662_v37 = vrot.slane %v6660_v32, 7  ;;  %v5661_v33 = vmax.f32 %v5625_v0, 0.0  ;;  %v15731_v2 = vld [vmem:[#allocation3 + $0x20] sm:$0xff]  }
 0x37a   : > { %vm17815_vm3 = vcmp.lt.s32.totalorder %v19089_v19, 16  ;;  %v6709_v38 = vrot.slane %v6707_v55, 6  ;;  %v6712_v57 = vrot.slane %v6710_v6, 7  ;;  %v5659_v15 = vmax.f32 %v5623_v5, 0.0  ;;  %14338 = vmatprep.mubr.bf16.mxu1 %v15731_v2  ;;  %v17853_v19 = vpop.f32.mrb[22].mxu0 }
 0x37b   : > { %v5628_v20 = vadd.f32 %v14296_v44, %v17457_v58  ;;  %v6663_v59 = vor.u32 %v6662_v37, %v6659_v40  ;;  %v6687_v63 = vshrl.u32 %v13229_v42, 16  ;;  %v6690_v45 = vshll.u32 %v13229_v42, 16  ;;  %v17859_v42 = vpop.f32.mrb[23].mxu0  ;;  %14375 = vmatpush3.bf16.msra.mxu1 %v15740_v29 }
 0x37c   : > { %v6418_v36 = vsel %vm17754_vm2, %v5661_v33, 0.0  ;;  %v17827_v50 = vor.u32 %v6712_v57, %v6709_v38  ;;  %v6416_v0 = vsel %vm17768_vm14, %v5659_v15, 0.0  ;;  %vm19092_vm6 = vnez %v18891_v54  ;;  %v15746_v57 = vld [vmem:[%s18689_s3 + $0x70] sm:$0xff]  }
 0x37d   : > { %v13232_v46 = vpack.c.bf16 %v6418_v36, %v6418_v36  ;;  %v5664_v32 = vmax.f32 %v5628_v20, 0.0  ;;  %v19093_v44 = vsel %vm19092_vm6, %v17086_v17, %v17050_v56  ;;  %vm19096_vm2 = vnez %v18895_v25 }
 0x37e   : > { %vm17836_vm9 = vcmp.lt.s32.totalorder %v19093_v44, 16  ;;  %v19098_v55 = vsel %vm19096_vm2, %v17098_v22, %v19097_v8  ;;  %v6664_v54 = vsel %vm17648_vm7, %v6655_v60, %v6663_v59  ;;  %v6665_v56 = vrot.slane %v6663_v59, 4  ;;  %v15743_v22 = vld [vmem:[%s18689_s3 + $0x68] sm:$0xff]  }
 0x37f   : > { %vm17845_vm15 = vcmp.lt.s32.totalorder %v19098_v55, 16  ;;  %v6689_v17 = vrot.slane %v6687_v63, 6  ;;  %v6692_v43 = vrot.slane %v6690_v45, 7  ;;  %6974 = vst [vmem:[#allocation3 + $0x2c] sm:$0xf] %v6664_v54  ;;  %v6715_v25 = vrot.slane %v17827_v50, 4  ;;  %14376 = vmatprep.subr.bf16.mxu1 %v15743_v22 }
 0x380   : > { %v6717_v40 = vshrl.u32 %v13232_v46, 16  ;;  %v6720_v37 = vshll.u32 %v13232_v46, 16  ;;  %v13230_v30 = vpack.c.bf16 %v6416_v0, %v6416_v0  ;;  %v6674_v60 = vsel %vm17648_vm7, %v6665_v56, %v17745_v18  ;;  %v19102_v45 = vld [vmem:[#allocation47_spill] sm:$0xff]  ;;  %v19103_v18 = vld [vmem:[#allocation46_spill] sm:$0xff]  ;;  %14377 = vmatpush3.bf16.msra.mxu1 %v15743_v22 }
 0x381   : > { %v6693_v33 = vor.u32 %v6692_v43, %v6689_v17  ;;  %v6421_v49 = vsel %vm17785_vm1, %v5664_v32, 0.0  ;;  %v5626_v38 = vadd.f32 %v17457_v58, %v17776_v39  ;;  %6975 = vst [vmem:[#allocation3 + $0x30] sm:$0xf] %v6674_v60  ;;  %vm19101_vm14 = vnez %v18899_v31  ;;  %14378 = vmatprep.subr.bf16.mxu1 %v15746_v57 }
 0x382   : > { %v6719_v15 = vrot.slane %v6717_v40, 6  ;;  %v6722_v20 = vrot.slane %v6720_v37, 7  ;;  %v6697_v59 = vshrl.u32 %v13230_v30, 16  ;;  %v6700_v63 = vshll.u32 %v13230_v30, 16 }
 0x383   : > { %v19104_v36 = vsel %vm19101_vm14, %v19102_v45, %v19103_v18  ;;  %v6694_v39 = vsel %vm17648_vm7, %v6685_v3, %v6693_v33  ;;  %v6695_v2 = vrot.slane %v6693_v33, 4  ;;  %v13235_v46 = vpack.c.bf16 %v6421_v49, %v6421_v49  ;;  %v17895_v3 = vpop.f32.mrb[24].mxu0 }
 0x384   : > { %vm17876_vm13 = vcmp.lt.s32.totalorder %v19104_v36, 16  ;;  %v5662_v0 = vmax.f32 %v5626_v38, 0.0  ;;  %6977 = vst [vmem:[#allocation3 + $0x38] sm:$0xf] %v6694_v39  ;;  %v17882_v32 = vor.u32 %v6722_v20, %v6719_v15  ;;  %v6699_v44 = vrot.slane %v6697_v59, 6  ;;  %v15749_v59 = vld [vmem:[%s18689_s3 + $0x78] sm:$0xff]   ;;  %14379 = vmatpush3.bf16.msra.mxu1 %v15746_v57 }
 0x385   : > { %v6702_v31 = vrot.slane %v6700_v63, 7  ;;  %v5629_v8 = vadd.f32 %v17789_v47, %v17457_v58  ;;  %vm19107_vm1 = vnez %v18903_v48  ;;  %v6747_v54 = vshrl.u32 %v13235_v46, 16  ;;  %v17901_v47 = vpop.f32.mrb[25].mxu0  ;;  %14380 = vmatprep.subr.bf16.mxu1 %v15749_v59 }
 0x386   : > { %v19108_v29 = vsel %vm19107_vm1, %v17187_v14, %v17101_v34  ;;  %v6750_v56 = vshll.u32 %v13235_v46, 16  ;;  %v6419_v17 = vsel %vm17815_vm3, %v5662_v0, 0.0  ;;  %v5627_v43 = vadd.f32 %v17457_v58, %v17797_v52  ;;  %v17907_v37 = vpop.f32.mrb[26].mxu0 }
 0x387   : > { %vm17891_vm6 = vcmp.lt.s32.totalorder %v19108_v29, 16  ;;  %v6724_v14 = vsel %vm17648_vm7, %v6715_v25, %v17882_v32  ;;  %v6725_v34 = vrot.slane %v17882_v32, 4  ;;  %v6703_v48 = vor.u32 %v6702_v31, %v6699_v44  ;;  %v15732_v25 = vld [vmem:[#allocation3 + $0x28] sm:$0xff]   ;;  %v17911_v20 = vpop.f32.mrb[27].mxu0 }
 0x388   : > { %v13233_v40 = vpack.c.bf16 %v6419_v17, %v6419_v17  ;;  %6980 = vst [vmem:[#allocation3 + $0x44] sm:$0xf] %v6724_v14  ;;  %v6749_v30 = vrot.slane %v6747_v54, 6  ;;  %v6752_v28 = vrot.slane %v6750_v56, 7  ;;  %v5665_v60 = vmax.f32 %v5629_v8, 0.0  ;;  %14339 = vmatmul.mubr.bf16.gmra.mrb[8].mxu1 %v15732_v25  ;;  %v17950_v54 = vpop.f32.mrb[28].mxu0 }
 0x389   : > { %v5663_v33 = vmax.f32 %v5627_v43, 0.0  ;;  %v6704_v52 = vsel %vm17648_vm7, %v6695_v2, %v6703_v48  ;;  %v6705_v49 = vrot.slane %v6703_v48, 4  ;;  %v5632_v18 = vadd.f32 %v17823_v62, %v17457_v58  ;;  %v15733_v2 = vld [vmem:[#allocation3 + $0x30] sm:$0xff]   ;;  %v17968_v17 = vpop.f32.mrb[29].mxu0  ;;  %14381 = vmatpush3.bf16.msra.mxu1 %v15749_v59 }
 0x38a   : > { %v6727_v38 = vshrl.u32 %v13233_v40, 16  ;;  %v6730_v15 = vshll.u32 %v13233_v40, 16  ;;  %6978 = vst [vmem:[#allocation3 + $0x3c] sm:$0xf] %v6704_v52  ;;  %v17916_v22 = vor.u32 %v6752_v28, %v6749_v30  ;;  %v6422_v63 = vsel %vm17836_vm9, %v5665_v60, 0.0  ;;  %14342 = vmatprep.mubr.bf16.mxu1 %v15733_v2  ;;  %v17972_v1 = vpop.f32.mrb[30].mxu0 }
 0x38b   : > { %v6420_v45 = vsel %vm17845_vm15, %v5663_v33, 0.0  ;;  %vm19111_vm3 = vnez %v18906_v61  ;;  %v6714_v5 = vsel %vm17648_vm7, %v6705_v49, %v17827_v50  ;;  %v13236_v0 = vpack.c.bf16 %v6422_v63, %v6422_v63  ;;  %v19129_v63 = vld [vmem:[#allocation48_spill] sm:$0xff]  ;;  %v19168_v60 = vld [vmem:[#allocation55_spill] sm:$0xff] }
 0x38c   : > { %v19112_v36 = vsel %vm19111_vm3, %v17263_v9, %v17145_v24  ;;  %v6729_v46 = vrot.slane %v6727_v38, 6  ;;  %v6732_v6 = vrot.slane %v6730_v15, 7  ;;  %6979 = vst [vmem:[#allocation3 + $0x40] sm:$0xf] %v6714_v5  ;;  %v6755_v62 = vrot.slane %v17916_v22, 4 }
 0x38d   : > { %vm17929_vm2 = vcmp.lt.s32.totalorder %v19112_v36, 16  ;;  %v13234_v61 = vpack.c.bf16 %v6420_v45, %v6420_v45  ;;  %v5668_v32 = vmax.f32 %v5632_v18, 0.0  ;;  %v5630_v9 = vadd.f32 %v17457_v58, %v17849_v13 }
 0x38e   : > { %vm19115_vm9 = vnez %v18912_v53  ;;  %v6733_v50 = vor.u32 %v6732_v6, %v6729_v46  ;;  %v6757_v31 = vshrl.u32 %v13236_v0, 16  ;;  %v6760_v8 = vshll.u32 %v13236_v0, 16  ;;  %v17955_v53 = vld [vmem:[%s18689_s3 + $0x80] sm:$0xff]  }
 0x38f   : > { %v19116_v24 = vsel %vm19115_vm9, %v17298_v26, %v17204_v4  ;;  %v5633_v29 = vadd.f32 %v17853_v19, %v17457_v58  ;;  %v6737_v4 = vshrl.u32 %v13234_v61, 16  ;;  %v6740_v26 = vshll.u32 %v13234_v61, 16  ;;  %14418 = vmatprep.subr.bf16.mxu1 %v17955_v53 }
 0x390   : > { %vm17944_vm15 = vcmp.lt.s32.totalorder %v19116_v24, 16  ;;  %v6425_v13 = vsel %vm17876_vm13, %v5668_v32, 0.0  ;;  %v5666_v57 = vmax.f32 %v5630_v9, 0.0  ;;  %vm19119_vm14 = vnez %v18918_v41 }
 0x391   : > { %v19120_v56 = vsel %vm19119_vm14, %v17312_v35, %v17279_v23  ;;  %v6734_v43 = vsel %vm17648_vm7, %v6725_v34, %v6733_v50  ;;  %v6735_v14 = vrot.slane %v6733_v50, 4  ;;  %v6759_v48 = vrot.slane %v6757_v31, 6  ;;  %v17985_v34 = vpop.f32.mrb[31].mxu0  ;;  %v15735_v55 = vld [vmem:[#allocation3 + $0x38] sm:$0xff]  }
 0x392   : > { %vm17964_vm1 = vcmp.lt.s32.totalorder %v19120_v56, 16  ;;  %v6762_v40 = vrot.slane %v6760_v8, 7  ;;  %6981 = vst [vmem:[#allocation3 + $0x48] sm:$0xf] %v6734_v43  ;;  %v6739_v30 = vrot.slane %v6737_v4, 6  ;;  %v6742_v41 = vrot.slane %v6740_v26, 7  ;;  %14343 = vmatmul.mubr.bf16.gmra.mrb[12].mxu1 %v15735_v55 }
 0x393   : > { %v13239_v28 = vpack.c.bf16 %v6425_v13, %v6425_v13  ;;  %v6423_v23 = vsel %vm17891_vm6, %v5666_v57, 0.0  ;;  %vm19123_vm13 = vnez %v18926_v7  ;;  %v5669_v49 = vmax.f32 %v5633_v29, 0.0  ;;  %v15736_v5 = vld [vmem:[#allocation3 + $0x40] sm:$0xff]   ;;  %v18016_v31 = vpop.f32.mrb[32].mxu0 }
 0x394   : > { %v19124_v35 = vsel %vm19123_vm13, %v17328_v51, %v17290_v11  ;;  %v6763_v33 = vor.u32 %v6762_v40, %v6759_v48  ;;  %v13237_v52 = vpack.c.bf16 %v6423_v23, %v6423_v23  ;;  %v5631_v38 = vadd.f32 %v17457_v58, %v17859_v42  ;;  %v19128_v51 = vld [vmem:[#allocation54_spill] sm:$0xff]  ;;  %14346 = vmatprep.mubr.bf16.mxu1 %v15736_v5  ;;  %v18023_v26 = vpop.f32.mrb[33].mxu0 }
 0x395   : > { %vm17981_vm3 = vcmp.lt.s32.totalorder %v19124_v35, 16  ;;  %v6743_v7 = vor.u32 %v6742_v41, %v6739_v30  ;;  %v6787_v15 = vshrl.u32 %v13239_v28, 16  ;;  %v6790_v25 = vshll.u32 %v13239_v28, 16  ;;  %v18031_v56 = vpop.f32.mrb[34].mxu0 }
 0x396   : > { %v5636_v11 = vadd.f32 %v17895_v3, %v17457_v58  ;;  %vm19127_vm6 = vnez %v18934_v21  ;;  %v6764_v42 = vsel %vm17648_vm7, %v6755_v62, %v6763_v33  ;;  %v6765_v18 = vrot.slane %v6763_v33, 4  ;;  %v18034_v40 = vpop.f32.mrb[35].mxu0 }
 0x397   : > { %v19130_v59 = vsel %vm19127_vm6, %v19128_v51, %v19129_v63  ;;  %v6767_v36 = vshrl.u32 %v13237_v52, 16  ;;  %v6770_v2 = vshll.u32 %v13237_v52, 16  ;;  %6984 = vst [vmem:[#allocation3 + $0x54] sm:$0xf] %v6764_v42  ;;  %v6744_v3 = vsel %vm17648_vm7, %v6735_v14, %v6743_v7  ;;  %v19144_v51 = vld [vmem:[#allocation50_spill] sm:$0xff] }
 0x398   : > { %vm17997_vm9 = vcmp.lt.s32.totalorder %v19130_v59, 16  ;;  %v6745_v21 = vrot.slane %v6743_v7, 4  ;;  %v6789_v46 = vrot.slane %v6787_v15, 6  ;;  %v6792_v6 = vrot.slane %v6790_v25, 7  ;;  %6982 = vst [vmem:[#allocation3 + $0x4c] sm:$0xf] %v6744_v3 }
 0x399   : > { %v6769_v0 = vrot.slane %v6767_v36, 6  ;;  %v6772_v61 = vrot.slane %v6770_v2, 7  ;;  %v6426_v32 = vsel %vm17929_vm2, %v5669_v49, 0.0  ;;  %v5667_v9 = vmax.f32 %v5631_v38, 0.0  ;;  %v19138_v7 = vld [vmem:[#allocation60_spill] sm:$0xff]  ;;  %v19139_v15 = vld [vmem:[#allocation49_spill] sm:$0xff] }
 0x39a   : > { %v19134_v24 = vsel %vm17419_vm12, %v17460_v10, %v17308_v16  ;;  %v6754_v8 = vsel %vm17648_vm7, %v6745_v21, %v17916_v22  ;;  %v18021_v29 = vor.u32 %v6792_v6, %v6789_v46  ;;  %v13240_v39 = vpack.c.bf16 %v6426_v32, %v6426_v32 }
 0x39b   : > { %vm18012_vm14 = vcmp.lt.s32.totalorder %v19134_v24, 16  ;;  %v5672_v4 = vmax.f32 %v5636_v11, 0.0  ;;  %6983 = vst [vmem:[#allocation3 + $0x50] sm:$0xf] %v6754_v8  ;;  %v6773_v13 = vor.u32 %v6772_v61, %v6769_v0  ;;  %v6424_v16 = vsel %vm17944_vm15, %v5667_v9, 0.0  ;;  %v19143_v11 = vld [vmem:[#allocation61_spill] sm:$0xff] }
 0x39c   : > { %v5634_v10 = vadd.f32 %v17457_v58, %v17901_v47  ;;  %v5637_v57 = vadd.f32 %v17907_v37, %v17457_v58  ;;  %v6795_v22 = vrot.slane %v18021_v29, 4  ;;  %v6797_v43 = vshrl.u32 %v13240_v39, 16  ;;  %v19149_v8 = vld [vmem:[#allocation63_spill] sm:$0xff]  ;;  %v19172_v24 = vld [vmem:[#allocation70_spill] sm:$0xff] }
 0x39d   : > { %v6800_v14 = vshll.u32 %v13240_v39, 16  ;;  %v13238_v48 = vpack.c.bf16 %v6424_v16, %v6424_v16  ;;  %v6774_v30 = vsel %vm17648_vm7, %v6765_v18, %v6773_v13  ;;  %v6775_v44 = vrot.slane %v6773_v13, 4  ;;  %v19150_v39 = vld [vmem:[#allocation51_spill] sm:$0xff] }
 0x39e   : > { %v6429_v41 = vsel %vm17964_vm1, %v5672_v4, 0.0  ;;  %v5670_v47 = vmax.f32 %v5634_v10, 0.0  ;;  %6985 = vst [vmem:[#allocation3 + $0x58] sm:$0xf] %v6774_v30  ;;  %v6799_v28 = vrot.slane %v6797_v43, 6  ;;  %v5673_v49 = vmax.f32 %v5637_v57, 0.0 }
 0x39f   : > { %v6802_v37 = vrot.slane %v6800_v14, 7  ;;  %v6777_v23 = vshrl.u32 %v13238_v48, 16  ;;  %v6780_v35 = vshll.u32 %v13238_v48, 16  ;;  %v13243_v33 = vpack.c.bf16 %v6429_v41, %v6429_v41  ;;  %v15738_v18 = vld [vmem:[#allocation3 + $0x48] sm:$0xff]   ;;  %v19155_v41 = vld [vmem:[#allocation65_spill] sm:$0xff] }
 0x3a0   : > { %v6427_v52 = vsel %vm17981_vm3, %v5670_v47, 0.0  ;;  %v5635_v38 = vadd.f32 %v17457_v58, %v17911_v20  ;;  %v19140_v19 = vsel %vm17445_vm0, %v19138_v7, %v19139_v15  ;;  %v19145_v63 = vsel %vm17469_vm4, %v19143_v11, %v19144_v51  ;;  %14347 = vmatmul.mubr.bf16.gmra.mrb[16].mxu1 %v15738_v18  ;;  %v19156_v47 = vld [vmem:[#allocation52_spill] sm:$0xff]  ;;  %v19162_v15 = vld [vmem:[#allocation53_spill] sm:$0xff] }
 0x3a1   : > { %vm18049_vm12 = vcmp.lt.s32.totalorder %v19140_v19, 16  ;;  %vm18058_vm2 = vcmp.lt.s32.totalorder %v19145_v63, 16  ;;  %v6803_v59 = vor.u32 %v6802_v37, %v6799_v28  ;;  %v6779_v58 = vrot.slane %v6777_v23, 6  ;;  %v18094_v23 = vld [vmem:[%s18688_s2] ss:$0 sm:$0xff] }
 0x3a2   : > { %v6782_v20 = vrot.slane %v6780_v35, 7  ;;  %v13241_v42 = vpack.c.bf16 %v6427_v52, %v6427_v52  ;;  %v6827_v36 = vshrl.u32 %v13243_v33, 16  ;;  %v6830_v2 = vshll.u32 %v13243_v33, 16  ;;  %v15739_v0 = vld [vmem:[#allocation3 + $0x50] sm:$0xff]  }
 0x3a3   : > { %v6430_v5 = vsel %vm17997_vm9, %v5673_v49, 0.0  ;;  %v5671_v3 = vmax.f32 %v5635_v38, 0.0  ;;  %v6804_v27 = vsel %vm17648_vm7, %v6795_v22, %v6803_v59  ;;  %v6805_v21 = vrot.slane %v6803_v59, 4  ;;  %14350 = vmatprep.mubr.bf16.mxu1 %v15739_v0 }
 0x3a4   : > { %v6783_v46 = vor.u32 %v6782_v20, %v6779_v58  ;;  %v6807_v6 = vshrl.u32 %v13241_v42, 16  ;;  %6988 = vst [vmem:[#allocation3 + $0x64] sm:$0xf] %v6804_v27  ;;  %v6829_v61 = vrot.slane %v6827_v36, 6  ;;  %v6832_v32 = vrot.slane %v6830_v2, 7 }
 0x3a5   : > { %v6810_v9 = vshll.u32 %v13241_v42, 16  ;;  %v13244_v62 = vpack.c.bf16 %v6430_v5, %v6430_v5  ;;  %v19151_v45 = vsel %vm17486_vm11, %v19149_v8, %v19150_v39  ;;  %v6428_v57 = vsel %vm18012_vm14, %v5671_v3, 0.0  ;;  %v19174_v8 = vld [vmem:[#allocation71_spill] sm:$0xff]  ;;  %v19175_v39 = vld [vmem:[#allocation57_spill] sm:$0xff] }
 0x3a6   : > { %vm18071_vm4 = vcmp.lt.s32.totalorder %v19151_v45, 16  ;;  %v6784_v13 = vsel %vm17648_vm7, %v6775_v44, %v6783_v46  ;;  %v6785_v16 = vrot.slane %v6783_v46, 4  ;;  %v6809_v10 = vrot.slane %v6807_v6, 6 }
 0x3a7   : > { %6986 = vst [vmem:[#allocation3 + $0x5c] sm:$0xf] %v6784_v13  ;;  %v6833_v22 = vor.u32 %v6832_v32, %v6829_v61  ;;  %v6812_v43 = vrot.slane %v6810_v9, 7  ;;  %v6837_v14 = vshrl.u32 %v13244_v62, 16  ;;  %v6840_v48 = vshll.u32 %v13244_v62, 16  ;;  %v19167_v32 = vld [vmem:[#allocation69_spill] sm:$0xff] }
 0x3a8   : > { %v19157_v28 = vsel %vm17499_vm5, %v19155_v41, %v19156_v47  ;;  %v6794_v50 = vsel %vm17648_vm7, %v6785_v16, %v18021_v29  ;;  %v13242_v44 = vpack.c.bf16 %v6428_v57, %v6428_v57  ;;  %v5640_v35 = vadd.f32 %v18094_v23, %v17950_v54  ;;  %v19161_v29 = vld [vmem:[#allocation67_spill] sm:$0xff]  ;;  %v19179_v41 = vld [vmem:[#allocation73_spill] sm:$0xff]  ;;  %v19181_v47 = vld [vmem:[#allocation72_spill] sm:$0xff] }
 0x3a9   : > { %vm18084_vm0 = vcmp.lt.s32.totalorder %v19157_v28, 16  ;;  %v5638_v33 = vadd.f32 %v18094_v23, %v17968_v17  ;;  %6987 = vst [vmem:[#allocation3 + $0x60] sm:$0xf] %v6794_v50  ;;  %v6835_v52 = vrot.slane %v6833_v22, 4  ;;  %v6813_v49 = vor.u32 %v6812_v43, %v6809_v10  ;;  %v19182_v28 = vld [vmem:[#allocation59_spill] sm:$0xff] }
 0x3aa   : > { %v6839_v38 = vrot.slane %v6837_v14, 6  ;;  %v6842_v55 = vrot.slane %v6840_v48, 7  ;;  %v19163_v19 = vsel %vm17511_vm10, %v19161_v29, %v19162_v15  ;;  %v6817_v51 = vshrl.u32 %v13242_v44, 16 }
 0x3ab   : > { %vm18105_vm5 = vcmp.lt.s32.totalorder %v19163_v19, 16  ;;  %v6820_v63 = vshll.u32 %v13242_v44, 16  ;;  %v5676_v54 = vmax.f32 %v5640_v35, 0.0  ;;  %v5674_v59 = vmax.f32 %v5638_v33, 0.0 }
 0x3ac   : > { %v6814_v17 = vsel %vm17648_vm7, %v6805_v21, %v6813_v49  ;;  %v6815_v58 = vrot.slane %v6813_v49, 4  ;;  %v6843_v20 = vor.u32 %v6842_v55, %v6839_v38  ;;  %v5641_v42 = vadd.f32 %v18094_v23, %v17972_v1 }
 0x3ad   : > { %6989 = vst [vmem:[#allocation3 + $0x68] sm:$0xf] %v6814_v17  ;;  %v6819_v18 = vrot.slane %v6817_v51, 6  ;;  %v6822_v36 = vrot.slane %v6820_v63, 7  ;;  %v6433_v2 = vsel %vm18049_vm12, %v5676_v54, 0.0  ;;  %v6431_v5 = vsel %vm18058_vm2, %v5674_v59, 0.0 }
 0x3ae   : > { %v6844_v3 = vsel %vm17648_vm7, %v6835_v52, %v6843_v20  ;;  %v6845_v27 = vrot.slane %v6843_v20, 4  ;;  %v13247_v46 = vpack.c.bf16 %v6433_v2, %v6433_v2  ;;  %v13245_v21 = vpack.c.bf16 %v6431_v5, %v6431_v5 }
 0x3af   : > { %6992 = vst [vmem:[#allocation3 + $0x74] sm:$0xf] %v6844_v3  ;;  %v6823_v6 = vor.u32 %v6822_v36, %v6819_v18  ;;  %v5677_v0 = vmax.f32 %v5641_v42, 0.0  ;;  %v5639_v1 = vadd.f32 %v18094_v23, %v17985_v34  ;;  %v5644_v61 = vadd.f32 %v18094_v23, %v18016_v31  ;;  %v15741_v34 = vld [vmem:[#allocation3 + $0x58] sm:$0xff]  }
 0x3b0   : > { %v19169_v9 = vsel %vm17533_vm8, %v19167_v32, %v19168_v60  ;;  %vm19173_vm10 = vnez %v19172_v24  ;;  %v6867_v31 = vshrl.u32 %v13247_v46, 16  ;;  %v6870_v16 = vshll.u32 %v13247_v46, 16  ;;  %14351 = vmatmul.mubr.bf16.gmra.mrb[20].mxu1 %v15741_v34  ;;  %v15742_v35 = vld [vmem:[#allocation3 + $0x60] sm:$0xff]  }
 0x3b1   : > { %vm18128_vm11 = vcmp.lt.s32.totalorder %v19169_v9, 16  ;;  %v19176_v45 = vsel %vm19173_vm10, %v19174_v8, %v19175_v39  ;;  %v6847_v10 = vshrl.u32 %v13245_v21, 16  ;;  %v6850_v57 = vshll.u32 %v13245_v21, 16  ;;  %14354 = vmatprep.mubr.bf16.mxu1 %v15742_v35 }
 0x3b2   : > { %vm18137_vm15 = vcmp.lt.s32.totalorder %v19176_v45, 16  ;;  %v6824_v43 = vsel %vm17648_vm7, %v6815_v58, %v6823_v6  ;;  %v6825_v14 = vrot.slane %v6823_v6, 4  ;;  %v6434_v48 = vsel %vm18071_vm4, %v5677_v0, 0.0 }
 0x3b3   : > { %v5675_v30 = vmax.f32 %v5639_v1, 0.0  ;;  %vm19180_vm8 = vnez %v19179_v41  ;;  %6990 = vst [vmem:[#allocation3 + $0x6c] sm:$0xf] %v6824_v43  ;;  %v6869_v33 = vrot.slane %v6867_v31, 6  ;;  %v6872_v52 = vrot.slane %v6870_v16, 7 }
 0x3b4   : > { %v19183_v50 = vsel %vm19180_vm8, %v19181_v47, %v19182_v28  ;;  %v6849_v49 = vrot.slane %v6847_v10, 6  ;;  %v6852_v38 = vrot.slane %v6850_v57, 7  ;;  %v6834_v4 = vsel %vm17648_vm7, %v6825_v14, %v6833_v22  ;;  %v15751_v57 = vld [vmem:[#allocation3] sm:$0xff]  }
 0x3b5   : > { %vm18150_vm1 = vcmp.lt.s32.totalorder %v19183_v50, 16  ;;  %v13248_v55 = vpack.c.bf16 %v6434_v48, %v6434_v48  ;;  %v6432_v7 = vsel %vm18084_vm0, %v5675_v30, 0.0  ;;  %v5680_v29 = vmax.f32 %v5644_v61, 0.0  ;;  %6991 = vst [vmem:[#allocation3 + $0x70] sm:$0xf] %v6834_v4 }
 0x3b6   : > { %v6873_v15 = vor.u32 %v6872_v52, %v6869_v33  ;;  %v6853_v19 = vor.u32 %v6852_v38, %v6849_v49  ;;  %v13246_v51 = vpack.c.bf16 %v6432_v7, %v6432_v7  ;;  %v5642_v63 = vadd.f32 %v18094_v23, %v18023_v26 }
 0x3b7   : > { %v6877_v54 = vshrl.u32 %v13248_v55, 16  ;;  %v6880_v59 = vshll.u32 %v13248_v55, 16  ;;  %v6437_v17 = vsel %vm18105_vm5, %v5680_v29, 0.0  ;;  %v5645_v22 = vadd.f32 %v18094_v23, %v18031_v56  ;;  %v7001_v55 = vld [vmem:[#allocation3 + $0x98] sm:$0x3] }
 0x3b8   : > { %v6875_v58 = vrot.slane %v6873_v15, 4  ;;  %v6854_v37 = vsel %vm17648_vm7, %v6845_v27, %v6853_v19  ;;  %v6855_v20 = vrot.slane %v6853_v19, 4  ;;  %v6857_v42 = vshrl.u32 %v13246_v51, 16  ;;  %v15752_v19 = vld [vmem:[#allocation3 + $0x8] sm:$0xff]  }
 0x3b9   : > { %6993 = vst [vmem:[#allocation3 + $0x78] sm:$0xf] %v6854_v37  ;;  %v6879_v18 = vrot.slane %v6877_v54, 6  ;;  %v6882_v36 = vrot.slane %v6880_v59, 7  ;;  %v6860_v2 = vshll.u32 %v13246_v51, 16  ;;  %v13251_v5 = vpack.c.bf16 %v6437_v17, %v6437_v17 }
 0x3ba   : > { %v6859_v26 = vrot.slane %v6857_v42, 6  ;;  %v5678_v3 = vmax.f32 %v5642_v63, 0.0  ;;  %v5681_v46 = vmax.f32 %v5645_v22, 0.0  ;;  %v5643_v11 = vadd.f32 %v18094_v23, %v18034_v40  ;;  %v15744_v1 = vld [vmem:[#allocation3 + $0x68] sm:$0xff]  }
 0x3bb   : > { %v6883_v21 = vor.u32 %v6882_v36, %v6879_v18  ;;  %v6862_v6 = vrot.slane %v6860_v2, 7  ;;  %v6907_v56 = vshrl.u32 %v13251_v5, 16  ;;  %v6910_v0 = vshll.u32 %v13251_v5, 16  ;;  %14355 = vmatmul.mubr.bf16.gmra.mrb[24].mxu1 %v15744_v1  ;;  %v19186_v22 = vld [vmem:[#allocation8_spill] sm:$0xff] }
 0x3bc   : > { %v6435_v27 = vsel %vm18128_vm11, %v5678_v3, 0.0  ;;  %v6438_v61 = vsel %vm18137_vm15, %v5681_v46, 0.0  ;;  %v5679_v25 = vmax.f32 %v5643_v11, 0.0  ;;  %v15745_v24 = vld [vmem:[#allocation3 + $0x70] sm:$0xff]   ;;  %v7575_v38 = vshll.u32 %v15751_v57, 16  ;;  %v15755_v3 = vld [vmem:[#allocation3 + $0x18] sm:$0xff]  }
 0x3bd   : > { %v6884_v32 = vsel %vm17648_vm7, %v6875_v58, %v6883_v21  ;;  %v6863_v60 = vor.u32 %v6862_v6, %v6859_v26  ;;  %v6909_v9 = vrot.slane %v6907_v56, 6  ;;  %v6912_v40 = vrot.slane %v6910_v0, 7  ;;  %14358 = vmatprep.mubr.bf16.mxu1 %v15745_v24  ;;  %v15753_v2 = vld [vmem:[#allocation3 + $0x10] sm:$0xff]   ;;  %v15756_v0 = vld [vmem:[#allocation3 + $0x20] sm:$0xff]  }
 0x3be   : > { %6996 = vst [vmem:[#allocation3 + $0x84] sm:$0xf] %v6884_v32  ;;  %v13249_v23 = vpack.c.bf16 %v6435_v27, %v6435_v27  ;;  %v13252_v8 = vpack.c.bf16 %v6438_v61, %v6438_v61  ;;  %v6436_v39 = vsel %vm18150_vm1, %v5679_v25, 0.0  ;;  %v6885_v52 = vrot.slane %v6883_v21, 4  ;;  %v15757_v27 = vld [vmem:[#allocation3 + $0x28] sm:$0xff]  }
 0x3bf   : > { %v6864_v62 = vsel %vm17648_vm7, %v6855_v20, %v6863_v60  ;;  %v6865_v45 = vrot.slane %v6863_v60, 4  ;;  %v13250_v13 = vpack.c.bf16 %v6436_v39, %v6436_v39  ;;  %v6913_v34 = vor.u32 %v6912_v40, %v6909_v9  ;;  %v15758_v9 = vld [vmem:[%s18689_s3 + $0x88] sm:$0xff]   ;;  %v15761_v39 = vld [vmem:[%s18689_s3 + $0x90] sm:$0xff]  }
 0x3c0   : > { %6994 = vst [vmem:[#allocation3 + $0x7c] sm:$0xf] %v6864_v62  ;;  %v6887_v31 = vshrl.u32 %v13249_v23, 16  ;;  %v6890_v16 = vshll.u32 %v13249_v23, 16  ;;  %v6917_v10 = vshrl.u32 %v13252_v8, 16  ;;  %v6920_v14 = vshll.u32 %v13252_v8, 16 }
 0x3c1   : > { %v6874_v43 = vsel %vm17648_vm7, %v6865_v45, %v6873_v15  ;;  %v6897_v48 = vshrl.u32 %v13250_v13, 16  ;;  %v6900_v30 = vshll.u32 %v13250_v13, 16  ;;  %v6915_v50 = vrot.slane %v6913_v34, 4  ;;  %v15759_v45 = vld [vmem:[#allocation3 + $0x30] sm:$0xff]  }
 0x3c2   : > { %6995 = vst [vmem:[#allocation3 + $0x80] sm:$0xf] %v6874_v43  ;;  %v6889_v41 = vrot.slane %v6887_v31, 6  ;;  %v6892_v47 = vrot.slane %v6890_v16, 7  ;;  %v6919_v28 = vrot.slane %v6917_v10, 6  ;;  %v6922_v44 = vrot.slane %v6920_v14, 7 }
 0x3c3   : > { %v6899_v35 = vrot.slane %v6897_v48, 6  ;;  %v6902_v33 = vrot.slane %v6900_v30, 7  ;;  %vm19187_vm13 = vnez %v19186_v22  ;;  %v7573_v42 = vshrl.u32 %v15751_v57, 16 }
 0x3c4   : > { %v6893_v49 = vor.u32 %v6892_v47, %v6889_v41  ;;  %v6923_v4 = vor.u32 %v6922_v44, %v6919_v28  ;;  %v7577_v18 = vrot.slane %v7575_v38, 1  ;;  %v7580_v36 = vshll.u32 %v15752_v19, 16  ;;  %v15767_v41 = vld [vmem:[%s18689_s3 + $0xa0] sm:$0xff]   ;;  %v15762_v28 = vld [vmem:[#allocation3 + $0x40] sm:$0xff]  }
 0x3c5   : > { %v6903_v7 = vor.u32 %v6902_v33, %v6899_v35  ;;  %v7588_v11 = vshll.u32 %v15753_v2, 16  ;;  %vm19188_vm3 = vsmask.f32 7424  ;;  %v7596_v12 = vshll.u32 %v15755_v3, 16  ;;  %v15763_v33 = vld [vmem:[#allocation3 + $0x48] sm:$0xff]   ;;  %v15770_v38 = vld [vmem:[%s18689_s3 + $0xa8] sm:$0xff]  }
 0x3c6   : > { %v6894_v29 = vsel %vm17648_vm7, %v6885_v52, %v6893_v49  ;;  %v6895_v15 = vrot.slane %v6893_v49, 4  ;;  %v6924_v51 = vsel %vm17648_vm7, %v6915_v50, %v6923_v4  ;;  %v6925_v63 = vrot.slane %v6923_v4, 4  ;;  %vm19190_vm6 = vmmov %vm19188_vm3 }
 0x3c7   : > { %6997 = vst [vmem:[#allocation3 + $0x88] sm:$0xf] %v6894_v29  ;;  %v6905_v54 = vrot.slane %v6903_v7, 4  ;;  %v15747_v59 = vld [vmem:[#allocation3 + $0x78] sm:$0xff]   ;;  %7000 = vst [vmem:[#allocation3 + $0x94] sm:$0xf] %v6924_v51  ;;  %v7578_v5 = vor.u32 %v7577_v18, %v7573_v42 }
 0x3c8   : > { %v6904_v17 = vsel %vm17648_vm7, %v6895_v15, %v6903_v7  ;;  %v7002_v58 = vsel %vm19187_vm13, %v6925_v63, %v7001_v55  ;;  %14359 = vmatmul.mubr.bf16.gmra.mrb[28].mxu1 %v15747_v59  ;;  %v7582_v26 = vrot.slane %v7580_v36, 1  ;;  %v7584_v6 = vshrl.u32 %v15752_v19, 16  ;;  %vm19191_vm9 = vmmov %vm19188_vm3  ;;  %v15773_v15 = vld [vmem:[%s18689_s3 + $0xb0] sm:$0xff]   ;;  %v15765_v51 = vld [vmem:[#allocation3 + $0x50] sm:$0xff]  }
 0x3c9   : > { %v6914_v37 = vsel %vm17648_vm7, %v6905_v54, %v6913_v34  ;;  %6998 = vst [vmem:[#allocation3 + $0x8c] sm:$0xf] %v6904_v17  ;;  %v15748_v20 = vld [vmem:[#allocation3 + $0x80] sm:$0xff]   ;;  %7003 = vst [vmem:[#allocation3 + $0x98] sm:$0x3] %v7002_v58  ;;  %v7590_v56 = vrot.slane %v7588_v11, 1 }
 0x3ca   : > { %6999 = vst [vmem:[#allocation3 + $0x90] sm:$0xf] %v6914_v37  ;;  %14362 = vmatprep.mubr.bf16.mxu1 %v15748_v20  ;;  %v7583_v21 = vsel %vm19188_vm3, %v7578_v5, %v7582_v26  ;;  %v7586_v1 = vor.u32 %v7584_v6, %v7582_v26  ;;  %v7592_v61 = vshrl.u32 %v15753_v2, 16  ;;  %v7598_v25 = vrot.slane %v7596_v12, 1  ;;  %vm19189_vm7 = vmmov %vm19188_vm3  ;;  %v15760_v34 = vld [vmem:[#allocation3 + $0x38] sm:$0xff]   ;;  %v15776_v37 = vld [vmem:[%s18689_s3 + $0xb8] sm:$0xff]  }
 0x3cb   : > { %v7604_v60 = vshll.u32 %v15756_v0, 16  ;;  %v7612_v23 = vshll.u32 %v15757_v27, 16  ;;  %v7600_v8 = vshrl.u32 %v15755_v3, 16  ;;  %v7608_v31 = vshrl.u32 %v15756_v0, 16  ;;  %vm19192_vm14 = vmmov %vm19188_vm3  ;;  %v15766_v17 = vld [vmem:[#allocation3 + $0x58] sm:$0xff]   ;;  %v15768_v5 = vld [vmem:[#allocation3 + $0x60] sm:$0xff]  }
 0x3cc   : > { %v7594_v32 = vor.u32 %v7592_v61, %v7590_v56  ;;  %v7591_v24 = vsel %vm19189_vm7, %v7586_v1, %v7590_v56  ;;  %v7620_v57 = vshll.u32 %v15759_v45, 16  ;;  %v7628_v48 = vshll.u32 %v15760_v34, 16  ;;  %vm19193_vm12 = vmmov %vm19188_vm3  ;;  %v18224_v26 = vld [vmem:[%s18689_s3 + $0xc0] sm:$0xff]  }
 0x3cd   : > { %v7606_v62 = vrot.slane %v7604_v60, 1  ;;  %v7602_v13 = vor.u32 %v7600_v8, %v7598_v25  ;;  %v7614_v16 = vrot.slane %v7612_v23, 1  ;;  %v7616_v30 = vshrl.u32 %v15757_v27, 16  ;;  %vm19194_vm2 = vmmov %vm19188_vm3  ;;  %v15772_v60 = vld [vmem:[#allocation3 + $0x78] sm:$0xff]  }
 0x3ce   : > { %v7599_v40 = vsel %vm19190_vm6, %v7594_v32, %v7598_v25  ;;  %v7622_v47 = vrot.slane %v7620_v57, 1  ;;  %v7624_v44 = vshrl.u32 %v15759_v45, 16  ;;  %v7630_v35 = vrot.slane %v7628_v48, 1  ;;  %vm19195_vm4 = vmmov %vm19194_vm2  ;;  %v15771_v25 = vld [vmem:[#allocation3 + $0x70] sm:$0xff]  }
 0x3cf   : > { %v7610_v10 = vor.u32 %v7608_v31, %v7606_v62  ;;  %v7607_v43 = vsel %vm19191_vm9, %v7602_v13, %v7606_v62  ;;  %v7618_v50 = vor.u32 %v7616_v30, %v7614_v16  ;;  %v7636_v49 = vshll.u32 %v15762_v28, 16  ;;  %vm19196_vm0 = vmmov %vm19194_vm2 }
 0x3d0   : > { %v15750_v46 = vld [vmem:[#allocation3 + $0x88] sm:$0xff]   ;;  %v7626_v52 = vor.u32 %v7624_v44, %v7622_v47  ;;  %v7644_v7 = vshll.u32 %v15763_v33, 16  ;;  %v7632_v29 = vshrl.u32 %v15760_v34, 16  ;;  %v7640_v54 = vshrl.u32 %v15762_v28, 16  ;;  %vm19197_vm5 = vmmov %vm19196_vm0  ;;  %v15774_v34 = vld [vmem:[#allocation3 + $0x80] sm:$0xff]  }
 0x3d1   : > { %14363 = vmatmul.mubr.bf16.gmra.mrb[32].mxu1 %v15750_v46  ;;  %v7615_v14 = vsel %vm19192_vm14, %v7610_v10, %v7614_v16  ;;  %v7623_v4 = vsel %vm19193_vm12, %v7618_v50, %v7622_v47  ;;  %v7638_v19 = vrot.slane %v7636_v49, 1  ;;  %v7652_v58 = vshll.u32 %v15765_v51, 16  ;;  %vm19198_vm11 = vmmov %vm19196_vm0  ;;  %v15775_v57 = vld [vmem:[#allocation3 + $0x88] sm:$0xff]   ;;  %v15777_v47 = vld [vmem:[#allocation3 + $0x90] ss:$0 sps:$4 sm:$0x11]  }
 0x3d2   : > { %14382 = vmatprep.mubr.bf16.mxu1 %v7583_v21  ;;  %v7631_v55 = vsel %vm19194_vm2, %v7626_v52, %v7630_v35  ;;  %v7634_v63 = vor.u32 %v7632_v29, %v7630_v35  ;;  %v7646_v59 = vrot.slane %v7644_v7, 1  ;;  %v7660_v18 = vshll.u32 %v15766_v17, 16  ;;  %v15769_v21 = vld [vmem:[#allocation3 + $0x68] sm:$0xff]   ;;  %vm19199_vm10 = vmmov %vm19196_vm0  ;;  %v15778_v52 = vld [vmem:[#allocation3] sm:$0xfe]  }
 0x3d3   : > { %v7642_v22 = vor.u32 %v7640_v54, %v7638_v19  ;;  %v7648_v36 = vshrl.u32 %v15763_v33, 16  ;;  %v7654_v2 = vrot.slane %v7652_v58, 1  ;;  %v7656_v46 = vshrl.u32 %v15765_v51, 16  ;;  %vm19200_vm15 = vmmov %vm19196_vm0 }
 0x3d4   : > { %v7639_v20 = vsel %vm19195_vm4, %v7634_v63, %v7638_v19  ;;  %v7662_v11 = vrot.slane %v7660_v18, 1  ;;  %v7668_v6 = vshll.u32 %v15768_v5, 16  ;;  %v7676_v1 = vshll.u32 %v15769_v21, 16  ;;  %vm19201_vm8 = vmmov %vm19196_vm0  ;;  %v15780_v63 = vld [vmem:[#allocation3 + $0x10] sm:$0xff]  }
 0x3d5   : > { %v7647_v42 = vsel %vm19196_vm0, %v7642_v22, %v7646_v59  ;;  %v7650_v3 = vor.u32 %v7648_v36, %v7646_v59  ;;  %v7658_v12 = vor.u32 %v7656_v46, %v7654_v2  ;;  %v7664_v27 = vshrl.u32 %v15766_v17, 16  ;;  %vm19202_vm1 = vmmov %vm19196_vm0  ;;  %v15782_v17 = vld [vmem:[#allocation3 + $0x18] sm:$0xff]   ;;  %v15784_v36 = vld [vmem:[#allocation3 + $0x28] sm:$0xff]  }
 0x3d6   : > { %v7670_v61 = vrot.slane %v7668_v6, 1  ;;  %v7684_v23 = vshll.u32 %v15771_v25, 16  ;;  %v7692_v62 = vshll.u32 %v15772_v60, 16  ;;  %v7680_v45 = vshrl.u32 %v15769_v21, 16  ;;  %vm19203_vm13 = vmmov %vm19196_vm0  ;;  %v15786_v46 = vld [vmem:[#allocation3 + $0x30] sm:$0xff]  }
 0x3d7   : > { %v7655_v56 = vsel %vm19197_vm5, %v7650_v3, %v7654_v2  ;;  %v7663_v0 = vsel %vm19198_vm11, %v7658_v12, %v7662_v11  ;;  %v7666_v32 = vor.u32 %v7664_v27, %v7662_v11  ;;  %v7688_v16 = vshrl.u32 %v15771_v25, 16  ;;  %vm19204_vm3 = vmmov %vm19196_vm0  ;;  %v15791_v11 = vld [vmem:[%s18689_s3 + $0xd8] sm:$0xff]  }
 0x3d8   : > { %v7686_v13 = vrot.slane %v7684_v23, 1  ;;  %v7694_v10 = vrot.slane %v7692_v62, 1  ;;  %v7708_v30 = vshll.u32 %v15775_v57, 16  ;;  %v7704_v44 = vshrl.u32 %v15774_v34, 16  ;;  %vm19205_vm7 = vmmov %vm19196_vm0  ;;  %v15793_v62 = vld [vmem:[#allocation3 + $0x58] sm:$0xff]  }
 0x3d9   : > { %14383 = vmatmul.mubr.bf16.vlgmr.msra.gmra.mrb[0].mxu1 %v7591_v24  ;;  %v7678_v24 = vrot.slane %v7676_v1, 1  ;;  %v7671_v8 = vsel %vm19199_vm10, %v7666_v32, %v7670_v61  ;;  %v7712_v7 = vshrl.u32 %v15775_v57, 16  ;;  %v8218_v19 = vrot.slane %v15778_v52, 1  ;;  %v15797_v1 = vld [vmem:[%s18689_s3 + $0xe8] sm:$0xff]   ;;  %v15790_v32 = vld [vmem:[#allocation3 + $0x48] sm:$0xff]  }
 0x3da   : > { %14386 = vmatprep.mubr.bf16.mxu1 %v7599_v40  ;;  %14419 = vmatpush3.bf16.msra.mxu1 %v17955_v53  ;;  %v15764_v53 = vld [vmem:[%s18689_s3 + $0x98] sm:$0xff]   ;;  %v7710_v35 = vrot.slane %v7708_v30, 1  ;;  %vm19206_vm6 = vcmask 1046528   ;;  %v8221_v22 = vrot.slane %v15780_v63, 1  ;;  %v8223_v58 = vrot.slane %v15782_v17, 1  ;;  %v15809_v17 = vld [vmem:[#allocation3 + $0x20] sm:$0xff]  }
 0x3db   : > { %14420 = vmatprep.subr.bf16.mxu1 %v15758_v9  ;;  %v7682_v31 = vor.u32 %v7680_v45, %v7678_v24  ;;  %vm19207_vm9 = vmmov %vm19206_vm6  ;;  %v8227_v3 = vrot.slane %v15784_v36, 1  ;;  %v8229_v6 = vrot.slane %v15786_v46, 1  ;;  %v15808_v45 = vld [vmem:[%s18689_s3 + $0x100] sm:$0xff]   ;;  %v15796_v57 = vld [vmem:[#allocation3 + $0x68] sm:$0xff]  }
 0x3dc   : > { %v7714_v29 = vor.u32 %v7712_v7, %v7710_v35  ;;  %vm19208_vm14 = vmmov %vm19206_vm6  ;;  %v15806_v7 = vld [vmem:[#allocation3 + $0x10] sm:$0xff]  }
 0x3dd   : > { %v8224_v18 = vsel %vm19208_vm14, %v8221_v22, %v8223_v58  ;;  %vm19209_vm12 = vmmov %vm19206_vm6  ;;  %v15811_v36 = vld [vmem:[#allocation3 + $0x30] sm:$0xff]  }
 0x3de   : > { %14421 = vmatpush3.bf16.msra.mxu1 %v15758_v9  ;;  %v7672_v9 = vshrl.u32 %v15768_v5, 16  ;;  %v15788_v5 = vld [vmem:[%s18689_s3 + $0xd0] sm:$0xff]   ;;  %vm19210_vm2 = vmmov %vm19206_vm6  ;;  %v15818_v46 = vld [vmem:[%s18689_s3 + $0x118] sm:$0xff]  }
 0x3df   : > { %14422 = vmatprep.subr.bf16.mxu1 %v15761_v39  ;;  %vm19211_vm4 = vmmov %vm19210_vm2 }
 0x3e0   : > { %v7674_v40 = vor.u32 %v7672_v9, %v7670_v61  ;;  %v8230_v27 = vsel %vm19211_vm4, %v8227_v3, %v8229_v6  ;;  %v15789_v61 = vld [vmem:[#allocation3 + $0x40] sm:$0xff]   ;;  %vm19212_vm0 = vmmov %vm19210_vm2 }
 0x3e1   : > { %14387 = vmatmul.mubr.bf16.gmra.mrb[4].mxu1 %v7607_v43  ;;  %v7700_v43 = vshll.u32 %v15774_v34, 16  ;;  %v8233_v9 = vrot.slane %v15789_v61, 1  ;;  %vm19213_vm5 = vmmov %vm19212_vm0  ;;  %v8239_v34 = vrot.slane %v15793_v62, 1  ;;  %v15816_v61 = vld [vmem:[#allocation3 + $0x48] sm:$0xff]   ;;  %v15820_v62 = vld [vmem:[#allocation3 + $0x60] sm:$0xff]  }
 0x3e2   : > { %14390 = vmatprep.mubr.bf16.mxu1 %v7615_v14  ;;  %14423 = vmatpush3.bf16.msra.mxu1 %v15761_v39  ;;  %v7679_v39 = vsel %vm19200_vm15, %v7674_v40, %v7678_v24  ;;  %v7687_v14 = vsel %vm19201_vm8, %v7682_v31, %v7686_v13  ;;  %v8235_v24 = vrot.slane %v15790_v32, 1  ;;  %v15803_v40 = vld [vmem:[%s18689_s3 + $0xf8] sm:$0xff]   ;;  %vm19214_vm11 = vmmov %vm19212_vm0 }
 0x3e3   : > { %14424 = vmatprep.subr.bf16.mxu1 %v15764_v53  ;;  %v7702_v28 = vrot.slane %v7700_v43, 1  ;;  %vm19215_vm10 = vmmov %vm19212_vm0  ;;  %v8243_v43 = vrot.slane %v15796_v57, 1  ;;  %v15817_v32 = vld [vmem:[#allocation3 + $0x50] sm:$0xff]  }
 0x3e4   : > { %vm19216_vm15 = vmmov %vm19212_vm0  ;;  %v15823_v57 = vld [vmem:[#allocation3 + $0x70] sm:$0xff]  }
 0x3e5   : > { %v7706_v33 = vor.u32 %v7704_v44, %v7702_v28  ;;  %vm19217_vm8 = vmmov %vm19212_vm0  ;;  %v15801_v44 = vld [vmem:[#allocation3 + $0x80] sm:$0xff]  }
 0x3e6   : > { %14425 = vmatpush3.bf16.msra.mxu1 %v15764_v53  ;;  %v7690_v53 = vor.u32 %v7688_v16, %v7686_v13  ;;  %v15795_v16 = vld [vmem:[#allocation3 + $0x60] sm:$0xff]   ;;  %v8249_v52 = vrot.slane %v15801_v44, 1  ;;  %vm19224_vm14 = vmmov %vm19212_vm0  ;;  %v15828_v44 = vld [vmem:[#allocation3 + $0x88] sm:$0xff]  }
 0x3e7   : > { %14426 = vmatprep.subr.bf16.mxu1 %v15767_v41  ;;  %vm19227_vm4 = vmmov %vm19212_vm0 }
 0x3e8   : > { %v7695_v48 = vsel %vm19202_vm1, %v7690_v53, %v7694_v10  ;;  %v8241_v53 = vrot.slane %v15795_v16, 1  ;;  %vm19218_vm1 = vmmov %vm19212_vm0  ;;  %v15822_v16 = vld [vmem:[#allocation3 + $0x68] sm:$0xff]  }
 0x3e9   : > { %14391 = vmatmul.mubr.bf16.gmra.mrb[8].mxu1 %v7623_v4  ;;  %v7711_v4 = vsel %vm19204_vm3, %v7706_v33, %v7710_v35  ;;  %vm19220_vm3 = vmmov %vm19212_vm0  ;;  %v15802_v33 = vld [vmem:[#allocation3 + $0x88] sm:$0xff]  }
 0x3ea   : > { %14394 = vmatprep.mubr.bf16.mxu1 %v7631_v55  ;;  %14427 = vmatpush3.bf16.msra.mxu1 %v15767_v41  ;;  %v7696_v41 = vshrl.u32 %v15772_v60, 16  ;;  %v15779_v55 = vld [vmem:[#allocation3 + $0x8] sm:$0xff]   ;;  %v8244_v30 = vsel %vm19218_vm1, %v8241_v53, %v8243_v43  ;;  %vm19233_vm1 = vmmov %vm19212_vm0 }
 0x3eb   : > { %14428 = vmatprep.subr.bf16.mxu1 %v15770_v38  ;;  %v8219_v51 = vrot.slane %v15779_v55, 1  ;;  %v15800_v60 = vld [vmem:[%s18689_s3 + $0xf0] sm:$0xff]  }
 0x3ec   : > { %v7698_v50 = vor.u32 %v7696_v41, %v7694_v10  ;;  %v15799_v41 = vld [vmem:[#allocation3 + $0x78] sm:$0xff]  }
 0x3ed   : > { %v8220_v59 = vsel %vm19206_vm6, %v8218_v19, %v8219_v51  ;;  %vm19222_vm6 = vmmov %vm19212_vm0  ;;  %v8754_v19 = vrot.slane %v15806_v7, 1 }
 0x3ee   : > { %14429 = vmatpush3.bf16.msra.mxu1 %v15770_v38  ;;  %v7703_v49 = vsel %vm19203_vm13, %v7698_v50, %v7702_v28  ;;  %v7716_v38 = vshll.u32 %v15777_v47, 16  ;;  %v8247_v28 = vrot.slane %v15799_v41, 1  ;;  %vm19219_vm13 = vmmov %vm19212_vm0  ;;  %v15826_v41 = vld [vmem:[#allocation3 + $0x80] sm:$0xff]  }
 0x3ef   : > { %14430 = vmatprep.subr.bf16.mxu1 %v15773_v15 }
 0x3f1   : > { %14395 = vmatmul.mubr.bf16.gmra.mrb[12].mxu1 %v7639_v20  ;;  %v15785_v20 = vld [vmem:[%s18689_s3 + $0xc8] sm:$0xff]  }
 0x3f2   : > { %14398 = vmatprep.mubr.bf16.mxu1 %v7647_v42  ;;  %14431 = vmatpush3.bf16.msra.mxu1 %v15773_v15  ;;  %v7718_v15 = vrot.slane %v7716_v38, 1  ;;  %v8222_v42 = vsel %vm19207_vm9, %v8219_v51, %v8221_v22  ;;  %v15804_v38 = vld [vmem:[#allocation3 + $0x90] ss:$0 sps:$4 sm:$0x11]   ;;  %vm19223_vm9 = vmmov %vm19212_vm0 }
 0x3f3   : > { %14432 = vmatprep.subr.bf16.mxu1 %v15776_v37 }
 0x3f4   : > { %v7719_v54 = vsel %vm19205_vm7, %v7714_v29, %v7718_v15  ;;  %vm19221_vm7 = vmmov %vm19212_vm0  ;;  %v15805_v29 = vld [vmem:[#allocation3 + $0x8] sm:$0xfe]   ;;  %v8253_v15 = vrot.slane %v15804_v38, 1  ;;  %v8784_v38 = vrot.slane %v15828_v44, 1 }
 0x3f5   : > { %v8753_v51 = vrot.slane %v15805_v29, 1 }
 0x3f6   : > { %14433 = vmatpush3.bf16.msra.mxu1 %v15776_v37  ;;  %v15783_v37 = vld [vmem:[#allocation3 + $0x20] sm:$0xff]  }
 0x3f7   : > { %14470 = vmatprep.subr.bf16.mxu1 %v18224_v26  ;;  %v8225_v2 = vrot.slane %v15783_v37, 1  ;;  %v15812_v37 = vld [vmem:[%s18689_s3 + $0x108] sm:$0xff]  }
 0x3f9   : > { %14399 = vmatmul.mubr.bf16.gmra.mrb[16].mxu1 %v7655_v56  ;;  %v8226_v21 = vsel %vm19209_vm12, %v8223_v58, %v8225_v2  ;;  %v8228_v12 = vsel %vm19210_vm2, %v8225_v2, %v8227_v3  ;;  %v15794_v56 = vld [vmem:[%s18689_s3 + $0xe0] sm:$0xff]   ;;  %v8758_v58 = vrot.slane %v15809_v17, 1  ;;  %vm19225_vm12 = vmmov %vm19212_vm0  ;;  %v15815_v2 = vld [vmem:[%s18689_s3 + $0x110] sm:$0xff]   ;;  %v8762_v3 = vrot.slane %v15811_v36, 1 }
 0x3fa   : > { %14402 = vmatprep.mubr.bf16.mxu1 %v7663_v0  ;;  %vm19226_vm2 = vmmov %vm19212_vm0 }
 0x401   : > { %14403 = vmatmul.mubr.bf16.gmra.mrb[20].mxu1 %v7671_v8  ;;  %v15792_v8 = vld [vmem:[#allocation3 + $0x50] sm:$0xff]  }
 0x402   : > { %14406 = vmatprep.mubr.bf16.mxu1 %v7679_v39  ;;  %v8236_v39 = vsel %vm19214_vm11, %v8233_v9, %v8235_v24  ;;  %v8237_v13 = vrot.slane %v15792_v8, 1  ;;  %vm19229_vm11 = vmmov %vm19212_vm0  ;;  %v15819_v8 = vld [vmem:[#allocation3 + $0x58] sm:$0xff]  }
 0x404   : > { %v8238_v31 = vsel %vm19215_vm10, %v8235_v24, %v8237_v13  ;;  %v8240_v10 = vsel %vm19216_vm15, %v8237_v13, %v8239_v34  ;;  %v8770_v24 = vrot.slane %v15817_v32, 1  ;;  %vm19230_vm10 = vmmov %vm19212_vm0  ;;  %v8772_v13 = vrot.slane %v15819_v8, 1  ;;  %v15840_v8 = vld [vmem:[#allocation3 + $0x38] sm:$0xff]  }
 0x405   : > { %vm19231_vm15 = vmmov %vm19212_vm0 }
 0x409   : > { %14407 = vmatmul.mubr.bf16.gmra.mrb[24].mxu1 %v7687_v14  ;;  %v8242_v14 = vsel %vm19217_vm8, %v8239_v34, %v8241_v53  ;;  %v8774_v34 = vrot.slane %v15820_v62, 1  ;;  %vm19232_vm8 = vmmov %vm19212_vm0  ;;  %v8776_v53 = vrot.slane %v15822_v16, 1 }
 0x40a   : > { %14410 = vmatprep.mubr.bf16.mxu1 %v7695_v48  ;;  %v15798_v48 = vld [vmem:[#allocation3 + $0x70] sm:$0xff]  }
 0x40b   : > { %v8245_v47 = vrot.slane %v15798_v48, 1  ;;  %v15825_v48 = vld [vmem:[#allocation3 + $0x78] sm:$0xff]  }
 0x40d   : > { %v8246_v50 = vsel %vm19219_vm13, %v8243_v43, %v8245_v47  ;;  %v8248_v35 = vsel %vm19220_vm3, %v8245_v47, %v8247_v28  ;;  %v8778_v43 = vrot.slane %v15823_v57, 1  ;;  %vm19234_vm13 = vmmov %vm19212_vm0  ;;  %v8780_v47 = vrot.slane %v15825_v48, 1  ;;  %v15845_v48 = vld [vmem:[%s18689_s3 + $0x158] sm:$0xff]  }
 0x40e   : > { %vm19235_vm3 = vmmov %vm19212_vm0  ;;  %v9345_v57 = vshll.u32 %v15840_v8, 16 }
 0x411   : > { %14411 = vmatmul.mubr.bf16.gmra.mrb[28].mxu1 %v7703_v49  ;;  %v8251_v49 = vrot.slane %v15802_v33, 1  ;;  %v15829_v33 = vld [vmem:[#allocation3 + $0x90] sm:$0xff]  }
 0x412   : > { %14414 = vmatprep.mubr.bf16.mxu1 %v7711_v4  ;;  %v8250_v4 = vsel %vm19221_vm7, %v8247_v28, %v8249_v52  ;;  %v8782_v28 = vrot.slane %v15826_v41, 1  ;;  %vm19236_vm7 = vmmov %vm19212_vm0  ;;  %v9347_v41 = vrot.slane %v9345_v57, 2 }
 0x413   : > { %v8252_v55 = vsel %vm19222_vm6, %v8249_v52, %v8251_v49  ;;  %v8254_v63 = vsel %vm19223_vm9, %v8251_v49, %v8253_v15  ;;  %vm19237_vm6 = vmmov %vm19212_vm0  ;;  %v15833_v52 = vld [vmem:[#allocation3 + $0x10] sm:$0xff]   ;;  %v15832_v49 = vld [vmem:[#allocation3 + $0x8] sm:$0xfe]  }
 0x414   : > { %v9300_v7 = vshll.u32 %v15833_v52, 16  ;;  %v9289_v29 = vshrl.u32 %v15832_v49, 16  ;;  %v9292_v15 = vshll.u32 %v15832_v49, 16  ;;  %vm19238_vm9 = vmmov %vm19212_vm0 }
 0x416   : > { %v9302_v17 = vrot.slane %v9300_v7, 2 }
 0x419   : > { %14415 = vmatmul.mubr.bf16.gmra.mrb[32].mxu1 %v7719_v54  ;;  %v15807_v54 = vld [vmem:[#allocation3 + $0x18] sm:$0xff]  }
 0x41a   : > { %14434 = vmatprep.mubr.bf16.mxu1 %v8220_v59  ;;  %v8755_v59 = vsel %vm19224_vm14, %v8753_v51, %v8754_v19  ;;  %v8756_v22 = vrot.slane %v15807_v54, 1  ;;  %v15831_v51 = vld [vmem:[#allocation3 + $0x98] ss:$0 sps:$4 sm:$0x11]   ;;  %vm19239_vm14 = vmmov %vm19212_vm0 }
 0x421   : > { %14435 = vmatmul.mubr.bf16.vlgmr.msra.gmra.mrb[0].mxu1 %v8222_v42  ;;  %v15810_v42 = vld [vmem:[#allocation3 + $0x28] sm:$0xff]  }
 0x422   : > { %14438 = vmatprep.mubr.bf16.mxu1 %v8224_v18  ;;  %14471 = vmatpush3.bf16.msra.mxu1 %v18224_v26  ;;  %v15787_v26 = vld [vmem:[#allocation3 + $0x38] sm:$0xff]   ;;  %v8759_v18 = vsel %vm19226_vm2, %v8756_v22, %v8758_v58  ;;  %vm19241_vm2 = vsmask.f32 6400 }
 0x423   : > { %14472 = vmatprep.subr.bf16.mxu1 %v15785_v20  ;;  %v8231_v0 = vrot.slane %v15787_v26, 1  ;;  %v15814_v26 = vld [vmem:[#allocation3 + $0x40] sm:$0xff]  }
 0x425   : > { %v8232_v25 = vsel %vm19212_vm0, %v8229_v6, %v8231_v0  ;;  %v8234_v23 = vsel %vm19213_vm5, %v8231_v0, %v8233_v9  ;;  %v15821_v6 = vld [vmem:[%s18689_s3 + $0x120] sm:$0xff]   ;;  %v8766_v0 = vrot.slane %v15814_v26, 1  ;;  %vm19228_vm5 = vmmov %vm19212_vm0  ;;  %v8768_v9 = vrot.slane %v15816_v61, 1 }
 0x426   : > { %14473 = vmatpush3.bf16.msra.mxu1 %v15785_v20  ;;  %v8757_v20 = vsel %vm19225_vm12, %v8754_v19, %v8756_v22  ;;  %v8785_v19 = vsel %vm19238_vm9, %v8782_v28, %v8784_v38  ;;  %v15836_v22 = vld [vmem:[#allocation3 + $0x20] sm:$0xff]   ;;  %vm19240_vm12 = vmmov %vm19212_vm0 }
 0x427   : > { %14474 = vmatprep.subr.bf16.mxu1 %v15788_v5 }
 0x429   : > { %14439 = vmatmul.mubr.bf16.gmra.mrb[4].mxu1 %v8226_v21  ;;  %v15813_v21 = vld [vmem:[#allocation3 + $0x38] sm:$0xff]  }
 0x42a   : > { %14442 = vmatprep.mubr.bf16.mxu1 %v8228_v12  ;;  %14475 = vmatpush3.bf16.msra.mxu1 %v15788_v5  ;;  %v8760_v5 = vrot.slane %v15810_v42, 1 }
 0x42b   : > { %14476 = vmatprep.subr.bf16.mxu1 %v15791_v11 }
 0x42c   : > { %v8763_v12 = vsel %vm19212_vm0, %v8760_v5, %v8762_v3  ;;  %vm19243_vm0 = vmmov %vm19241_vm2 }
 0x42d   : > { %vm19254_vm9 = vmmov %vm19243_vm0 }
 0x42e   : > { %14477 = vmatpush3.bf16.msra.mxu1 %v15791_v11  ;;  %v8761_v11 = vsel %vm19227_vm4, %v8758_v58, %v8760_v5  ;;  %v9291_v58 = vrot.slane %v9289_v29, 1  ;;  %v9318_v5 = vshll.u32 %v15836_v22, 16  ;;  %vm19242_vm4 = vmmov %vm19241_vm2  ;;  %v15851_v29 = vld [vmem:[%s18689_s3 + $0x168] sm:$0xff]  }
 0x42f   : > { %14478 = vmatprep.subr.bf16.mxu1 %v15794_v56 }
 0x431   : > { %14443 = vmatmul.mubr.bf16.gmra.mrb[8].mxu1 %v8230_v27 }
 0x432   : > { %14446 = vmatprep.mubr.bf16.mxu1 %v8232_v25  ;;  %14479 = vmatpush3.bf16.msra.mxu1 %v15794_v56  ;;  %v8764_v56 = vrot.slane %v15813_v21, 1 }
 0x433   : > { %14480 = vmatprep.subr.bf16.mxu1 %v15797_v1 }
 0x434   : > { %v8765_v27 = vsel %vm19228_vm5, %v8762_v3, %v8764_v56  ;;  %v8767_v25 = vsel %vm19229_vm11, %v8764_v56, %v8766_v0  ;;  %v9320_v56 = vrot.slane %v9318_v5, 2  ;;  %vm19244_vm5 = vmmov %vm19243_vm0  ;;  %v15857_v5 = vld [vmem:[%s18689_s3 + $0x178] sm:$0xff]  }
 0x435   : > { %vm19245_vm11 = vmmov %vm19243_vm0 }
 0x436   : > { %14481 = vmatpush3.bf16.msra.mxu1 %v15797_v1  ;;  %v15824_v1 = vld [vmem:[%s18689_s3 + $0x128] sm:$0xff]  }
 0x437   : > { %14482 = vmatprep.subr.bf16.mxu1 %v15800_v60 }
 0x439   : > { %14447 = vmatmul.mubr.bf16.gmra.mrb[12].mxu1 %v8234_v23  ;;  %v8769_v23 = vsel %vm19230_vm10, %v8766_v0, %v8768_v9  ;;  %v15838_v0 = vld [vmem:[#allocation3 + $0x30] sm:$0xff]   ;;  %vm19246_vm10 = vmmov %vm19243_vm0 }
 0x43a   : > { %14450 = vmatprep.mubr.bf16.mxu1 %v8236_v39  ;;  %14483 = vmatpush3.bf16.msra.mxu1 %v15800_v60  ;;  %v15827_v60 = vld [vmem:[%s18689_s3 + $0x130] sm:$0xff]   ;;  %v8771_v39 = vsel %vm19231_vm15, %v8768_v9, %v8770_v24  ;;  %v9333_v32 = vshrl.u32 %v15838_v0, 16  ;;  %v15839_v9 = vld [vmem:[%s18689_s3 + $0x148] sm:$0xff]   ;;  %vm19247_vm15 = vmmov %vm19243_vm0 }
 0x43b   : > { %14484 = vmatprep.subr.bf16.mxu1 %v15803_v40 }
 0x43c   : > { %v9335_v62 = vrot.slane %v9333_v32, 1 }
 0x43e   : > { %14485 = vmatpush3.bf16.msra.mxu1 %v15803_v40  ;;  %v15830_v40 = vld [vmem:[%s18689_s3 + $0x138] sm:$0xff]  }
 0x43f   : > { %14522 = vmatprep.subr.bf16.mxu1 %v15808_v45 }
 0x441   : > { %14451 = vmatmul.mubr.bf16.gmra.mrb[16].mxu1 %v8238_v31  ;;  %v8773_v31 = vsel %vm19232_vm8, %v8770_v24, %v8772_v13  ;;  %vm19248_vm8 = vmmov %vm19243_vm0 }
 0x442   : > { %14454 = vmatprep.mubr.bf16.mxu1 %v8240_v10  ;;  %v8775_v10 = vsel %vm19233_vm1, %v8772_v13, %v8774_v34  ;;  %vm19249_vm1 = vmmov %vm19243_vm0 }
 0x449   : > { %14455 = vmatmul.mubr.bf16.gmra.mrb[20].mxu1 %v8242_v14  ;;  %v8777_v14 = vsel %vm19234_vm13, %v8774_v34, %v8776_v53  ;;  %v15841_v34 = vld [vmem:[#allocation3 + $0x40] sm:$0xff]   ;;  %vm19250_vm13 = vmmov %vm19243_vm0 }
 0x44a   : > { %14458 = vmatprep.mubr.bf16.mxu1 %v8244_v30  ;;  %v8779_v30 = vsel %vm19235_vm3, %v8776_v53, %v8778_v43  ;;  %vm19251_vm3 = vmmov %vm19243_vm0 }
 0x451   : > { %14459 = vmatmul.mubr.bf16.gmra.mrb[24].mxu1 %v8246_v50  ;;  %v8781_v50 = vsel %vm19236_vm7, %v8778_v43, %v8780_v47  ;;  %v9351_v43 = vshrl.u32 %v15841_v34, 16  ;;  %vm19252_vm7 = vmmov %vm19243_vm0 }
 0x452   : > { %14462 = vmatprep.mubr.bf16.mxu1 %v8248_v35  ;;  %v8783_v35 = vsel %vm19237_vm6, %v8780_v47, %v8782_v28  ;;  %v15843_v47 = vld [vmem:[#allocation3 + $0x48] sm:$0xff]   ;;  %vm19253_vm6 = vmmov %vm19243_vm0 }
 0x453   : > { %v9360_v49 = vshrl.u32 %v15843_v47, 16 }
 0x459   : > { %14463 = vmatmul.mubr.bf16.gmra.mrb[28].mxu1 %v8250_v4  ;;  %v8786_v4 = vrot.slane %v15829_v33, 1  ;;  %v15848_v33 = vld [vmem:[%s18689_s3 + $0x160] sm:$0xff]  }
 0x45a   : > { %14466 = vmatprep.mubr.bf16.mxu1 %v8252_v55  ;;  %v9297_v55 = vshrl.u32 %v15833_v52, 16 }
 0x45b   : > { %v8787_v54 = vsel %vm19239_vm14, %v8784_v38, %v8786_v4  ;;  %v9363_v38 = vshll.u32 %v15843_v47, 16  ;;  %vm19255_vm14 = vmmov %vm19243_vm0 }
 0x461   : > { %14467 = vmatmul.mubr.bf16.gmra.mrb[32].mxu1 %v8254_v63  ;;  %v15834_v63 = vld [vmem:[#allocation3 + $0x18] sm:$0xff]  }
 0x462   : > { %14486 = vmatprep.mubr.bf16.mxu1 %v8755_v59  ;;  %v9299_v59 = vrot.slane %v9297_v55, 1  ;;  %v9306_v42 = vshrl.u32 %v15834_v63, 16 }
 0x464   : > { %v9303_v36 = vor.u32 %v9302_v17, %v9299_v59 }
 0x469   : > { %14487 = vmatmul.mubr.bf16.vlgmr.msra.gmra.mrb[0].mxu1 %v8757_v20  ;;  %v8788_v20 = vrot.slane %v15831_v51, 1  ;;  %v9365_v51 = vrot.slane %v9363_v38, 2 }
 0x46a   : > { %14490 = vmatprep.mubr.bf16.mxu1 %v8759_v18  ;;  %14523 = vmatpush3.bf16.msra.mxu1 %v15808_v45  ;;  %v18312_v45 = vld [vmem:[%s18689_s3 + $0x140] sm:$0xff]   ;;  %v9309_v18 = vshll.u32 %v15834_v63, 16 }
 0x46b   : > { %14524 = vmatprep.subr.bf16.mxu1 %v15812_v37  ;;  %v15846_v63 = vld [vmem:[#allocation3 + $0x58] sm:$0xff]  }
 0x46c   : > { %v9311_v21 = vrot.slane %v9309_v18, 2 }
 0x46e   : > { %14525 = vmatpush3.bf16.msra.mxu1 %v15812_v37  ;;  %v9294_v37 = vrot.slane %v9292_v15, 2 }
 0x46f   : > { %14526 = vmatprep.subr.bf16.mxu1 %v15815_v2 }
 0x470   : > { %v9295_v3 = vor.u32 %v9294_v37, %v9291_v58  ;;  %v15854_v58 = vld [vmem:[%s18689_s3 + $0x170] sm:$0xff]  }
 0x471   : > { %14491 = vmatmul.mubr.bf16.gmra.mrb[4].mxu1 %v8761_v11  ;;  %v9308_v11 = vrot.slane %v9306_v42, 1  ;;  %v9381_v42 = vshll.u32 %v15846_v63, 16 }
 0x472   : > { %14494 = vmatprep.mubr.bf16.mxu1 %v8763_v12  ;;  %14527 = vmatpush3.bf16.msra.mxu1 %v15815_v2  ;;  %v9315_v2 = vshrl.u32 %v15836_v22, 16  ;;  %v15837_v12 = vld [vmem:[#allocation3 + $0x28] sm:$0xff]   ;;  %v9304_v26 = vsel %vm19241_vm2, %v9295_v3, %v9303_v36  ;;  %v15847_v22 = vld [vmem:[#allocation3 + $0x60] sm:$0xff]   ;;  %vm19257_vm2 = vmmov %vm19243_vm0 }
 0x473   : > { %14528 = vmatprep.subr.bf16.mxu1 %v15818_v46  ;;  %v9327_v61 = vshll.u32 %v15837_v12, 16 }
 0x476   : > { %14529 = vmatpush3.bf16.msra.mxu1 %v15818_v46  ;;  %v8789_v46 = vsel %vm19240_vm12, %v8786_v4, %v8788_v20  ;;  %v9378_v20 = vshrl.u32 %v15846_v63, 16  ;;  %vm19256_vm12 = vmmov %vm19243_vm0 }
 0x477   : > { %14530 = vmatprep.subr.bf16.mxu1 %v15821_v6 }
 0x479   : > { %14495 = vmatmul.mubr.bf16.gmra.mrb[8].mxu1 %v8765_v27  ;;  %v9324_v27 = vshrl.u32 %v15837_v12, 16 }
 0x47a   : > { %14498 = vmatprep.mubr.bf16.mxu1 %v8767_v25  ;;  %14531 = vmatpush3.bf16.msra.mxu1 %v15821_v6  ;;  %v9317_v6 = vrot.slane %v9315_v2, 1  ;;  %v9390_v2 = vshll.u32 %v15847_v22, 16 }
 0x47b   : > { %14532 = vmatprep.subr.bf16.mxu1 %v15824_v1 }
 0x47c   : > { %v9321_v25 = vor.u32 %v9320_v56, %v9317_v6  ;;  %v9392_v6 = vrot.slane %v9390_v2, 2  ;;  %v15850_v56 = vld [vmem:[#allocation3 + $0x70] sm:$0xff]  }
 0x47d   : > { %v9405_v32 = vshrl.u32 %v15850_v56, 16 }
 0x47e   : > { %14533 = vmatpush3.bf16.msra.mxu1 %v15824_v1  ;;  %v9312_v1 = vor.u32 %v9311_v21, %v9308_v11  ;;  %v9383_v11 = vrot.slane %v9381_v42, 2  ;;  %v15849_v21 = vld [vmem:[#allocation3 + $0x68] sm:$0xff]  }
 0x47f   : > { %14534 = vmatprep.subr.bf16.mxu1 %v15827_v60  ;;  %v15859_v42 = vld [vmem:[#allocation3 + $0x8] sm:$0xfc]  }
 0x480   : > { %v9313_v24 = vsel %vm19242_vm4, %v9303_v36, %v9312_v1  ;;  %v9387_v36 = vshrl.u32 %v15847_v22, 16  ;;  %v9956_v2 = vrot.slane %v15859_v42, 2  ;;  %vm19258_vm4 = vmmov %vm19243_vm0  ;;  %v15886_v42 = vld [vmem:[#allocation3 + $0x10] sm:$0xfc]  }
 0x481   : > { %14499 = vmatmul.mubr.bf16.gmra.mrb[12].mxu1 %v8769_v23  ;;  %v9329_v23 = vrot.slane %v9327_v61, 2  ;;  %v9399_v61 = vshll.u32 %v15849_v21, 16 }
 0x482   : > { %14502 = vmatprep.mubr.bf16.mxu1 %v8771_v39  ;;  %14535 = vmatpush3.bf16.msra.mxu1 %v15827_v60  ;;  %v9336_v60 = vshll.u32 %v15838_v0, 16  ;;  %v9322_v39 = vsel %vm19243_vm0, %v9312_v1, %v9321_v25  ;;  %v18358_v0 = vld [vmem:[%s18689_s3 + $0x180] sm:$0xff]   ;;  %vm19259_vm0 = vcmask 1045504  }
 0x483   : > { %14536 = vmatprep.subr.bf16.mxu1 %v15830_v40 }
 0x484   : > { %v9338_v13 = vrot.slane %v9336_v60, 2  ;;  %v9408_v60 = vshll.u32 %v15850_v56, 16  ;;  %v15864_v56 = vld [vmem:[#allocation3 + $0x28] sm:$0xff]  }
 0x486   : > { %14537 = vmatpush3.bf16.msra.mxu1 %v15830_v40  ;;  %v9326_v40 = vrot.slane %v9324_v27, 1  ;;  %v9339_v53 = vor.u32 %v9338_v13, %v9335_v62  ;;  %v9396_v27 = vshrl.u32 %v15849_v21, 16  ;;  %v9410_v62 = vrot.slane %v9408_v60, 2  ;;  %v15853_v13 = vld [vmem:[#allocation3 + $0x80] sm:$0xff]   ;;  %v15872_v60 = vld [vmem:[%s18689_s3 + $0x198] sm:$0xff]  }
 0x487   : > { %14574 = vmatprep.subr.bf16.mxu1 %v18312_v45  ;;  %v9423_v57 = vshrl.u32 %v15853_v13, 16 }
 0x488   : > { %v9330_v16 = vor.u32 %v9329_v23, %v9326_v40  ;;  %v9401_v40 = vrot.slane %v9399_v61, 2  ;;  %v15852_v23 = vld [vmem:[#allocation3 + $0x78] sm:$0xff]   ;;  %v15869_v61 = vld [vmem:[%s18689_s3 + $0x190] sm:$0xff]  }
 0x489   : > { %14503 = vmatmul.mubr.bf16.gmra.mrb[16].mxu1 %v8773_v31  ;;  %v15842_v31 = vld [vmem:[%s18689_s3 + $0x150] sm:$0xff]  }
 0x48a   : > { %14506 = vmatprep.mubr.bf16.mxu1 %v8775_v10  ;;  %v9342_v10 = vshrl.u32 %v15840_v8, 16  ;;  %v9340_v28 = vsel %vm19245_vm11, %v9330_v16, %v9339_v53  ;;  %vm19261_vm11 = vmmov %vm19259_vm0 }
 0x491   : > { %14507 = vmatmul.mubr.bf16.gmra.mrb[20].mxu1 %v8777_v14  ;;  %v9354_v14 = vshll.u32 %v15841_v34, 16 }
 0x492   : > { %14510 = vmatprep.mubr.bf16.mxu1 %v8779_v30  ;;  %v9331_v30 = vsel %vm19244_vm5, %v9321_v25, %v9330_v16  ;;  %v9417_v16 = vshll.u32 %v15852_v23, 16  ;;  %vm19260_vm5 = vmmov %vm19259_vm0 }
 0x493   : > { %v9356_v44 = vrot.slane %v9354_v14, 2 }
 0x499   : > { %14511 = vmatmul.mubr.bf16.gmra.mrb[24].mxu1 %v8781_v50  ;;  %v9353_v50 = vrot.slane %v9351_v43, 1 }
 0x49a   : > { %14514 = vmatprep.mubr.bf16.mxu1 %v8783_v35  ;;  %v15844_v35 = vld [vmem:[#allocation3 + $0x50] sm:$0xff]  }
 0x49b   : > { %v9357_v4 = vor.u32 %v9356_v44, %v9353_v50  ;;  %v9369_v55 = vshrl.u32 %v15844_v35, 16  ;;  %v9372_v7 = vshll.u32 %v15844_v35, 16 }
 0x49d   : > { %v9371_v59 = vrot.slane %v9369_v55, 1  ;;  %v9374_v17 = vrot.slane %v9372_v7, 2  ;;  %v15858_v7 = vld [vmem:[#allocation3 + $0x98] ss:$0 sps:$4 sm:$0x33]  }
 0x49e   : > { %v9450_v63 = vshrl.u32 %v15858_v7, 16 }
 0x49f   : > { %v9375_v18 = vor.u32 %v9374_v17, %v9371_v59 }
 0x4a0   : > { %v9452_v22 = vrot.slane %v9450_v63, 1 }
 0x4a1   : > { %14515 = vmatmul.mubr.bf16.gmra.mrb[28].mxu1 %v8785_v19  ;;  %v9362_v19 = vrot.slane %v9360_v49, 1 }
 0x4a2   : > { %14518 = vmatprep.mubr.bf16.mxu1 %v8787_v54 }
 0x4a3   : > { %v9366_v37 = vor.u32 %v9365_v51, %v9362_v19 }
 0x4a5   : > { %v9367_v3 = vsel %vm19248_vm8, %v9357_v4, %v9366_v37  ;;  %v9376_v12 = vsel %vm19249_vm1, %v9366_v37, %v9375_v18  ;;  %vm19264_vm8 = vmmov %vm19259_vm0 }
 0x4a6   : > { %vm19265_vm1 = vmmov %vm19259_vm0 }
 0x4a9   : > { %14519 = vmatmul.mubr.bf16.gmra.mrb[32].mxu1 %v8789_v46  ;;  %v9380_v46 = vrot.slane %v9378_v20, 1  ;;  %v15860_v20 = vld [vmem:[#allocation3 + $0x10] sm:$0xff]  }
 0x4aa   : > { %14538 = vmatprep.mubr.bf16.mxu1 %v9304_v26  ;;  %v9389_v26 = vrot.slane %v9387_v36, 1  ;;  %v9957_v36 = vrot.slane %v15860_v20, 2  ;;  %v15887_v20 = vld [vmem:[#allocation3 + $0x18] sm:$0xff]  }
 0x4ab   : > { %v9384_v1 = vor.u32 %v9383_v11, %v9380_v46  ;;  %v15863_v11 = vld [vmem:[#allocation3 + $0x20] sm:$0xff]  }
 0x4ac   : > { %v9393_v25 = vor.u32 %v9392_v6, %v9389_v26  ;;  %v9958_v46 = vsel %vm19259_vm0, %v9956_v2, %v9957_v36  ;;  %v15866_v26 = vld [vmem:[%s18689_s3 + $0x188] sm:$0xff]   ;;  %v10491_v2 = vrot.slane %v15886_v42, 2 }
 0x4ae   : > { %v9394_v8 = vsel %vm19251_vm3, %v9384_v1, %v9393_v25  ;;  %vm19267_vm3 = vmmov %vm19259_vm0 }
 0x4b1   : > { %14539 = vmatmul.mubr.bf16.vlgmr.msra.gmra.mrb[0].mxu1 %v9313_v24  ;;  %v9398_v24 = vrot.slane %v9396_v27, 1  ;;  %v15865_v27 = vld [vmem:[#allocation3 + $0x30] sm:$0xff]  }
 0x4b2   : > { %14542 = vmatprep.mubr.bf16.mxu1 %v9322_v39  ;;  %14575 = vmatpush3.bf16.msra.mxu1 %v18312_v45  ;;  %v9344_v45 = vrot.slane %v9342_v10, 1  ;;  %v9407_v39 = vrot.slane %v9405_v32, 1  ;;  %v9965_v32 = vrot.slane %v15865_v27, 2  ;;  %v15892_v27 = vld [vmem:[#allocation3 + $0x38] sm:$0xff]  }
 0x4b3   : > { %14576 = vmatprep.subr.bf16.mxu1 %v15839_v9  ;;  %v9402_v34 = vor.u32 %v9401_v40, %v9398_v24  ;;  %v15867_v24 = vld [vmem:[#allocation3 + $0x38] sm:$0xff]  }
 0x4b4   : > { %v9348_v52 = vor.u32 %v9347_v41, %v9344_v45  ;;  %v9411_v10 = vor.u32 %v9410_v62, %v9407_v39  ;;  %v9425_v41 = vrot.slane %v9423_v57, 1  ;;  %v15878_v62 = vld [vmem:[%s18689_s3 + $0x1a8] sm:$0xff]  }
 0x4b5   : > { %v9403_v43 = vsel %vm19252_vm7, %v9393_v25, %v9402_v34  ;;  %v9963_v25 = vrot.slane %v15864_v56, 2  ;;  %vm19268_vm7 = vmmov %vm19259_vm0  ;;  %v15891_v56 = vld [vmem:[#allocation3 + $0x30] sm:$0xff]  }
 0x4b6   : > { %14577 = vmatpush3.bf16.msra.mxu1 %v15839_v9  ;;  %v9349_v15 = vsel %vm19246_vm10, %v9339_v53, %v9348_v52  ;;  %v9358_v54 = vsel %vm19247_vm15, %v9348_v52, %v9357_v4  ;;  %v9385_v9 = vsel %vm19250_vm13, %v9375_v18, %v9384_v1  ;;  %v9426_v53 = vshll.u32 %v15853_v13, 16  ;;  %vm19262_vm10 = vmmov %vm19259_vm0 }
 0x4b7   : > { %14578 = vmatprep.subr.bf16.mxu1 %v15842_v31  ;;  %v9412_v45 = vsel %vm19253_vm6, %v9402_v34, %v9411_v10  ;;  %vm19263_vm15 = vmmov %vm19259_vm0  ;;  %v15870_v34 = vld [vmem:[#allocation3 + $0x48] sm:$0xff]  }
 0x4b8   : > { %v9428_v47 = vrot.slane %v9426_v53, 2  ;;  %v9966_v40 = vsel %vm19263_vm15, %v9963_v25, %v9965_v32  ;;  %v9971_v57 = vrot.slane %v15870_v34, 2  ;;  %vm19266_vm13 = vmmov %vm19259_vm0  ;;  %v15897_v34 = vld [vmem:[#allocation3 + $0x50] sm:$0xff]  }
 0x4b9   : > { %14543 = vmatmul.mubr.bf16.gmra.mrb[4].mxu1 %v9331_v30  ;;  %v15855_v30 = vld [vmem:[#allocation3 + $0x88] sm:$0xff]   ;;  %vm19269_vm6 = vmmov %vm19259_vm0 }
 0x4ba   : > { %14546 = vmatprep.mubr.bf16.mxu1 %v9340_v28  ;;  %14579 = vmatpush3.bf16.msra.mxu1 %v15842_v31  ;;  %v9414_v31 = vshrl.u32 %v15852_v23, 16  ;;  %v15856_v28 = vld [vmem:[#allocation3 + $0x90] sm:$0xff]   ;;  %v9432_v44 = vshrl.u32 %v15855_v30, 16  ;;  %v9435_v35 = vshll.u32 %v15855_v30, 16  ;;  %vm19278_vm15 = vmmov %vm19259_vm0 }
 0x4bb   : > { %14580 = vmatprep.subr.bf16.mxu1 %v15845_v48  ;;  %v9441_v52 = vshrl.u32 %v15856_v28, 16  ;;  %v9444_v49 = vshll.u32 %v15856_v28, 16  ;;  %v15875_v23 = vld [vmem:[%s18689_s3 + $0x1a0] sm:$0xff]  }
 0x4bc   : > { %v9416_v14 = vrot.slane %v9414_v31, 1  ;;  %v9434_v4 = vrot.slane %v9432_v44, 1  ;;  %v9437_v55 = vrot.slane %v9435_v35, 2  ;;  %v15876_v44 = vld [vmem:[#allocation3 + $0x68] sm:$0xff]  }
 0x4bd   : > { %v9446_v19 = vrot.slane %v9444_v49, 2 }
 0x4be   : > { %14581 = vmatpush3.bf16.msra.mxu1 %v15845_v48  ;;  %v9419_v48 = vrot.slane %v9417_v16, 2  ;;  %v9438_v51 = vor.u32 %v9437_v55, %v9434_v4  ;;  %v15871_v16 = vld [vmem:[#allocation3 + $0x50] sm:$0xff]   ;;  %v15879_v4 = vld [vmem:[#allocation3 + $0x78] sm:$0xff]  }
 0x4bf   : > { %14582 = vmatprep.subr.bf16.mxu1 %v15848_v33  ;;  %v9973_v53 = vrot.slane %v15871_v16, 2  ;;  %v15898_v16 = vld [vmem:[#allocation3 + $0x58] sm:$0xff]  }
 0x4c0   : > { %v9420_v50 = vor.u32 %v9419_v48, %v9416_v14  ;;  %v15873_v48 = vld [vmem:[#allocation3 + $0x58] sm:$0xff]  }
 0x4c1   : > { %14547 = vmatmul.mubr.bf16.gmra.mrb[8].mxu1 %v9349_v15  ;;  %v9443_v15 = vrot.slane %v9441_v52, 1  ;;  %v9974_v30 = vsel %vm19267_vm3, %v9971_v57, %v9973_v53  ;;  %v9979_v52 = vrot.slane %v15876_v44, 2  ;;  %vm19282_vm3 = vmmov %vm19259_vm0  ;;  %v15903_v44 = vld [vmem:[#allocation3 + $0x70] sm:$0xff]  }
 0x4c2   : > { %14550 = vmatprep.mubr.bf16.mxu1 %v9358_v54  ;;  %14583 = vmatpush3.bf16.msra.mxu1 %v15848_v33  ;;  %v9429_v33 = vor.u32 %v9428_v47, %v9425_v41  ;;  %v9421_v38 = vsel %vm19254_vm9, %v9411_v10, %v9420_v50  ;;  %v9453_v54 = vshll.u32 %v15858_v7, 16  ;;  %v15881_v10 = vld [vmem:[%s18689_s3 + $0x1b0] sm:$0xff]   ;;  %v15889_v41 = vld [vmem:[%s18689_s3 + $0x1c0] sm:$0xff]   ;;  %v9975_v47 = vrot.slane %v15873_v48, 2  ;;  %vm19270_vm9 = vmmov %vm19259_vm0 }
 0x4c3   : > { %14584 = vmatprep.subr.bf16.mxu1 %v15851_v29  ;;  %v9447_v59 = vor.u32 %v9446_v19, %v9443_v15  ;;  %v15880_v7 = vld [vmem:[#allocation3 + $0x80] sm:$0xff]  }
 0x4c4   : > { %v9439_v17 = vsel %vm19256_vm12, %v9429_v33, %v9438_v51  ;;  %v9985_v15 = vrot.slane %v15880_v7, 2  ;;  %vm19272_vm12 = vmmov %vm19259_vm0  ;;  %v15900_v48 = vld [vmem:[#allocation3 + $0x60] sm:$0xff]   ;;  %v15907_v7 = vld [vmem:[#allocation3 + $0x88] sm:$0xff]  }
 0x4c5   : > { %v9448_v37 = vsel %vm19257_vm2, %v9438_v51, %v9447_v59  ;;  %v15882_v51 = vld [vmem:[#allocation3 + $0x88] sm:$0xff]   ;;  %vm19273_vm2 = vmmov %vm19259_vm0 }
 0x4c6   : > { %14585 = vmatpush3.bf16.msra.mxu1 %v15851_v29  ;;  %v9430_v29 = vsel %vm19255_vm14, %v9420_v50, %v9429_v33  ;;  %v9976_v50 = vsel %vm19268_vm7, %v9973_v53, %v9975_v47  ;;  %v15877_v33 = vld [vmem:[#allocation3 + $0x70] sm:$0xff]   ;;  %vm19271_vm14 = vmmov %vm19259_vm0  ;;  %v10508_v53 = vrot.slane %v15898_v16, 2 }
 0x4c7   : > { %14586 = vmatprep.subr.bf16.mxu1 %v15854_v58  ;;  %v9981_v49 = vrot.slane %v15877_v33, 2  ;;  %vm19283_vm7 = vmmov %vm19259_vm0  ;;  %v15904_v33 = vld [vmem:[#allocation3 + $0x78] sm:$0xff]  }
 0x4c9   : > { %14551 = vmatmul.mubr.bf16.gmra.mrb[12].mxu1 %v9367_v3  ;;  %v15861_v3 = vld [vmem:[#allocation3 + $0x18] sm:$0xff]   ;;  %v9982_v55 = vsel %vm19271_vm14, %v9979_v52, %v9981_v49  ;;  %vm19286_vm14 = vmmov %vm19259_vm0 }
 0x4ca   : > { %14554 = vmatprep.mubr.bf16.mxu1 %v9376_v12  ;;  %14587 = vmatpush3.bf16.msra.mxu1 %v15854_v58  ;;  %v9455_v58 = vrot.slane %v9453_v54, 2  ;;  %v9959_v21 = vrot.slane %v15861_v3, 2  ;;  %v9961_v12 = vrot.slane %v15863_v11, 2  ;;  %v15883_v54 = vld [vmem:[#allocation3 + $0x90] sm:$0xff]   ;;  %v15888_v3 = vld [vmem:[#allocation3 + $0x20] sm:$0xff]   ;;  %v15890_v11 = vld [vmem:[#allocation3 + $0x28] sm:$0xff]  }
 0x4cb   : > { %14588 = vmatprep.subr.bf16.mxu1 %v15857_v5 }
 0x4cc   : > { %v9456_v18 = vor.u32 %v9455_v58, %v9452_v22  ;;  %v9960_v6 = vsel %vm19260_vm5, %v9957_v36, %v9959_v21  ;;  %v9962_v1 = vsel %vm19261_vm11, %v9959_v21, %v9961_v12  ;;  %v15885_v58 = vld [vmem:[#allocation3 + $0x98] ss:$0 sps:$4 sm:$0x33]   ;;  %v10492_v36 = vrot.slane %v15887_v20, 2  ;;  %vm19275_vm5 = vmmov %vm19259_vm0 }
 0x4cd   : > { %vm19276_vm11 = vmmov %vm19259_vm0  ;;  %v10494_v21 = vrot.slane %v15888_v3, 2 }
 0x4ce   : > { %14589 = vmatpush3.bf16.msra.mxu1 %v15857_v5  ;;  %v9457_v5 = vsel %vm19258_vm4, %v9447_v59, %v9456_v18  ;;  %v9987_v59 = vrot.slane %v15882_v51, 2  ;;  %vm19274_vm4 = vmmov %vm19259_vm0  ;;  %v9991_v18 = vrot.slane %v15885_v58, 2  ;;  %v15909_v51 = vld [vmem:[#allocation3 + $0x90] sm:$0xff]  }
 0x4cf   : > { %14626 = vmatprep.subr.bf16.mxu1 %v18358_v0 }
 0x4d0   : > { %v9988_v22 = vsel %vm19274_vm4, %v9985_v15, %v9987_v59  ;;  %vm19289_vm4 = vmmov %vm19259_vm0 }
 0x4d1   : > { %14555 = vmatmul.mubr.bf16.gmra.mrb[16].mxu1 %v9385_v9  ;;  %v9964_v9 = vsel %vm19262_vm10, %v9961_v12, %v9963_v25  ;;  %v10496_v12 = vrot.slane %v15890_v11, 2  ;;  %vm19277_vm10 = vmmov %vm19259_vm0  ;;  %v10498_v25 = vrot.slane %v15891_v56, 2 }
 0x4d2   : > { %14558 = vmatprep.mubr.bf16.mxu1 %v9394_v8  ;;  %v9967_v8 = vrot.slane %v15867_v24, 2  ;;  %v15894_v24 = vld [vmem:[#allocation3 + $0x40] sm:$0xff]  }
 0x4d4   : > { %v9968_v13 = vsel %vm19264_vm8, %v9965_v32, %v9967_v8  ;;  %v10500_v32 = vrot.slane %v15892_v27, 2  ;;  %vm19279_vm8 = vmmov %vm19259_vm0 }
 0x4d9   : > { %14559 = vmatmul.mubr.bf16.gmra.mrb[20].mxu1 %v9403_v43  ;;  %v15884_v43 = vld [vmem:[%s18689_s3 + $0x1b8] sm:$0xff]  }
 0x4da   : > { %14562 = vmatprep.mubr.bf16.mxu1 %v9412_v45  ;;  %v15874_v45 = vld [vmem:[#allocation3 + $0x60] sm:$0xff]  }
 0x4db   : > { %v9977_v28 = vrot.slane %v15874_v45, 2  ;;  %v15901_v45 = vld [vmem:[#allocation3 + $0x68] sm:$0xff]  }
 0x4dd   : > { %v9978_v35 = vsel %vm19269_vm6, %v9975_v47, %v9977_v28  ;;  %vm19284_vm6 = vmmov %vm19259_vm0  ;;  %v10510_v47 = vrot.slane %v15900_v48, 2  ;;  %v15921_v48 = vld [vmem:[#allocation3 + $0x40] sm:$0xff]  }
 0x4e1   : > { %14563 = vmatmul.mubr.bf16.gmra.mrb[24].mxu1 %v9421_v38  ;;  %v9980_v38 = vsel %vm19270_vm9, %v9977_v28, %v9979_v52  ;;  %v10512_v28 = vrot.slane %v15901_v45, 2  ;;  %vm19285_vm9 = vmmov %vm19259_vm0  ;;  %v10514_v52 = vrot.slane %v15903_v44, 2 }
 0x4e2   : > { %14566 = vmatprep.mubr.bf16.mxu1 %v9430_v29  ;;  %v9983_v29 = vrot.slane %v15879_v4, 2  ;;  %v15906_v4 = vld [vmem:[#allocation3 + $0x80] sm:$0xff]  }
 0x4e4   : > { %v9984_v19 = vsel %vm19272_vm12, %v9981_v49, %v9983_v29  ;;  %v9986_v63 = vsel %vm19273_vm2, %v9983_v29, %v9985_v15  ;;  %v10516_v49 = vrot.slane %v15904_v33, 2  ;;  %vm19287_vm12 = vmmov %vm19259_vm0  ;;  %v10518_v29 = vrot.slane %v15906_v4, 2  ;;  %v15926_v4 = vld [vmem:[%s18689_s3 + $0x218] sm:$0xff]  }
 0x4e5   : > { %vm19288_vm2 = vmmov %vm19259_vm0  ;;  %v10520_v15 = vrot.slane %v15907_v7, 2  ;;  %v11083_v33 = vshll.u32 %v15921_v48, 16 }
 0x4e7   : > { %v11085_v7 = vrot.slane %v11083_v33, 3 }
 0x4e9   : > { %14567 = vmatmul.mubr.bf16.gmra.mrb[28].mxu1 %v9439_v17  ;;  %v9989_v17 = vrot.slane %v15883_v54, 2  ;;  %v15910_v54 = vld [vmem:[#allocation3 + $0x98] sm:$0xff]  }
 0x4ea   : > { %14570 = vmatprep.mubr.bf16.mxu1 %v9448_v37  ;;  %v10524_v58 = vrot.slane %v15910_v54, 2  ;;  %v15929_v54 = vld [vmem:[%s18689_s3 + $0x220] sm:$0xff]  }
 0x4eb   : > { %v9990_v37 = vsel %vm19259_vm0, %v9987_v59, %v9989_v17  ;;  %v15914_v59 = vld [vmem:[#allocation3 + $0x18] sm:$0xff]  }
 0x4ec   : > { %v11038_v20 = vshll.u32 %v15914_v59, 16 }
 0x4ee   : > { %v11040_v11 = vrot.slane %v11038_v20, 3 }
 0x4f1   : > { %14571 = vmatmul.mubr.bf16.gmra.mrb[32].mxu1 %v9457_v5  ;;  %v9992_v5 = vsel %vm19275_vm5, %v9989_v17, %v9991_v18  ;;  %v15913_v17 = vld [vmem:[#allocation3 + $0x10] sm:$0xfc]   ;;  %vm19290_vm5 = vmmov %vm19259_vm0 }
 0x4f2   : > { %14590 = vmatprep.mubr.bf16.mxu1 %v9958_v46  ;;  %v10493_v46 = vsel %vm19276_vm11, %v10491_v2, %v10492_v36  ;;  %v11027_v42 = vshrl.u32 %v15913_v17, 16  ;;  %v11030_v18 = vshll.u32 %v15913_v17, 16  ;;  %v15912_v2 = vld [vmem:[#allocation3 + $0xa0] ss:$0 sps:$4 sm:$0x33]   ;;  %vm19291_vm11 = vmmov %vm19259_vm0 }
 0x4f9   : > { %14591 = vmatmul.mubr.bf16.vlgmr.msra.gmra.mrb[0].mxu1 %v9960_v6  ;;  %v10495_v6 = vsel %vm19277_vm10, %v10492_v36, %v10494_v21  ;;  %vm19292_vm10 = vmmov %vm19259_vm0 }
 0x4fa   : > { %14594 = vmatprep.mubr.bf16.mxu1 %v9962_v1  ;;  %14627 = vmatpush3.bf16.msra.mxu1 %v18358_v0  ;;  %v15868_v0 = vld [vmem:[#allocation3 + $0x40] sm:$0xff]   ;;  %v10497_v1 = vsel %vm19278_vm15, %v10494_v21, %v10496_v12  ;;  %v15917_v21 = vld [vmem:[#allocation3 + $0x28] sm:$0xff]   ;;  %vm19293_vm15 = vsmask.f32 5376 }
 0x4fb   : > { %14628 = vmatprep.subr.bf16.mxu1 %v15866_v26  ;;  %v9969_v39 = vrot.slane %v15868_v0, 2  ;;  %v15895_v0 = vld [vmem:[#allocation3 + $0x48] sm:$0xff]  }
 0x4fd   : > { %v9970_v31 = vsel %vm19265_vm1, %v9967_v8, %v9969_v39  ;;  %v9972_v14 = vsel %vm19266_vm13, %v9969_v39, %v9971_v57  ;;  %vm19280_vm1 = vmmov %vm19259_vm0  ;;  %v10502_v8 = vrot.slane %v15894_v24, 2  ;;  %v10504_v39 = vrot.slane %v15895_v0, 2 }
 0x4fe   : > { %14629 = vmatpush3.bf16.msra.mxu1 %v15866_v26  ;;  %v15893_v26 = vld [vmem:[%s18689_s3 + $0x1c8] sm:$0xff]   ;;  %vm19281_vm13 = vmmov %vm19259_vm0  ;;  %v10506_v57 = vrot.slane %v15897_v34, 2 }
 0x4ff   : > { %14630 = vmatprep.subr.bf16.mxu1 %v15869_v61 }
 0x501   : > { %14595 = vmatmul.mubr.bf16.gmra.mrb[4].mxu1 %v9964_v9  ;;  %v10499_v9 = vsel %vm19279_vm8, %v10496_v12, %v10498_v25  ;;  %v11029_v12 = vrot.slane %v11027_v42, 2  ;;  %vm19294_vm8 = vmmov %vm19293_vm15  ;;  %v15932_v42 = vld [vmem:[%s18689_s3 + $0x228] sm:$0xff]  }
 0x502   : > { %14598 = vmatprep.mubr.bf16.mxu1 %v9966_v40  ;;  %14631 = vmatpush3.bf16.msra.mxu1 %v15869_v61  ;;  %v15896_v61 = vld [vmem:[%s18689_s3 + $0x1d0] sm:$0xff]   ;;  %v10501_v40 = vsel %vm19280_vm1, %v10498_v25, %v10500_v32  ;;  %v11056_v25 = vshll.u32 %v15917_v21, 16  ;;  %vm19295_vm1 = vmmov %vm19294_vm8 }
 0x503   : > { %14632 = vmatprep.subr.bf16.mxu1 %v15872_v60 }
 0x506   : > { %14633 = vmatpush3.bf16.msra.mxu1 %v15872_v60  ;;  %v15899_v60 = vld [vmem:[%s18689_s3 + $0x1d8] sm:$0xff]  }
 0x507   : > { %14634 = vmatprep.subr.bf16.mxu1 %v15875_v23 }
 0x509   : > { %14599 = vmatmul.mubr.bf16.gmra.mrb[8].mxu1 %v9968_v13  ;;  %v10503_v13 = vsel %vm19281_vm13, %v10500_v32, %v10502_v8  ;;  %vm19296_vm13 = vmmov %vm19295_vm1 }
 0x50a   : > { %14602 = vmatprep.mubr.bf16.mxu1 %v9970_v31  ;;  %14635 = vmatpush3.bf16.msra.mxu1 %v15875_v23  ;;  %v15902_v23 = vld [vmem:[%s18689_s3 + $0x1e0] sm:$0xff]   ;;  %v10505_v31 = vsel %vm19282_vm3, %v10502_v8, %v10504_v39  ;;  %v11058_v8 = vrot.slane %v11056_v25, 3  ;;  %vm19297_vm3 = vmmov %vm19295_vm1  ;;  %v15938_v25 = vld [vmem:[%s18689_s3 + $0x238] sm:$0xff]  }
 0x50b   : > { %14636 = vmatprep.subr.bf16.mxu1 %v15878_v62 }
 0x50e   : > { %14637 = vmatpush3.bf16.msra.mxu1 %v15878_v62  ;;  %v15905_v62 = vld [vmem:[%s18689_s3 + $0x1e8] sm:$0xff]  }
 0x50f   : > { %14638 = vmatprep.subr.bf16.mxu1 %v15881_v10 }
 0x511   : > { %14603 = vmatmul.mubr.bf16.gmra.mrb[12].mxu1 %v9972_v14  ;;  %v10507_v14 = vsel %vm19283_vm7, %v10504_v39, %v10506_v57  ;;  %v15919_v39 = vld [vmem:[#allocation3 + $0x38] sm:$0xff]   ;;  %vm19298_vm7 = vmmov %vm19295_vm1 }
 0x512   : > { %14606 = vmatprep.mubr.bf16.mxu1 %v9974_v30  ;;  %14639 = vmatpush3.bf16.msra.mxu1 %v15881_v10  ;;  %v15908_v10 = vld [vmem:[%s18689_s3 + $0x1f0] sm:$0xff]   ;;  %v10509_v30 = vsel %vm19284_vm6, %v10506_v57, %v10508_v53  ;;  %v11071_v16 = vshrl.u32 %v15919_v39, 16  ;;  %v15920_v57 = vld [vmem:[%s18689_s3 + $0x208] sm:$0xff]   ;;  %vm19299_vm6 = vmmov %vm19295_vm1 }
 0x513   : > { %14640 = vmatprep.subr.bf16.mxu1 %v15884_v43 }
 0x514   : > { %v11073_v45 = vrot.slane %v11071_v16, 2 }
 0x516   : > { %14641 = vmatpush3.bf16.msra.mxu1 %v15884_v43  ;;  %v15911_v43 = vld [vmem:[%s18689_s3 + $0x1f8] sm:$0xff]  }
 0x517   : > { %14678 = vmatprep.subr.bf16.mxu1 %v15889_v41 }
 0x519   : > { %14607 = vmatmul.mubr.bf16.gmra.mrb[16].mxu1 %v9976_v50  ;;  %v10511_v50 = vsel %vm19285_vm9, %v10508_v53, %v10510_v47  ;;  %vm19300_vm9 = vmmov %vm19295_vm1 }
 0x51a   : > { %14610 = vmatprep.mubr.bf16.mxu1 %v9978_v35  ;;  %v10513_v35 = vsel %vm19286_vm14, %v10510_v47, %v10512_v28  ;;  %vm19301_vm14 = vmmov %vm19295_vm1 }
 0x521   : > { %14611 = vmatmul.mubr.bf16.gmra.mrb[20].mxu1 %v9980_v38  ;;  %v10515_v38 = vsel %vm19287_vm12, %v10512_v28, %v10514_v52  ;;  %v15922_v28 = vld [vmem:[#allocation3 + $0x48] sm:$0xff]   ;;  %vm19302_vm12 = vmmov %vm19295_vm1 }
 0x522   : > { %14614 = vmatprep.mubr.bf16.mxu1 %v9982_v55  ;;  %v10517_v55 = vsel %vm19288_vm2, %v10514_v52, %v10516_v49  ;;  %vm19303_vm2 = vmmov %vm19295_vm1 }
 0x529   : > { %14615 = vmatmul.mubr.bf16.gmra.mrb[24].mxu1 %v9984_v19  ;;  %v10519_v19 = vsel %vm19289_vm4, %v10516_v49, %v10518_v29  ;;  %v11089_v49 = vshrl.u32 %v15922_v28, 16  ;;  %vm19304_vm4 = vmmov %vm19295_vm1 }
 0x52a   : > { %14618 = vmatprep.mubr.bf16.mxu1 %v9986_v63  ;;  %v10521_v63 = vsel %vm19259_vm0, %v10518_v29, %v10520_v15  ;;  %v15924_v29 = vld [vmem:[#allocation3 + $0x50] sm:$0xff]   ;;  %vm19305_vm0 = vmmov %vm19295_vm1 }
 0x52b   : > { %v11098_v17 = vshrl.u32 %v15924_v29, 16 }
 0x531   : > { %14619 = vmatmul.mubr.bf16.gmra.mrb[28].mxu1 %v9988_v22  ;;  %v10522_v22 = vrot.slane %v15909_v51, 2 }
 0x532   : > { %14622 = vmatprep.mubr.bf16.mxu1 %v9990_v37  ;;  %v11035_v37 = vshrl.u32 %v15914_v59, 16 }
 0x533   : > { %v10523_v36 = vsel %vm19290_vm5, %v10520_v15, %v10522_v22  ;;  %v10525_v3 = vsel %vm19291_vm11, %v10522_v22, %v10524_v58  ;;  %v11101_v22 = vshll.u32 %v15924_v29, 16  ;;  %v15937_v29 = vld [vmem:[#allocation3 + $0x98] sm:$0xff]   ;;  %vm19306_vm5 = vmmov %vm19305_vm0 }
 0x534   : > { %vm19307_vm11 = vmmov %vm19305_vm0 }
 0x539   : > { %14623 = vmatmul.mubr.bf16.gmra.mrb[32].mxu1 %v9992_v5  ;;  %v15915_v5 = vld [vmem:[#allocation3 + $0x20] sm:$0xff]  }
 0x53a   : > { %14642 = vmatprep.mubr.bf16.mxu1 %v10493_v46  ;;  %v11037_v46 = vrot.slane %v11035_v37, 2  ;;  %v11044_v56 = vshrl.u32 %v15915_v5, 16 }
 0x53c   : > { %v11041_v27 = vor.u32 %v11040_v11, %v11037_v46 }
 0x541   : > { %14643 = vmatmul.mubr.bf16.vlgmr.msra.gmra.mrb[0].mxu1 %v10495_v6  ;;  %v10526_v6 = vrot.slane %v15912_v2, 2  ;;  %v11103_v2 = vrot.slane %v11101_v22, 3 }
 0x542   : > { %14646 = vmatprep.mubr.bf16.mxu1 %v10497_v1  ;;  %14679 = vmatpush3.bf16.msra.mxu1 %v15889_v41  ;;  %v18446_v41 = vld [vmem:[%s18689_s3 + $0x200] sm:$0xff]   ;;  %v11047_v1 = vshll.u32 %v15915_v5, 16  ;;  %v15927_v5 = vld [vmem:[#allocation3 + $0x60] sm:$0xff]  }
 0x543   : > { %14680 = vmatprep.subr.bf16.mxu1 %v15893_v26 }
 0x544   : > { %v11049_v24 = vrot.slane %v11047_v1, 3 }
 0x546   : > { %14681 = vmatpush3.bf16.msra.mxu1 %v15893_v26  ;;  %v11032_v26 = vrot.slane %v11030_v18, 3 }
 0x547   : > { %14682 = vmatprep.subr.bf16.mxu1 %v15896_v61 }
 0x548   : > { %v11033_v32 = vor.u32 %v11032_v26, %v11029_v12  ;;  %v15935_v12 = vld [vmem:[%s18689_s3 + $0x230] sm:$0xff]  }
 0x549   : > { %14647 = vmatmul.mubr.bf16.gmra.mrb[4].mxu1 %v10499_v9  ;;  %v11046_v9 = vrot.slane %v11044_v56, 2  ;;  %v11119_v56 = vshll.u32 %v15927_v5, 16 }
 0x54a   : > { %14650 = vmatprep.mubr.bf16.mxu1 %v10501_v40  ;;  %14683 = vmatpush3.bf16.msra.mxu1 %v15896_v61  ;;  %v11053_v61 = vshrl.u32 %v15917_v21, 16  ;;  %v15918_v40 = vld [vmem:[#allocation3 + $0x30] sm:$0xff]   ;;  %v11042_v0 = vsel %vm19293_vm15, %v11033_v32, %v11041_v27  ;;  %v15928_v21 = vld [vmem:[#allocation3 + $0x68] sm:$0xff]   ;;  %vm19309_vm15 = vmmov %vm19305_vm0 }
 0x54b   : > { %14684 = vmatprep.subr.bf16.mxu1 %v15899_v60  ;;  %v11065_v34 = vshll.u32 %v15918_v40, 16 }
 0x54e   : > { %14685 = vmatpush3.bf16.msra.mxu1 %v15899_v60  ;;  %v10527_v60 = vsel %vm19292_vm10, %v10524_v58, %v10526_v6  ;;  %v11116_v6 = vshrl.u32 %v15927_v5, 16  ;;  %vm19308_vm10 = vmmov %vm19305_vm0 }
 0x54f   : > { %14686 = vmatprep.subr.bf16.mxu1 %v15902_v23 }
 0x551   : > { %14651 = vmatmul.mubr.bf16.gmra.mrb[8].mxu1 %v10503_v13  ;;  %v11062_v13 = vshrl.u32 %v15918_v40, 16 }
 0x552   : > { %14654 = vmatprep.mubr.bf16.mxu1 %v10505_v31  ;;  %14687 = vmatpush3.bf16.msra.mxu1 %v15902_v23  ;;  %v11055_v23 = vrot.slane %v11053_v61, 2  ;;  %v11128_v61 = vshll.u32 %v15928_v21, 16 }
 0x553   : > { %14688 = vmatprep.subr.bf16.mxu1 %v15905_v62 }
 0x554   : > { %v11059_v31 = vor.u32 %v11058_v8, %v11055_v23  ;;  %v11130_v23 = vrot.slane %v11128_v61, 3  ;;  %v15931_v8 = vld [vmem:[#allocation3 + $0x78] sm:$0xff]  }
 0x555   : > { %v11146_v16 = vshll.u32 %v15931_v8, 16 }
 0x556   : > { %14689 = vmatpush3.bf16.msra.mxu1 %v15905_v62  ;;  %v11050_v62 = vor.u32 %v11049_v24, %v11046_v9  ;;  %v11121_v9 = vrot.slane %v11119_v56, 3  ;;  %v15930_v24 = vld [vmem:[#allocation3 + $0x70] sm:$0xff]  }
 0x557   : > { %14690 = vmatprep.subr.bf16.mxu1 %v15908_v10 }
 0x558   : > { %v11051_v53 = vsel %vm19294_vm8, %v11041_v27, %v11050_v62  ;;  %v11125_v27 = vshrl.u32 %v15928_v21, 16  ;;  %vm19310_vm8 = vmmov %vm19305_vm0 }
 0x559   : > { %14655 = vmatmul.mubr.bf16.gmra.mrb[12].mxu1 %v10507_v14  ;;  %v11067_v14 = vrot.slane %v11065_v34, 3 }
 0x55a   : > { %14658 = vmatprep.mubr.bf16.mxu1 %v10509_v30  ;;  %14691 = vmatpush3.bf16.msra.mxu1 %v15908_v10  ;;  %v11074_v10 = vshll.u32 %v15919_v39, 16  ;;  %v11060_v30 = vsel %vm19295_vm1, %v11050_v62, %v11059_v31  ;;  %v11134_v62 = vshrl.u32 %v15930_v24, 16  ;;  %vm19311_vm1 = vcmask 1044480  }
 0x55b   : > { %14692 = vmatprep.subr.bf16.mxu1 %v15911_v43 }
 0x55c   : > { %v11076_v47 = vrot.slane %v11074_v10, 3 }
 0x55e   : > { %14693 = vmatpush3.bf16.msra.mxu1 %v15911_v43  ;;  %v11064_v43 = vrot.slane %v11062_v13, 2  ;;  %v11077_v52 = vor.u32 %v11076_v47, %v11073_v45  ;;  %v11137_v13 = vshll.u32 %v15930_v24, 16  ;;  %v15934_v45 = vld [vmem:[#allocation3 + $0x88] sm:$0xff]  }
 0x55f   : > { %14730 = vmatprep.subr.bf16.mxu1 %v18446_v41  ;;  %v11164_v33 = vshll.u32 %v15934_v45, 16 }
 0x560   : > { %v11068_v44 = vor.u32 %v11067_v14, %v11064_v43  ;;  %v15933_v43 = vld [vmem:[#allocation3 + $0x80] sm:$0xff]  }
 0x561   : > { %14659 = vmatmul.mubr.bf16.gmra.mrb[16].mxu1 %v10511_v50  ;;  %v15923_v50 = vld [vmem:[%s18689_s3 + $0x210] sm:$0xff]  }
 0x562   : > { %14662 = vmatprep.mubr.bf16.mxu1 %v10513_v35  ;;  %v11080_v35 = vshrl.u32 %v15921_v48, 16  ;;  %v11078_v15 = vsel %vm19297_vm3, %v11068_v44, %v11077_v52  ;;  %vm19313_vm3 = vmmov %vm19311_vm1 }
 0x569   : > { %14663 = vmatmul.mubr.bf16.gmra.mrb[20].mxu1 %v10515_v38  ;;  %v11092_v38 = vshll.u32 %v15922_v28, 16  ;;  %v11152_v28 = vshrl.u32 %v15933_v43, 16 }
 0x56a   : > { %14666 = vmatprep.mubr.bf16.mxu1 %v10517_v55  ;;  %v11069_v55 = vsel %vm19296_vm13, %v11059_v31, %v11068_v44  ;;  %v11143_v31 = vshrl.u32 %v15931_v8, 16  ;;  %vm19312_vm13 = vmmov %vm19311_vm1  ;;  %v15945_v8 = vld [vmem:[#allocation3 + $0x38] sm:$0xff]  }
 0x56b   : > { %v11094_v51 = vrot.slane %v11092_v38, 3 }
 0x56c   : > { %v11145_v48 = vrot.slane %v11143_v31, 2 }
 0x571   : > { %14667 = vmatmul.mubr.bf16.gmra.mrb[24].mxu1 %v10519_v19  ;;  %v11091_v19 = vrot.slane %v11089_v49, 2  ;;  %v11154_v49 = vrot.slane %v11152_v28, 2  ;;  %v15950_v28 = vld [vmem:[#allocation3 + $0x60] sm:$0xff]  }
 0x572   : > { %14670 = vmatprep.mubr.bf16.mxu1 %v10521_v63  ;;  %v15925_v63 = vld [vmem:[#allocation3 + $0x58] sm:$0xff]  }
 0x573   : > { %v11095_v58 = vor.u32 %v11094_v51, %v11091_v19  ;;  %v11107_v37 = vshrl.u32 %v15925_v63, 16  ;;  %v11110_v20 = vshll.u32 %v15925_v63, 16 }
 0x575   : > { %v11109_v46 = vrot.slane %v11107_v37, 2  ;;  %v11112_v11 = vrot.slane %v11110_v20, 3  ;;  %v15939_v37 = vld [vmem:[#allocation3 + $0xa0] ss:$0 sps:$4 sm:$0x77]  }
 0x576   : > { %v11191_v5 = vshll.u32 %v15939_v37, 16 }
 0x577   : > { %v11113_v1 = vor.u32 %v11112_v11, %v11109_v46 }
 0x578   : > { %v11193_v21 = vrot.slane %v11191_v5, 3  ;;  %v12084_v5 = vld [vmem:[%s16120_s15 + $0x23] sm:$0xff] }
 0x579   : > { %14671 = vmatmul.mubr.bf16.gmra.mrb[28].mxu1 %v10523_v36  ;;  %v11100_v36 = vrot.slane %v11098_v17, 2 }
 0x57a   : > { %14674 = vmatprep.mubr.bf16.mxu1 %v10525_v3 }
 0x57b   : > { %v11104_v26 = vor.u32 %v11103_v2, %v11100_v36  ;;  %v11188_v2 = vshrl.u32 %v15939_v37, 16 }
 0x57d   : > { %v11105_v32 = vsel %vm19300_vm9, %v11095_v58, %v11104_v26  ;;  %v11114_v40 = vsel %vm19301_vm14, %v11104_v26, %v11113_v1  ;;  %v11190_v11 = vrot.slane %v11188_v2, 2  ;;  %v15941_v26 = vld [vmem:[#allocation3 + $0x18] sm:$0xff]   ;;  %vm19316_vm9 = vmmov %vm19311_vm1 }
 0x57e   : > { %vm19317_vm14 = vmmov %vm19311_vm1 }
 0x57f   : > { %v11194_v56 = vor.u32 %v11193_v21, %v11190_v11  ;;  %v18524_v11 = vld [vmem:[%s18690_s4] ss:$0 sm:$0xff]  ;;  %v12085_v21 = vld [vmem:[%s16120_s15 + $0x2b] sm:$0xff] }
 0x581   : > { %14675 = vmatmul.mubr.bf16.gmra.mrb[32].mxu1 %v10527_v60  ;;  %v11118_v60 = vrot.slane %v11116_v6, 2  ;;  %v15940_v6 = vld [vmem:[#allocation3 + $0x10] sm:$0xf8]  }
 0x582   : > { %14694 = vmatprep.mubr.bf16.mxu1 %v11042_v0  ;;  %v11127_v0 = vrot.slane %v11125_v27, 2  ;;  %v11694_v27 = vrot.slane %v15940_v6, 3  ;;  %v12083_v6 = vld [vmem:[%s16120_s15 + $0x1b] sm:$0xff] }
 0x583   : > { %v11122_v39 = vor.u32 %v11121_v9, %v11118_v60  ;;  %v15943_v60 = vld [vmem:[#allocation3 + $0x28] sm:$0xff]  }
 0x584   : > { %v11131_v34 = vor.u32 %v11130_v23, %v11127_v0  ;;  %v11699_v24 = vrot.slane %v15943_v60, 3  ;;  %v15944_v0 = vld [vmem:[#allocation3 + $0x30] sm:$0xff]  }
 0x585   : > { %v11123_v10 = vsel %vm19302_vm12, %v11113_v1, %v11122_v39  ;;  %v11695_v1 = vrot.slane %v15941_v26, 3  ;;  %vm19318_vm12 = vmmov %vm19311_vm1 }
 0x586   : > { %v11132_v14 = vsel %vm19303_vm2, %v11122_v39, %v11131_v34  ;;  %v11701_v39 = vrot.slane %v15944_v0, 3  ;;  %vm19319_vm2 = vmmov %vm19311_vm1  ;;  %v12086_v0 = vld [vmem:[%s16120_s15 + $0x33] sm:$0xff] }
 0x589   : > { %14695 = vmatmul.mubr.bf16.vlgmr.msra.gmra.mrb[0].mxu1 %v11051_v53  ;;  %v11139_v53 = vrot.slane %v11137_v13, 3 }
 0x58a   : > { %14698 = vmatprep.mubr.bf16.mxu1 %v11060_v30  ;;  %14731 = vmatpush3.bf16.msra.mxu1 %v18446_v41  ;;  %v11082_v41 = vrot.slane %v11080_v35, 2  ;;  %v11148_v30 = vrot.slane %v11146_v16, 3  ;;  %v11161_v35 = vshrl.u32 %v15934_v45, 16  ;;  %v15947_v16 = vld [vmem:[#allocation3 + $0x48] sm:$0xff]  }
 0x58b   : > { %14732 = vmatprep.subr.bf16.mxu1 %v15920_v57 }
 0x58c   : > { %v11086_v59 = vor.u32 %v11085_v7, %v11082_v41  ;;  %v11149_v44 = vor.u32 %v11148_v30, %v11145_v48  ;;  %v11163_v41 = vrot.slane %v11161_v35, 2  ;;  %v11166_v7 = vrot.slane %v11164_v33, 3  ;;  %v15949_v48 = vld [vmem:[#allocation3 + $0x58] sm:$0xff]  }
 0x58d   : > { %v11711_v45 = vrot.slane %v15949_v48, 3  ;;  %v11713_v35 = vrot.slane %v15950_v28, 3  ;;  %v12093_v28 = vld [vmem:[%s16120_s15 + $0x6b] sm:$0xff] }
 0x58e   : > { %14733 = vmatpush3.bf16.msra.mxu1 %v15920_v57  ;;  %v11087_v18 = vsel %vm19298_vm7, %v11077_v52, %v11086_v59  ;;  %v11096_v3 = vsel %vm19299_vm6, %v11086_v59, %v11095_v58  ;;  %v11136_v57 = vrot.slane %v11134_v62, 2  ;;  %v11167_v63 = vor.u32 %v11166_v7, %v11163_v41  ;;  %vm19314_vm7 = vmmov %vm19311_vm1 }
 0x58f   : > { %14734 = vmatprep.subr.bf16.mxu1 %v15923_v50  ;;  %v11182_v59 = vshll.u32 %v15937_v29, 16  ;;  %v11703_v62 = vrot.slane %v15945_v8, 3  ;;  %v11702_v13 = vsel %vm19314_vm7, %v11699_v24, %v11701_v39  ;;  %vm19315_vm6 = vmmov %vm19311_vm1  ;;  %v12089_v8 = vld [vmem:[%s16120_s15 + $0x4b] sm:$0xff] }
 0x590   : > { %v11140_v47 = vor.u32 %v11139_v53, %v11136_v57  ;;  %v11707_v57 = vrot.slane %v15947_v16, 3 }
 0x591   : > { %14699 = vmatmul.mubr.bf16.gmra.mrb[4].mxu1 %v11069_v55  ;;  %v11704_v31 = vsel %vm19315_vm6, %v11701_v39, %v11703_v62 }
 0x592   : > { %14702 = vmatprep.mubr.bf16.mxu1 %v11078_v15  ;;  %14735 = vmatpush3.bf16.msra.mxu1 %v15923_v50  ;;  %v11155_v50 = vshll.u32 %v15933_v43, 16  ;;  %v11141_v52 = vsel %vm19304_vm4, %v11131_v34, %v11140_v47  ;;  %v11150_v55 = vsel %vm19305_vm0, %v11140_v47, %v11149_v44  ;;  %v15946_v34 = vld [vmem:[#allocation3 + $0x40] sm:$0xff]   ;;  %v15948_v43 = vld [vmem:[#allocation3 + $0x50] sm:$0xff]   ;;  %vm19320_vm4 = vmmov %vm19311_vm1 }
 0x593   : > { %14736 = vmatprep.subr.bf16.mxu1 %v15926_v4  ;;  %v11709_v30 = vrot.slane %v15948_v43, 3  ;;  %vm19321_vm0 = vmmov %vm19311_vm1 }
 0x594   : > { %v11157_v38 = vrot.slane %v11155_v50, 3 }
 0x595   : > { %v11710_v47 = vsel %vm19318_vm12, %v11707_v57, %v11709_v30  ;;  %v11712_v50 = vsel %vm19319_vm2, %v11709_v30, %v11711_v45  ;;  %v12092_v30 = vld [vmem:[%s16120_s15 + $0x63] sm:$0xff] }
 0x596   : > { %14737 = vmatpush3.bf16.msra.mxu1 %v15926_v4  ;;  %v15936_v4 = vld [vmem:[#allocation3 + $0x90] sm:$0xff]   ;;  %v11158_v15 = vor.u32 %v11157_v38, %v11154_v49 }
 0x597   : > { %14738 = vmatprep.subr.bf16.mxu1 %v15929_v54  ;;  %v11170_v19 = vshrl.u32 %v15936_v4, 16  ;;  %v11173_v51 = vshll.u32 %v15936_v4, 16  ;;  %v15952_v49 = vld [vmem:[#allocation3 + $0x70] sm:$0xff]   ;;  %v15953_v4 = vld [vmem:[#allocation3 + $0x78] sm:$0xff]  }
 0x598   : > { %v11159_v17 = vsel %vm19306_vm5, %v11149_v44, %v11158_v15  ;;  %v11168_v20 = vsel %vm19307_vm11, %v11158_v15, %v11167_v63  ;;  %v15951_v44 = vld [vmem:[#allocation3 + $0x68] sm:$0xff]   ;;  %v11719_v41 = vrot.slane %v15953_v4, 3  ;;  %vm19322_vm5 = vmmov %vm19321_vm0 }
 0x599   : > { %14703 = vmatmul.mubr.bf16.gmra.mrb[8].mxu1 %v11087_v18  ;;  %v11172_v22 = vrot.slane %v11170_v19, 2  ;;  %v11175_v58 = vrot.slane %v11173_v51, 3  ;;  %v11184_v18 = vrot.slane %v11182_v59, 3  ;;  %v11715_v33 = vrot.slane %v15951_v44, 3  ;;  %vm19323_vm11 = vmmov %vm19321_vm0  ;;  %v15955_v19 = vld [vmem:[#allocation3 + $0x88] sm:$0xff]   ;;  %v15956_v59 = vld [vmem:[#allocation3 + $0x90] sm:$0xff]  }
 0x59a   : > { %14706 = vmatprep.mubr.bf16.mxu1 %v11096_v3  ;;  %14739 = vmatpush3.bf16.msra.mxu1 %v15929_v54  ;;  %v11179_v54 = vshrl.u32 %v15937_v29, 16  ;;  %v15954_v29 = vld [vmem:[#allocation3 + $0x80] sm:$0xff]  }
 0x59b   : > { %14740 = vmatprep.subr.bf16.mxu1 %v15932_v42  ;;  %v11176_v36 = vor.u32 %v11175_v58, %v11172_v22  ;;  %v11716_v38 = vsel %vm19321_vm0, %v11713_v35, %v11715_v33  ;;  %v11721_v51 = vrot.slane %v15954_v29, 3  ;;  %v15957_v22 = vld [vmem:[#allocation3 + $0x98] sm:$0xff]   ;;  %v11725_v58 = vrot.slane %v15956_v59, 3 }
 0x59c   : > { %v11727_v37 = vrot.slane %v15957_v22, 3 }
 0x59d   : > { %v11177_v46 = vsel %vm19308_vm10, %v11167_v63, %v11176_v36  ;;  %v11723_v63 = vrot.slane %v15955_v19, 3  ;;  %vm19324_vm10 = vmmov %vm19321_vm0  ;;  %v12094_v19 = vld [vmem:[%s16120_s15 + $0x73] sm:$0xff] }
 0x59e   : > { %14741 = vmatpush3.bf16.msra.mxu1 %v15932_v42  ;;  %v11181_v42 = vrot.slane %v11179_v54, 2  ;;  %v11722_v54 = vsel %vm19324_vm10, %v11719_v41, %v11721_v51 }
 0x59f   : > { %14742 = vmatprep.subr.bf16.mxu1 %v15935_v12 }
 0x5a0   : > { %v11185_v3 = vor.u32 %v11184_v18, %v11181_v42  ;;  %v15958_v42 = vld [vmem:[#allocation3 + $0xa0] ss:$0 sps:$4 sm:$0x77]  }
 0x5a1   : > { %14707 = vmatmul.mubr.bf16.gmra.mrb[12].mxu1 %v11105_v32  ;;  %v11696_v32 = vsel %vm19311_vm1, %v11694_v27, %v11695_v1  ;;  %vm19327_vm1 = vmmov %vm19321_vm0 }
 0x5a2   : > { %14710 = vmatprep.mubr.bf16.mxu1 %v11114_v40  ;;  %14743 = vmatpush3.bf16.msra.mxu1 %v15935_v12  ;;  %v11186_v12 = vsel %vm19309_vm15, %v11176_v36, %v11185_v3  ;;  %v11195_v61 = vsel %vm19310_vm8, %v11185_v3, %v11194_v56  ;;  %vm19325_vm15 = vmmov %vm19321_vm0  ;;  %v11728_v18 = vsel %vm19327_vm1, %v11725_v58, %v11727_v37  ;;  %v11729_v36 = vrot.slane %v15958_v42, 3  ;;  %v12082_v3 = vld [vmem:[%s16120_s15 + $0x13] sm:$0xff] }
 0x5a3   : > { %14744 = vmatprep.subr.bf16.mxu1 %v15938_v25  ;;  %vm19326_vm8 = vmmov %vm19321_vm0 }
 0x5a6   : > { %14745 = vmatpush3.bf16.msra.mxu1 %v15938_v25  ;;  %v15942_v25 = vld [vmem:[#allocation3 + $0x20] sm:$0xff]  }
 0x5a7   : > { %v11697_v9 = vrot.slane %v15942_v25, 3 }
 0x5a9   : > { %14711 = vmatmul.mubr.bf16.gmra.mrb[16].mxu1 %v11123_v10  ;;  %v11698_v40 = vsel %vm19312_vm13, %v11695_v1, %v11697_v9  ;;  %v11700_v23 = vsel %vm19313_vm3, %v11697_v9, %v11699_v24  ;;  %v11705_v10 = vrot.slane %v15946_v34, 3  ;;  %vm19328_vm13 = vmmov %vm19321_vm0 }
 0x5aa   : > { %14714 = vmatprep.mubr.bf16.mxu1 %v11132_v14  ;;  %v11730_v2 = vsel %vm19328_vm13, %v11727_v37, %v11729_v36 }
 0x5ab   : > { %v11706_v53 = vsel %vm19316_vm9, %v11703_v62, %v11705_v10  ;;  %v11708_v14 = vsel %vm19317_vm14, %v11705_v10, %v11707_v57 }
 0x5b1   : > { %14715 = vmatmul.mubr.bf16.gmra.mrb[20].mxu1 %v11141_v52  ;;  %v11714_v52 = vsel %vm19320_vm4, %v11711_v45, %v11713_v35  ;;  %v12090_v45 = vld [vmem:[%s16120_s15 + $0x53] sm:$0xff]  ;;  %v12091_v35 = vld [vmem:[%s16120_s15 + $0x5b] sm:$0xff] }
 0x5b2   : > { %14718 = vmatprep.mubr.bf16.mxu1 %v11150_v55  ;;  %v11717_v55 = vrot.slane %v15952_v49, 3 }
 0x5b4   : > { %v11718_v7 = vsel %vm19322_vm5, %v11715_v33, %v11717_v55  ;;  %v11720_v15 = vsel %vm19323_vm11, %v11717_v55, %v11719_v41 }
 0x5b9   : > { %14719 = vmatmul.mubr.bf16.gmra.mrb[24].mxu1 %v11159_v17  ;;  %v11724_v17 = vsel %vm19325_vm15, %v11721_v51, %v11723_v63 }
 0x5ba   : > { %14722 = vmatprep.mubr.bf16.mxu1 %v11168_v20  ;;  %v11726_v20 = vsel %vm19326_vm8, %v11723_v63, %v11725_v58  ;;  %v12097_v63 = vld [vmem:[%s16120_s15 + $0x8b] sm:$0xff] }
 0x5c1   : > { %14723 = vmatmul.mubr.bf16.gmra.mrb[28].mxu1 %v11177_v46 }
 0x5c2   : > { %14726 = vmatprep.mubr.bf16.mxu1 %v11186_v12 }
 0x5c9   : > { %14727 = vmatmul.mubr.bf16.gmra.mrb[32].mxu1 %v11195_v61 }
 0x5ca   : > { %14746 = vmatprep.mubr.bf16.mxu1 %v11696_v32 }
 0x5d1   : > { %14747 = vmatmul.mubr.bf16.vlgmr.msra.gmra.mrb[0].mxu1 %v11698_v40  ;;  %v12088_v40 = vld [vmem:[%s16120_s15 + $0x43] sm:$0xff] }
 0x5d2   : > { %14750 = vmatprep.mubr.bf16.mxu1 %v11700_v23 }
 0x5d9   : > { %14751 = vmatmul.mubr.bf16.gmra.mrb[4].mxu1 %v11702_v13  ;;  %v12087_v13 = vld [vmem:[%s16120_s15 + $0x3b] sm:$0xff] }
 0x5da   : > { %14754 = vmatprep.mubr.bf16.mxu1 %v11704_v31 }
 0x5e1   : > { %14755 = vmatmul.mubr.bf16.gmra.mrb[8].mxu1 %v11706_v53 }
 0x5e2   : > { %14758 = vmatprep.mubr.bf16.mxu1 %v11708_v14 }
 0x5e9   : > { %14759 = vmatmul.mubr.bf16.gmra.mrb[12].mxu1 %v11710_v47 }
 0x5ea   : > { %14762 = vmatprep.mubr.bf16.mxu1 %v11712_v50 }
 0x5f1   : > { %14763 = vmatmul.mubr.bf16.gmra.mrb[16].mxu1 %v11714_v52 }
 0x5f2   : > { %14766 = vmatprep.mubr.bf16.mxu1 %v11716_v38 }
 0x5f9   : > { %14767 = vmatmul.mubr.bf16.gmra.mrb[20].mxu1 %v11718_v7 }
 0x5fa   : > { %14770 = vmatprep.mubr.bf16.mxu1 %v11720_v15  ;;  %v12096_v15 = vld [vmem:[%s16120_s15 + $0x83] sm:$0xff] }
 0x601   : > { %14771 = vmatmul.mubr.bf16.gmra.mrb[24].mxu1 %v11722_v54 }
 0x602   : > { %14774 = vmatprep.mubr.bf16.mxu1 %v11724_v17  ;;  %v12095_v17 = vld [vmem:[%s16120_s15 + $0x7b] sm:$0xff] }
 0x609   : > { %14775 = vmatmul.mubr.bf16.gmra.mrb[28].mxu1 %v11726_v20 }
 0x60a   : > { %14778 = vmatprep.mubr.bf16.mxu1 %v11728_v18 }
 0x611   : > { %14779 = vmatmul.mubr.bf16.gmra.mrb[32].mxu1 %v11730_v2 }
 0x6a4   : > { %v14748_v46 = vpop.f32.mrb[0].mxu1 }
 0x6a5   : > { %v12156_v12 = vadd.f32 %v14748_v46, %v12084_v5  ;;  %v11831_v26 = vpop.f32.mrb[1].mxu1  ;;  %v12098_v46 = vld [vmem:[%s16120_s15 + $0x93] sm:$0xff] }
 0x6a6   : > { %v12154_v56 = vadd.f32 %v12082_v3, %v11831_v26  ;;  %v14749_v1 = vpop.f32.mrb[2].mxu1  ;;  %v12100_v3 = vld [vmem:[%s16120_s15 + $0xa3] sm:$0xff] }
 0x6a7   : > { %v12199_v27 = vadd.f32 %v18524_v11, %v12156_v12  ;;  %v12157_v61 = vadd.f32 %v14749_v1, %v12085_v21  ;;  %v11834_v25 = vpop.f32.mrb[3].mxu1  ;;  %v12101_v12 = vld [vmem:[%s16120_s15 + $0xab] sm:$0xff] }
 0x6a8   : > { %v12197_v32 = vadd.f32 %v18524_v11, %v12154_v56  ;;  %v12155_v60 = vadd.f32 %v12083_v6, %v11834_v25  ;;  %v12099_v56 = vld [vmem:[%s16120_s15 + $0x9b] sm:$0xff] }
 0x6a9   : > { %12235 = vst [vmem:[%s18530_s30 + $0x10] sm:$0xff] %v12199_v27  ;;  %v12200_v9 = vadd.f32 %v18524_v11, %v12157_v61 }
 0x6aa   : > { %12233 = vst [vmem:[%s18530_s30] sm:$0xff] %v12197_v32  ;;  %v12198_v24 = vadd.f32 %v18524_v11, %v12155_v60 }
 0x6ab   : > { %12236 = vst [vmem:[%s18530_s30 + $0x18] sm:$0xff] %v12200_v9 }
 0x6ac   : > { %12234 = vst [vmem:[%s18530_s30 + $0x8] sm:$0xff] %v12198_v24  ;;  %v14752_v23 = vpop.f32.mrb[4].mxu1 }
 0x6ad   : > { %v12160_v39 = vadd.f32 %v14752_v23, %v12088_v40  ;;  %v11847_v62 = vpop.f32.mrb[5].mxu1  ;;  %v12102_v23 = vld [vmem:[%s16120_s15 + $0xb3] sm:$0xff] }
 0x6ae   : > { %v12158_v34 = vadd.f32 %v12086_v0, %v11847_v62  ;;  %v14753_v31 = vpop.f32.mrb[6].mxu1  ;;  %v12104_v0 = vld [vmem:[%s16120_s15 + $0xc3] sm:$0xff] }
 0x6af   : > { %v12203_v16 = vadd.f32 %v18524_v11, %v12160_v39  ;;  %v12161_v10 = vadd.f32 %v14753_v31, %v12089_v8  ;;  %v11850_v57 = vpop.f32.mrb[7].mxu1  ;;  %v12105_v39 = vld [vmem:[%s16120_s15 + $0xcb] sm:$0xff] }
 0x6b0   : > { %v12201_v53 = vadd.f32 %v18524_v11, %v12158_v34  ;;  %v12159_v43 = vadd.f32 %v12087_v13, %v11850_v57  ;;  %v12103_v34 = vld [vmem:[%s16120_s15 + $0xbb] sm:$0xff] }
 0x6b1   : > { %12239 = vst [vmem:[%s18530_s30 + $0x30] sm:$0xff] %v12203_v16  ;;  %v12204_v14 = vadd.f32 %v18524_v11, %v12161_v10 }
 0x6b2   : > { %12237 = vst [vmem:[%s18530_s30 + $0x20] sm:$0xff] %v12201_v53  ;;  %v12202_v48 = vadd.f32 %v18524_v11, %v12159_v43 }
 0x6b3   : > { %12240 = vst [vmem:[%s18530_s30 + $0x38] sm:$0xff] %v12204_v14 }
 0x6b4   : > { %12238 = vst [vmem:[%s18530_s30 + $0x28] sm:$0xff] %v12202_v48  ;;  %v14756_v47 = vpop.f32.mrb[8].mxu1 }
 0x6b5   : > { %v12164_v50 = vadd.f32 %v14756_v47, %v12092_v30  ;;  %v11863_v44 = vpop.f32.mrb[9].mxu1  ;;  %v12106_v47 = vld [vmem:[%s16120_s15 + $0xd3] sm:$0xff] }
 0x6b6   : > { %v12162_v33 = vadd.f32 %v12090_v45, %v11863_v44  ;;  %v14757_v52 = vpop.f32.mrb[10].mxu1  ;;  %v12108_v45 = vld [vmem:[%s16120_s15 + $0xe3] sm:$0xff] }
 0x6b7   : > { %v12207_v49 = vadd.f32 %v18524_v11, %v12164_v50  ;;  %v12165_v38 = vadd.f32 %v14757_v52, %v12093_v28  ;;  %v11866_v4 = vpop.f32.mrb[11].mxu1  ;;  %v12109_v50 = vld [vmem:[%s16120_s15 + $0xeb] sm:$0xff] }
 0x6b8   : > { %v12205_v55 = vadd.f32 %v18524_v11, %v12162_v33  ;;  %v12163_v41 = vadd.f32 %v12091_v35, %v11866_v4  ;;  %v12107_v33 = vld [vmem:[%s16120_s15 + $0xdb] sm:$0xff] }
 0x6b9   : > { %12243 = vst [vmem:[%s18530_s30 + $0x50] sm:$0xff] %v12207_v49  ;;  %v12208_v7 = vadd.f32 %v18524_v11, %v12165_v38 }
 0x6ba   : > { %12241 = vst [vmem:[%s18530_s30 + $0x40] sm:$0xff] %v12205_v55  ;;  %v12206_v29 = vadd.f32 %v18524_v11, %v12163_v41 }
 0x6bb   : > { %12244 = vst [vmem:[%s18530_s30 + $0x58] sm:$0xff] %v12208_v7 }
 0x6bc   : > { %12242 = vst [vmem:[%s18530_s30 + $0x48] sm:$0xff] %v12206_v29  ;;  %v14760_v51 = vpop.f32.mrb[12].mxu1 }
 0x6bd   : > { %v12168_v54 = vadd.f32 %v14760_v51, %v12096_v15  ;;  %v11879_v59 = vpop.f32.mrb[13].mxu1  ;;  %v12110_v51 = vld [vmem:[%s16120_s15 + $0xf3] sm:$0xff] }
 0x6be   : > { %v12166_v22 = vadd.f32 %v12094_v19, %v11879_v59  ;;  %v14761_v58 = vpop.f32.mrb[14].mxu1  ;;  %v12112_v19 = vld [vmem:[%s16120_s15 + $0x103] sm:$0xff] }
 0x6bf   : > { %v12211_v37 = vadd.f32 %v18524_v11, %v12168_v54  ;;  %v12169_v20 = vadd.f32 %v14761_v58, %v12097_v63  ;;  %v11882_v42 = vpop.f32.mrb[15].mxu1  ;;  %v12113_v54 = vld [vmem:[%s16120_s15 + $0x10b] sm:$0xff] }
 0x6c0   : > { %v12209_v18 = vadd.f32 %v18524_v11, %v12166_v22  ;;  %v12167_v36 = vadd.f32 %v12095_v17, %v11882_v42  ;;  %v12111_v22 = vld [vmem:[%s16120_s15 + $0xfb] sm:$0xff] }
 0x6c1   : > { %12247 = vst [vmem:[%s18530_s30 + $0x70] sm:$0xff] %v12211_v37  ;;  %v12212_v2 = vadd.f32 %v18524_v11, %v12169_v20 }
 0x6c2   : > { %12245 = vst [vmem:[%s18530_s30 + $0x60] sm:$0xff] %v12209_v18  ;;  %v12210_v5 = vadd.f32 %v18524_v11, %v12167_v36 }
 0x6c3   : > { %12248 = vst [vmem:[%s18530_s30 + $0x78] sm:$0xff] %v12212_v2 }
 0x6c4   : > { %12246 = vst [vmem:[%s18530_s30 + $0x68] sm:$0xff] %v12210_v5  ;;  %v14764_v21 = vpop.f32.mrb[16].mxu1 }
 0x6c5   : > { %v12172_v26 = vadd.f32 %v14764_v21, %v12100_v3  ;;  %v11895_v6 = vpop.f32.mrb[17].mxu1  ;;  %v12114_v21 = vld [vmem:[%s16120_s15 + $0x113] sm:$0xff] }
 0x6c6   : > { %v12170_v1 = vadd.f32 %v12098_v46, %v11895_v6  ;;  %v14765_v27 = vpop.f32.mrb[18].mxu1  ;;  %v12116_v46 = vld [vmem:[%s16120_s15 + $0x123] sm:$0xff] }
 0x6c7   : > { %v12215_v61 = vadd.f32 %v18524_v11, %v12172_v26  ;;  %v12173_v25 = vadd.f32 %v14765_v27, %v12101_v12  ;;  %v11898_v32 = vpop.f32.mrb[19].mxu1  ;;  %v12117_v26 = vld [vmem:[%s16120_s15 + $0x12b] sm:$0xff] }
 0x6c8   : > { %v12213_v60 = vadd.f32 %v18524_v11, %v12170_v1  ;;  %v12171_v9 = vadd.f32 %v12099_v56, %v11898_v32  ;;  %v12115_v1 = vld [vmem:[%s16120_s15 + $0x11b] sm:$0xff] }
 0x6c9   : > { %12251 = vst [vmem:[%s18530_s30 + $0x90] sm:$0xff] %v12215_v61  ;;  %v12216_v24 = vadd.f32 %v18524_v11, %v12173_v25 }
 0x6ca   : > { %12249 = vst [vmem:[%s18530_s30 + $0x80] sm:$0xff] %v12213_v60  ;;  %v12214_v40 = vadd.f32 %v18524_v11, %v12171_v9 }
 0x6cb   : > { %12252 = vst [vmem:[%s18530_s30 + $0x98] sm:$0xff] %v12216_v24 }
 0x6cc   : > { %12250 = vst [vmem:[%s18530_s30 + $0x88] sm:$0xff] %v12214_v40  ;;  %v14768_v8 = vpop.f32.mrb[20].mxu1 }
 0x6cd   : > { %v12176_v62 = vadd.f32 %v14768_v8, %v12104_v0  ;;  %v11911_v13 = vpop.f32.mrb[21].mxu1 }
 0x6ce   : > { %v12174_v31 = vadd.f32 %v12102_v23, %v11911_v13  ;;  %v14769_v16 = vpop.f32.mrb[22].mxu1 }
 0x6cf   : > { %v12219_v10 = vadd.f32 %v18524_v11, %v12176_v62  ;;  %v12177_v57 = vadd.f32 %v14769_v16, %v12105_v39  ;;  %v11914_v53 = vpop.f32.mrb[23].mxu1 }
 0x6d0   : > { %v12217_v43 = vadd.f32 %v18524_v11, %v12174_v31  ;;  %v12175_v14 = vadd.f32 %v12103_v34, %v11914_v53 }
 0x6d1   : > { %12255 = vst [vmem:[%s18530_s30 + $0xb0] sm:$0xff] %v12219_v10  ;;  %v12220_v48 = vadd.f32 %v18524_v11, %v12177_v57 }
 0x6d2   : > { %12253 = vst [vmem:[%s18530_s30 + $0xa0] sm:$0xff] %v12217_v43  ;;  %v12218_v30 = vadd.f32 %v18524_v11, %v12175_v14 }
 0x6d3   : > { %12256 = vst [vmem:[%s18530_s30 + $0xb8] sm:$0xff] %v12220_v48 }
 0x6d4   : > { %12254 = vst [vmem:[%s18530_s30 + $0xa8] sm:$0xff] %v12218_v30  ;;  %v14772_v28 = vpop.f32.mrb[24].mxu1 }
 0x6d5   : > { %v12180_v44 = vadd.f32 %v14772_v28, %v12108_v45  ;;  %v11927_v35 = vpop.f32.mrb[25].mxu1 }
 0x6d6   : > { %v12178_v52 = vadd.f32 %v12106_v47, %v11927_v35  ;;  %v14773_v49 = vpop.f32.mrb[26].mxu1 }
 0x6d7   : > { %v12223_v38 = vadd.f32 %v18524_v11, %v12180_v44  ;;  %v12181_v4 = vadd.f32 %v14773_v49, %v12109_v50  ;;  %v11930_v55 = vpop.f32.mrb[27].mxu1 }
 0x6d8   : > { %v12221_v41 = vadd.f32 %v18524_v11, %v12178_v52  ;;  %v12179_v7 = vadd.f32 %v12107_v33, %v11930_v55 }
 0x6d9   : > { %12259 = vst [vmem:[%s18530_s30 + $0xd0] sm:$0xff] %v12223_v38  ;;  %v12224_v29 = vadd.f32 %v18524_v11, %v12181_v4 }
 0x6da   : > { %12257 = vst [vmem:[%s18530_s30 + $0xc0] sm:$0xff] %v12221_v41  ;;  %v12222_v15 = vadd.f32 %v18524_v11, %v12179_v7 }
 0x6db   : > { %12260 = vst [vmem:[%s18530_s30 + $0xd8] sm:$0xff] %v12224_v29 }
 0x6dc   : > { %12258 = vst [vmem:[%s18530_s30 + $0xc8] sm:$0xff] %v12222_v15  ;;  %v14776_v63 = vpop.f32.mrb[28].mxu1 }
 0x6dd   : > { %v12184_v59 = vadd.f32 %v14776_v63, %v12112_v19  ;;  %v11943_v17 = vpop.f32.mrb[29].mxu1 }
 0x6de   : > { %v12182_v58 = vadd.f32 %v12110_v51, %v11943_v17  ;;  %v14777_v37 = vpop.f32.mrb[30].mxu1 }
 0x6df   : > { %v12227_v20 = vadd.f32 %v18524_v11, %v12184_v59  ;;  %v12185_v42 = vadd.f32 %v14777_v37, %v12113_v54  ;;  %v11946_v18 = vpop.f32.mrb[31].mxu1 }
 0x6e0   : > { %v12225_v36 = vadd.f32 %v18524_v11, %v12182_v58  ;;  %v12183_v2 = vadd.f32 %v12111_v22, %v11946_v18 }
 0x6e1   : > { %12263 = vst [vmem:[%s18530_s30 + $0xf0] sm:$0xff] %v12227_v20  ;;  %v12228_v5 = vadd.f32 %v18524_v11, %v12185_v42 }
 0x6e2   : > { %12261 = vst [vmem:[%s18530_s30 + $0xe0] sm:$0xff] %v12225_v36  ;;  %v12226_v3 = vadd.f32 %v18524_v11, %v12183_v2 }
 0x6e3   : > { %12264 = vst [vmem:[%s18530_s30 + $0xf8] sm:$0xff] %v12228_v5 }
 0x6e4   : > { %12262 = vst [vmem:[%s18530_s30 + $0xe8] sm:$0xff] %v12226_v3  ;;  %v14780_v12 = vpop.f32.mrb[32].mxu1 }
 0x6e5   : > { %v12188_v6 = vadd.f32 %v14780_v12, %v12116_v46  ;;  %v11959_v56 = vpop.f32.mrb[33].mxu1 }
 0x6e6   : > { %v12186_v27 = vadd.f32 %v12114_v21, %v11959_v56  ;;  %v14781_v61 = vpop.f32.mrb[34].mxu1 }
 0x6e7   : > { %v12231_v25 = vadd.f32 %v18524_v11, %v12188_v6  ;;  %v12189_v32 = vadd.f32 %v14781_v61, %v12117_v26  ;;  %v11962_v60 = vpop.f32.mrb[35].mxu1 }
 0x6e8   : > { %v12229_v9 = vadd.f32 %v18524_v11, %v12186_v27  ;;  %v12187_v24 = vadd.f32 %v12115_v1, %v11962_v60 }
 0x6e9   : > { %12267 = vst [vmem:[%s18530_s30 + $0x110] sm:$0xff] %v12231_v25  ;;  %v12232_v40 = vadd.f32 %v18524_v11, %v12189_v32 }
 0x6ea   : > { %12265 = vst [vmem:[%s18530_s30 + $0x100] sm:$0xff] %v12229_v9  ;;  %v12230_v0 = vadd.f32 %v18524_v11, %v12187_v24 }
 0x6eb   : > { %12268 = vst [vmem:[%s18530_s30 + $0x118] sm:$0xff] %v12232_v40 }
 0x6ec   : > { %12266 = vst [vmem:[%s18530_s30 + $0x108] sm:$0xff] %v12230_v0 }
 0x6ed   : > { %15973 = shalt.err (!%p15970_p3)
}
 0x6ee   : > { %s15974_s14 = scalar_lea.hbm %s18635_s22, 4608  ;;  %s15978_s23 = scalar_lea.hbm %s18691_s5, 9216 }
 0x6ef   : > { %p15975_p4 = scmp.ne.s32.totalorder %s18635_s22, %s15974_s14  ;;  %p15979_p9 = scmp.lt.u32.totalorder %s18635_s22, %s18691_s5 }
 0x6f0   : > { %p15980_p10 = scmp.lt.u32.totalorder %s15978_s23, %s15974_s14  ;;  %p15982_p12 = scmp.lt.u32.totalorder %s15974_s14, %s18635_s22 }
 0x6f1   : > { %p15976_p7 = pnand %p15975_p4, %p16096_p5 }
 0x6f2   : > { %p15981_p11 = por %p15980_p10, %p15979_p9 }
 0x6f3   : > { %p15977_p8 = pneg %p15976_p7 }
 0x6f4   : > { %p15983_p13 = por %p15982_p12, %p15981_p11 }
 0x6f6   : > { %p15984_p0 = pnand %p15983_p13, %p15977_p8 }
 0x6f8   : > { %15987 = shalt.err (!%p15984_p0)
}
 0x6f9   : > { %s16026_s30 = smov 128   ;;  %s16027_s6 = smov 8  }
 0x6fa   : > { %15433 = dma.vmem_to_hbm [thread:$0]  (%p16096_p5), %s18639_s7, 4608, %s18635_s22, %s18645_s9, %s16026_s30, %s16026_s30, %s16027_s6  }
 0x6fb PF: > { %p15439_p1 = scmp.ge.s32.totalorder %s16022_s21, 2  ;;  %s12298_s8 = sand.u32 1, %s16010_s18  }
 0x6fc   : > { %s12299_s15 = scalar_lea.sflag [#allocation6], %s12298_s8 }
 0x6fd   : > { %p15436_p2 = pnand %p15439_p1, %p16100_p6 }
 0x6ff   : > { %16005 = dma.done.wait (!%p15436_p2), %s12299_s15, 4608  }
 0x700   : > { %16007 = vsyncadd (!%p15436_p2), %s12299_s15, 4294962688  ;;  %p15_p3 = scmp.ge.s32.totalorder %s16083_s24, 4   ;;  %s19329_s18 = smov %s16014_s19 }
 0x701   : > { %s19330_s19 = smov %s16018_s20  ;;  %s19331_s20 = smov %s16094_s27 }
 0x702   : > { %s19332_s21 = smov %s16083_s24  ;;  %17 = sbr.rel (!%p15_p3) target bundleno = 3 (0x3), region = 91 }
 0x709   :  { %12304 = vsyncpa [#allocation6], 1 }
 0x70a   :  { %12306 = vsyncpa [#allocation6 + $0x1], 1 }

</bundles_post_ra>
